<compile_context>
chip_gen: v7x
topology: tpu7x:2x2x1
jax: 0.10.0
libtpu: 0.0.40
codegen_flags: <defaults>
</compile_context>

<pallas_src>
import math
from functools import partial

import jax
import jax.numpy as jnp
from jax.experimental import pallas as pl
from jax.experimental.pallas import tpu as pltpu


def _round_up(x, m):
    return ((x + m - 1) // m) * m


# ---------------------------------------------------------------------------
# AddCoords (3D) — matches the torch reference semantics (cubic volume).
# Channel order appended: xx, yy, zz, radius.
#   xx[b,0,a0,a1,a2] = 2*a1/(D-1) - 1
#   yy[b,0,a0,a1,a2] = 2*a0/(D-1) - 1
#   zz[b,0,a0,a1,a2] = 2*a2/(D-1) - 1
# ---------------------------------------------------------------------------
def add_coords(x, radius_channel=True):
    B, C, D0, D1, D2 = x.shape
    assert D0 == D1 == D2, "torch AddCoords concat only valid for cubic volumes"
    D = D0
    c = jnp.arange(D, dtype=jnp.float32)
    cn = c / (D - 1) * 2.0 - 1.0 if D > 1 else c   # D==1: raw index, like torch
    xx = jnp.broadcast_to(cn[None, :, None], (D, D, D))
    yy = jnp.broadcast_to(cn[:, None, None], (D, D, D))
    zz = jnp.broadcast_to(cn[None, None, :], (D, D, D))
    chans = [xx, yy, zz]
    if radius_channel:
        chans.append(jnp.sqrt(xx * xx + yy * yy + zz * zz))
    extra = jnp.stack(chans, axis=0)[None]                      # (1, 3+r, D, D, D)
    extra = jnp.broadcast_to(extra, (B,) + extra.shape[1:])
    return jnp.concatenate([x.astype(jnp.float32), extra], axis=1)


# ---------------------------------------------------------------------------
# Pallas kernel: fused im2col + single-matmul conv-transpose for one
# (batch, E-tile) grid step.
#   xp_ref  : (Cin_p, Lp)  bf16  padded input volume, spatial dims flattened
#   w_ref   : (OC, Kc)     bf16  fused weight matrix, Kc = K^3 * Cin_p
#   b_ref   : (OC, 1)      f32   bias column
#   o_ref   : (OC, Et)     f32   output tile on the flat padded grid
#   col_ref : (Kc, Et)     bf16  VMEM im2col scratch (tap-major row blocks)
# For an extended-output flat index e, tap (kz,ky,kx) reads xp at
# e + (kz*Dp^2 + ky*Dp + kx): a constant shift, materialized once per tap.
# ---------------------------------------------------------------------------
def _convt_fused_kernel(xp_ref, w_ref, b_ref, o_ref, col_ref, *,
                        K, Cin_p, Dp, Et, n_et):
    # Base lane offset of this output tile on the flat padded grid.
    if n_et == 1:
        e0 = 0                                              # fully static slices
    else:
        e0 = pl.multiple_of(pl.program_id(1) * Et, 128)

    # Fused im2col: each of the K^3 shifts is read from VMEM exactly once and
    # stored to a 16-row-aligned block of the scratch (all rows written every
    # step, so no zero-init is ever needed).
    for kz in range(K):
        for ky in range(K):
            for kx in range(K):
                t = (kz * K + ky) * K + kx
                shift = kz * Dp * Dp + ky * Dp + kx
                col_ref[pl.ds(t * Cin_p, Cin_p), :] = \
                    xp_ref[:, pl.ds(e0 + shift, Et)]

    # One fused matmul over the whole K^3*Cin_p contraction; accumulation
    # stays in the MXU result path (f32).  Lane-dense (OC, Et) store.
    o_ref[...] = (jnp.dot(w_ref[...], col_ref[...],
                          preferred_element_type=jnp.float32)
                  + b_ref[...])


# ---------------------------------------------------------------------------
# ConvTranspose3d (stride=1, padding=0, output_padding=0, dilation=1, groups=1)
#   out[b,oc,o] = bias[oc] + sum_{ic,k} pad_{K-1}(x)[b,ic,o+k] * W[ic,oc,K-1-k]
# ---------------------------------------------------------------------------
def coord_conv_transpose3d(x, W, bias, radius_channel=True):
    x_aug = add_coords(x, radius_channel)                       # (B, Cin, D, D, D) f32
    B, Cin, D, _, _ = x_aug.shape
    IC, OC, K, _, _ = W.shape
    assert IC == Cin
    Do = D + K - 1
    pad = K - 1
    Dp = D + 2 * pad                                            # padded spatial extent
    flat = Dp * Dp * Dp

    # ---- output tiling over the flat padded grid ---------------------------
    ET_CAP = 2048                                               # lanes per output tile
    n_et = max(-(-flat // ET_CAP), 2 if B == 1 else 1)          # >=2 tiles if B==1 (v7x 2 TCs)
    Et = _round_up(-(-flat // n_et), 128)                       # lane-dense tile width
    E = Et * n_et
    max_shift = (K - 1) * (Dp * Dp + Dp + 1)
    Lp = _round_up(E + max_shift, 128)                          # flat input length

    # ---- operands: bf16 cast BEFORE padding; channel dim padded to 16 ------
    Cin_p = _round_up(Cin, 16)                                  # bf16 sublane-pack aligned
    xp = jnp.pad(x_aug.astype(jnp.bfloat16),
                 ((0, 0), (0, Cin_p - Cin),
                  (pad, pad), (pad, pad), (pad, pad)))
    xp_flat = jnp.pad(xp.reshape(B, Cin_p, flat),
                      ((0, 0), (0, 0), (0, Lp - flat)))

    # lane-dense fused weight: W2d[oc, t*Cin_p + ic] = W[ic, oc, K-1-kz, K-1-ky, K-1-kx]
    Kc = K * K * K * Cin_p
    Wf = W[:, :, ::-1, ::-1, ::-1]                              # (Cin, OC, K, K, K)
    Wt = jnp.transpose(Wf, (2, 3, 4, 0, 1))                     # (kz, ky, kx, ic, oc)
    Wt = jnp.pad(Wt, ((0, 0), (0, 0), (0, 0), (0, Cin_p - Cin), (0, 0)))
    W2d = Wt.reshape(Kc, OC).T.astype(jnp.bfloat16)             # (OC, Kc)
    bias_col = bias.reshape(OC, 1).astype(jnp.float32)

    # ---- VMEM budget / scheduler hints --------------------------------------
    in_blk = Cin_p * Lp * 2
    out_blk = OC * Et * 4
    col_blk = Kc * Et * 2
    need = 2 * in_blk + 2 * out_blk + 2 * (OC * Kc * 2) + 2 * (OC * 128 * 4) + col_blk
    vmem_limit = int(min(max(2 * need, 32 << 20), 48 << 20))
    flops = 2 * B * OC * Kc * E
    bytes_accessed = B * in_blk + OC * Kc * 2 + B * OC * E * 4 + OC * 4

    out_ext = pl.pallas_call(
        partial(_convt_fused_kernel, K=K, Cin_p=Cin_p, Dp=Dp, Et=Et, n_et=n_et),
        out_shape=jax.ShapeDtypeStruct((B, OC, E), jnp.float32),
        grid=(B, n_et),
        in_specs=[
            pl.BlockSpec((None, Cin_p, Lp), lambda b, e: (b, 0, 0)),   # full padded volume
            pl.BlockSpec((OC, Kc), lambda b, e: (0, 0)),               # fused weight matrix
            pl.BlockSpec((OC, 1), lambda b, e: (0, 0)),                # bias column
        ],
        out_specs=pl.BlockSpec((None, OC, Et), lambda b, e: (b, 0, e)),
        scratch_shapes=[pltpu.VMEM((Kc, Et), jnp.bfloat16)],           # im2col scratch
        compiler_params=pltpu.CompilerParams(
            dimension_semantics=("parallel", "parallel"),
            vmem_limit_bytes=vmem_limit),
        cost_estimate=pl.CostEstimate(flops=flops, transcendentals=0,
                                      bytes_accessed=bytes_accessed),
    )(xp_flat, W2d, bias_col)

    # crop flat padded grid -> (B, OC, Do, Do, Do)
    out = out_ext[:, :, :flat].reshape(B, OC, Dp, Dp, Dp)[:, :, :Do, :Do, :Do]
    return out


# ---------------------------------------------------------------------------
# Pure-JAX reference for the ConvTranspose3d part (sanity check)
# ---------------------------------------------------------------------------
def _ref_conv_transpose3d(x_aug, W, bias):
    OC, K = W.shape[1], W.shape[2]
    rhs = jnp.transpose(W[:, :, ::-1, ::-1, ::-1], (1, 0, 2, 3, 4))  # (OC, IC, k, k, k)
    out = jax.lax.conv_general_dilated(
        x_aug, rhs, window_strides=(1, 1, 1),
        padding=[(K - 1, K - 1)] * 3,
        dimension_numbers=("NCDHW", "OIDHW", "NCDHW"))
    return out + bias.reshape(1, OC, 1, 1, 1)


if __name__ == "__main__":
    B, C, D = 2, 4, 8        # input (B, C, D, D, D), cubic (required by torch AddCoords)
    OC, K = 8, 3
    radius_channel = True
    Cin_aug = C + 3 + int(radius_channel)

    key = jax.random.PRNGKey(0)
    k_x, k_w, k_b = jax.random.split(key, 3)
    x = jax.random.normal(k_x, (B, C, D, D, D), dtype=jnp.float32)

    # deterministic init mirroring torch ConvTranspose3d default (uniform +- 1/sqrt(fan_in))
    fan_in = OC * K * K * K
    bound = 1.0 / math.sqrt(fan_in)
    W = jax.random.uniform(k_w, (Cin_aug, OC, K, K, K), jnp.float32, -bound, bound)
    bias = jax.random.uniform(k_b, (OC,), jnp.float32, -bound, bound)

    fwd = jax.jit(partial(coord_conv_transpose3d, radius_channel=radius_channel))
    out = jax.block_until_ready(fwd(x, W, bias))

    # sanity-check against XLA conv reference (bf16 operands -> looser tolerance)
    ref = _ref_conv_transpose3d(add_coords(x, radius_channel), W, bias)
    assert out.shape == (B, OC, D + K - 1, D + K - 1, D + K - 1), out.shape
    max_err = float(jnp.max(jnp.abs(out - ref)))
    assert jnp.allclose(out, ref, atol=2e-2, rtol=2e-2), max_err

    print("KERNEL_OK")
</pallas_src>

<mosaic_0001>
module attributes {stable_mosaic.version = 11 : i64} {
  func.func @_convt_fused_kernel(%arg0: i32, %arg1: i32, %arg2: memref<1x16x2176xbf16, #tpu.memory_space<vmem>>, %arg3: memref<8x432xbf16, #tpu.memory_space<vmem>>, %arg4: memref<8x1xf32, #tpu.memory_space<vmem>>, %arg5: memref<1x8x1792xf32, #tpu.memory_space<vmem>>, %arg6: memref<432x1792xbf16, #tpu.memory_space<vmem>>) attributes {dimension_semantics = [#tpu.dimension_semantics<parallel>, #tpu.dimension_semantics<parallel>], iteration_bounds = array<i64: 2, 1>, scalar_prefetch = 0 : i64, scratch_operands = 1 : i64, tpu.core_type = #tpu.core_type<tc>, window_params = [{transform_indices = @transform_0, window_bounds = array<i64: 1, 16, 2176>}, {pipeline_mode = #tpu.pipeline_mode<synchronous>, transform_indices = @transform_1, window_bounds = array<i64: 8, 432>}, {pipeline_mode = #tpu.pipeline_mode<synchronous>, transform_indices = @transform_2, window_bounds = array<i64: 8, 1>}, {transform_indices = @transform_3, window_bounds = array<i64: 1, 8, 1792>}]} {
    %c0 = arith.constant 0 : index
    %c0_0 = arith.constant 0 : index
    %c0_1 = arith.constant 0 : index
    %0 = vector.load %arg2[%c0, %c0_0, %c0_1] : memref<1x16x2176xbf16, #tpu.memory_space<vmem>>, vector<1x16x1792xbf16>
    %1 = vector.shape_cast %0 : vector<1x16x1792xbf16> to vector<16x1792xbf16>
    %c0_2 = arith.constant 0 : index
    %c0_3 = arith.constant 0 : index
    %2 = vector.load %arg6[%c0_2, %c0_3] : memref<432x1792xbf16, #tpu.memory_space<vmem>>, vector<16x1792xbf16>
    tpu.vector_store %arg6[%c0_2, %c0_3], %1 {strides = array<i32>} : memref<432x1792xbf16, #tpu.memory_space<vmem>>, vector<16x1792xbf16>,
    %c0_4 = arith.constant 0 : index
    %c0_5 = arith.constant 0 : index
    %c1 = arith.constant 1 : index
    %3 = vector.load %arg2[%c0_4, %c0_5, %c1] : memref<1x16x2176xbf16, #tpu.memory_space<vmem>>, vector<1x16x1792xbf16>
    %4 = vector.shape_cast %3 : vector<1x16x1792xbf16> to vector<16x1792xbf16>
    %c16 = arith.constant 16 : index
    %c0_6 = arith.constant 0 : index
    %5 = vector.load %arg6[%c16, %c0_6] : memref<432x1792xbf16, #tpu.memory_space<vmem>>, vector<16x1792xbf16>
    tpu.vector_store %arg6[%c16, %c0_6], %4 {strides = array<i32>} : memref<432x1792xbf16, #tpu.memory_space<vmem>>, vector<16x1792xbf16>,
    %c0_7 = arith.constant 0 : index
    %c0_8 = arith.constant 0 : index
    %c2 = arith.constant 2 : index
    %6 = vector.load %arg2[%c0_7, %c0_8, %c2] : memref<1x16x2176xbf16, #tpu.memory_space<vmem>>, vector<1x16x1792xbf16>
    %7 = vector.shape_cast %6 : vector<1x16x1792xbf16> to vector<16x1792xbf16>
    %c32 = arith.constant 32 : index
    %c0_9 = arith.constant 0 : index
    %8 = vector.load %arg6[%c32, %c0_9] : memref<432x1792xbf16, #tpu.memory_space<vmem>>, vector<16x1792xbf16>
    tpu.vector_store %arg6[%c32, %c0_9], %7 {strides = array<i32>} : memref<432x1792xbf16, #tpu.memory_space<vmem>>, vector<16x1792xbf16>,
    %c0_10 = arith.constant 0 : index
    %c0_11 = arith.constant 0 : index
    %c12 = arith.constant 12 : index
    %9 = vector.load %arg2[%c0_10, %c0_11, %c12] : memref<1x16x2176xbf16, #tpu.memory_space<vmem>>, vector<1x16x1792xbf16>
    %10 = vector.shape_cast %9 : vector<1x16x1792xbf16> to vector<16x1792xbf16>
    %c48 = arith.constant 48 : index
    %c0_12 = arith.constant 0 : index
    %11 = vector.load %arg6[%c48, %c0_12] : memref<432x1792xbf16, #tpu.memory_space<vmem>>, vector<16x1792xbf16>
    tpu.vector_store %arg6[%c48, %c0_12], %10 {strides = array<i32>} : memref<432x1792xbf16, #tpu.memory_space<vmem>>, vector<16x1792xbf16>,
    %c0_13 = arith.constant 0 : index
    %c0_14 = arith.constant 0 : index
    %c13 = arith.constant 13 : index
    %12 = vector.load %arg2[%c0_13, %c0_14, %c13] : memref<1x16x2176xbf16, #tpu.memory_space<vmem>>, vector<1x16x1792xbf16>
    %13 = vector.shape_cast %12 : vector<1x16x1792xbf16> to vector<16x1792xbf16>
    %c64 = arith.constant 64 : index
    %c0_15 = arith.constant 0 : index
    %14 = vector.load %arg6[%c64, %c0_15] : memref<432x1792xbf16, #tpu.memory_space<vmem>>, vector<16x1792xbf16>
    tpu.vector_store %arg6[%c64, %c0_15], %13 {strides = array<i32>} : memref<432x1792xbf16, #tpu.memory_space<vmem>>, vector<16x1792xbf16>,
    %c0_16 = arith.constant 0 : index
    %c0_17 = arith.constant 0 : index
    %c14 = arith.constant 14 : index
    %15 = vector.load %arg2[%c0_16, %c0_17, %c14] : memref<1x16x2176xbf16, #tpu.memory_space<vmem>>, vector<1x16x1792xbf16>
    %16 = vector.shape_cast %15 : vector<1x16x1792xbf16> to vector<16x1792xbf16>
    %c80 = arith.constant 80 : index
    %c0_18 = arith.constant 0 : index
    %17 = vector.load %arg6[%c80, %c0_18] : memref<432x1792xbf16, #tpu.memory_space<vmem>>, vector<16x1792xbf16>
    tpu.vector_store %arg6[%c80, %c0_18], %16 {strides = array<i32>} : memref<432x1792xbf16, #tpu.memory_space<vmem>>, vector<16x1792xbf16>,
    %c0_19 = arith.constant 0 : index
    %c0_20 = arith.constant 0 : index
    %c24 = arith.constant 24 : index
    %18 = vector.load %arg2[%c0_19, %c0_20, %c24] : memref<1x16x2176xbf16, #tpu.memory_space<vmem>>, vector<1x16x1792xbf16>
    %19 = vector.shape_cast %18 : vector<1x16x1792xbf16> to vector<16x1792xbf16>
    %c96 = arith.constant 96 : index
    %c0_21 = arith.constant 0 : index
    %20 = vector.load %arg6[%c96, %c0_21] : memref<432x1792xbf16, #tpu.memory_space<vmem>>, vector<16x1792xbf16>
    tpu.vector_store %arg6[%c96, %c0_21], %19 {strides = array<i32>} : memref<432x1792xbf16, #tpu.memory_space<vmem>>, vector<16x1792xbf16>,
    %c0_22 = arith.constant 0 : index
    %c0_23 = arith.constant 0 : index
    %c25 = arith.constant 25 : index
    %21 = vector.load %arg2[%c0_22, %c0_23, %c25] : memref<1x16x2176xbf16, #tpu.memory_space<vmem>>, vector<1x16x1792xbf16>
    %22 = vector.shape_cast %21 : vector<1x16x1792xbf16> to vector<16x1792xbf16>
    %c112 = arith.constant 112 : index
    %c0_24 = arith.constant 0 : index
    %23 = vector.load %arg6[%c112, %c0_24] : memref<432x1792xbf16, #tpu.memory_space<vmem>>, vector<16x1792xbf16>
    tpu.vector_store %arg6[%c112, %c0_24], %22 {strides = array<i32>} : memref<432x1792xbf16, #tpu.memory_space<vmem>>, vector<16x1792xbf16>,
    %c0_25 = arith.constant 0 : index
    %c0_26 = arith.constant 0 : index
    %c26 = arith.constant 26 : index
    %24 = vector.load %arg2[%c0_25, %c0_26, %c26] : memref<1x16x2176xbf16, #tpu.memory_space<vmem>>, vector<1x16x1792xbf16>
    %25 = vector.shape_cast %24 : vector<1x16x1792xbf16> to vector<16x1792xbf16>
    %c128 = arith.constant 128 : index
    %c0_27 = arith.constant 0 : index
    %26 = vector.load %arg6[%c128, %c0_27] : memref<432x1792xbf16, #tpu.memory_space<vmem>>, vector<16x1792xbf16>
    tpu.vector_store %arg6[%c128, %c0_27], %25 {strides = array<i32>} : memref<432x1792xbf16, #tpu.memory_space<vmem>>, vector<16x1792xbf16>,
    %c0_28 = arith.constant 0 : index
    %c0_29 = arith.constant 0 : index
    %c144 = arith.constant 144 : index
    %27 = vector.load %arg2[%c0_28, %c0_29, %c144] : memref<1x16x2176xbf16, #tpu.memory_space<vmem>>, vector<1x16x1792xbf16>
    %28 = vector.shape_cast %27 : vector<1x16x1792xbf16> to vector<16x1792xbf16>
    %c144_30 = arith.constant 144 : index
    %c0_31 = arith.constant 0 : index
    %29 = vector.load %arg6[%c144_30, %c0_31] : memref<432x1792xbf16, #tpu.memory_space<vmem>>, vector<16x1792xbf16>
    tpu.vector_store %arg6[%c144_30, %c0_31], %28 {strides = array<i32>} : memref<432x1792xbf16, #tpu.memory_space<vmem>>, vector<16x1792xbf16>,
    %c0_32 = arith.constant 0 : index
    %c0_33 = arith.constant 0 : index
    %c145 = arith.constant 145 : index
    %30 = vector.load %arg2[%c0_32, %c0_33, %c145] : memref<1x16x2176xbf16, #tpu.memory_space<vmem>>, vector<1x16x1792xbf16>
    %31 = vector.shape_cast %30 : vector<1x16x1792xbf16> to vector<16x1792xbf16>
    %c160 = arith.constant 160 : index
    %c0_34 = arith.constant 0 : index
    %32 = vector.load %arg6[%c160, %c0_34] : memref<432x1792xbf16, #tpu.memory_space<vmem>>, vector<16x1792xbf16>
    tpu.vector_store %arg6[%c160, %c0_34], %31 {strides = array<i32>} : memref<432x1792xbf16, #tpu.memory_space<vmem>>, vector<16x1792xbf16>,
    %c0_35 = arith.constant 0 : index
    %c0_36 = arith.constant 0 : index
    %c146 = arith.constant 146 : index
    %33 = vector.load %arg2[%c0_35, %c0_36, %c146] : memref<1x16x2176xbf16, #tpu.memory_space<vmem>>, vector<1x16x1792xbf16>
    %34 = vector.shape_cast %33 : vector<1x16x1792xbf16> to vector<16x1792xbf16>
    %c176 = arith.constant 176 : index
    %c0_37 = arith.constant 0 : index
    %35 = vector.load %arg6[%c176, %c0_37] : memref<432x1792xbf16, #tpu.memory_space<vmem>>, vector<16x1792xbf16>
    tpu.vector_store %arg6[%c176, %c0_37], %34 {strides = array<i32>} : memref<432x1792xbf16, #tpu.memory_space<vmem>>, vector<16x1792xbf16>,
    %c0_38 = arith.constant 0 : index
    %c0_39 = arith.constant 0 : index
    %c156 = arith.constant 156 : index
    %36 = vector.load %arg2[%c0_38, %c0_39, %c156] : memref<1x16x2176xbf16, #tpu.memory_space<vmem>>, vector<1x16x1792xbf16>
    %37 = vector.shape_cast %36 : vector<1x16x1792xbf16> to vector<16x1792xbf16>
    %c192 = arith.constant 192 : index
    %c0_40 = arith.constant 0 : index
    %38 = vector.load %arg6[%c192, %c0_40] : memref<432x1792xbf16, #tpu.memory_space<vmem>>, vector<16x1792xbf16>
    tpu.vector_store %arg6[%c192, %c0_40], %37 {strides = array<i32>} : memref<432x1792xbf16, #tpu.memory_space<vmem>>, vector<16x1792xbf16>,
    %c0_41 = arith.constant 0 : index
    %c0_42 = arith.constant 0 : index
    %c157 = arith.constant 157 : index
    %39 = vector.load %arg2[%c0_41, %c0_42, %c157] : memref<1x16x2176xbf16, #tpu.memory_space<vmem>>, vector<1x16x1792xbf16>
    %40 = vector.shape_cast %39 : vector<1x16x1792xbf16> to vector<16x1792xbf16>
    %c208 = arith.constant 208 : index
    %c0_43 = arith.constant 0 : index
    %41 = vector.load %arg6[%c208, %c0_43] : memref<432x1792xbf16, #tpu.memory_space<vmem>>, vector<16x1792xbf16>
    tpu.vector_store %arg6[%c208, %c0_43], %40 {strides = array<i32>} : memref<432x1792xbf16, #tpu.memory_space<vmem>>, vector<16x1792xbf16>,
    %c0_44 = arith.constant 0 : index
    %c0_45 = arith.constant 0 : index
    %c158 = arith.constant 158 : index
    %42 = vector.load %arg2[%c0_44, %c0_45, %c158] : memref<1x16x2176xbf16, #tpu.memory_space<vmem>>, vector<1x16x1792xbf16>
    %43 = vector.shape_cast %42 : vector<1x16x1792xbf16> to vector<16x1792xbf16>
    %c224 = arith.constant 224 : index
    %c0_46 = arith.constant 0 : index
    %44 = vector.load %arg6[%c224, %c0_46] : memref<432x1792xbf16, #tpu.memory_space<vmem>>, vector<16x1792xbf16>
    tpu.vector_store %arg6[%c224, %c0_46], %43 {strides = array<i32>} : memref<432x1792xbf16, #tpu.memory_space<vmem>>, vector<16x1792xbf16>,
    %c0_47 = arith.constant 0 : index
    %c0_48 = arith.constant 0 : index
    %c168 = arith.constant 168 : index
    %45 = vector.load %arg2[%c0_47, %c0_48, %c168] : memref<1x16x2176xbf16, #tpu.memory_space<vmem>>, vector<1x16x1792xbf16>
    %46 = vector.shape_cast %45 : vector<1x16x1792xbf16> to vector<16x1792xbf16>
    %c240 = arith.constant 240 : index
    %c0_49 = arith.constant 0 : index
    %47 = vector.load %arg6[%c240, %c0_49] : memref<432x1792xbf16, #tpu.memory_space<vmem>>, vector<16x1792xbf16>
    tpu.vector_store %arg6[%c240, %c0_49], %46 {strides = array<i32>} : memref<432x1792xbf16, #tpu.memory_space<vmem>>, vector<16x1792xbf16>,
    %c0_50 = arith.constant 0 : index
    %c0_51 = arith.constant 0 : index
    %c169 = arith.constant 169 : index
    %48 = vector.load %arg2[%c0_50, %c0_51, %c169] : memref<1x16x2176xbf16, #tpu.memory_space<vmem>>, vector<1x16x1792xbf16>
    %49 = vector.shape_cast %48 : vector<1x16x1792xbf16> to vector<16x1792xbf16>
    %c256 = arith.constant 256 : index
    %c0_52 = arith.constant 0 : index
    %50 = vector.load %arg6[%c256, %c0_52] : memref<432x1792xbf16, #tpu.memory_space<vmem>>, vector<16x1792xbf16>
    tpu.vector_store %arg6[%c256, %c0_52], %49 {strides = array<i32>} : memref<432x1792xbf16, #tpu.memory_space<vmem>>, vector<16x1792xbf16>,
    %c0_53 = arith.constant 0 : index
    %c0_54 = arith.constant 0 : index
    %c170 = arith.constant 170 : index
    %51 = vector.load %arg2[%c0_53, %c0_54, %c170] : memref<1x16x2176xbf16, #tpu.memory_space<vmem>>, vector<1x16x1792xbf16>
    %52 = vector.shape_cast %51 : vector<1x16x1792xbf16> to vector<16x1792xbf16>
    %c272 = arith.constant 272 : index
    %c0_55 = arith.constant 0 : index
    %53 = vector.load %arg6[%c272, %c0_55] : memref<432x1792xbf16, #tpu.memory_space<vmem>>, vector<16x1792xbf16>
    tpu.vector_store %arg6[%c272, %c0_55], %52 {strides = array<i32>} : memref<432x1792xbf16, #tpu.memory_space<vmem>>, vector<16x1792xbf16>,
    %c0_56 = arith.constant 0 : index
    %c0_57 = arith.constant 0 : index
    %c288 = arith.constant 288 : index
    %54 = vector.load %arg2[%c0_56, %c0_57, %c288] : memref<1x16x2176xbf16, #tpu.memory_space<vmem>>, vector<1x16x1792xbf16>
    %55 = vector.shape_cast %54 : vector<1x16x1792xbf16> to vector<16x1792xbf16>
    %c288_58 = arith.constant 288 : index
    %c0_59 = arith.constant 0 : index
    %56 = vector.load %arg6[%c288_58, %c0_59] : memref<432x1792xbf16, #tpu.memory_space<vmem>>, vector<16x1792xbf16>
    tpu.vector_store %arg6[%c288_58, %c0_59], %55 {strides = array<i32>} : memref<432x1792xbf16, #tpu.memory_space<vmem>>, vector<16x1792xbf16>,
    %c0_60 = arith.constant 0 : index
    %c0_61 = arith.constant 0 : index
    %c289 = arith.constant 289 : index
    %57 = vector.load %arg2[%c0_60, %c0_61, %c289] : memref<1x16x2176xbf16, #tpu.memory_space<vmem>>, vector<1x16x1792xbf16>
    %58 = vector.shape_cast %57 : vector<1x16x1792xbf16> to vector<16x1792xbf16>
    %c304 = arith.constant 304 : index
    %c0_62 = arith.constant 0 : index
    %59 = vector.load %arg6[%c304, %c0_62] : memref<432x1792xbf16, #tpu.memory_space<vmem>>, vector<16x1792xbf16>
    tpu.vector_store %arg6[%c304, %c0_62], %58 {strides = array<i32>} : memref<432x1792xbf16, #tpu.memory_space<vmem>>, vector<16x1792xbf16>,
    %c0_63 = arith.constant 0 : index
    %c0_64 = arith.constant 0 : index
    %c290 = arith.constant 290 : index
    %60 = vector.load %arg2[%c0_63, %c0_64, %c290] : memref<1x16x2176xbf16, #tpu.memory_space<vmem>>, vector<1x16x1792xbf16>
    %61 = vector.shape_cast %60 : vector<1x16x1792xbf16> to vector<16x1792xbf16>
    %c320 = arith.constant 320 : index
    %c0_65 = arith.constant 0 : index
    %62 = vector.load %arg6[%c320, %c0_65] : memref<432x1792xbf16, #tpu.memory_space<vmem>>, vector<16x1792xbf16>
    tpu.vector_store %arg6[%c320, %c0_65], %61 {strides = array<i32>} : memref<432x1792xbf16, #tpu.memory_space<vmem>>, vector<16x1792xbf16>,
    %c0_66 = arith.constant 0 : index
    %c0_67 = arith.constant 0 : index
    %c300 = arith.constant 300 : index
    %63 = vector.load %arg2[%c0_66, %c0_67, %c300] : memref<1x16x2176xbf16, #tpu.memory_space<vmem>>, vector<1x16x1792xbf16>
    %64 = vector.shape_cast %63 : vector<1x16x1792xbf16> to vector<16x1792xbf16>
    %c336 = arith.constant 336 : index
    %c0_68 = arith.constant 0 : index
    %65 = vector.load %arg6[%c336, %c0_68] : memref<432x1792xbf16, #tpu.memory_space<vmem>>, vector<16x1792xbf16>
    tpu.vector_store %arg6[%c336, %c0_68], %64 {strides = array<i32>} : memref<432x1792xbf16, #tpu.memory_space<vmem>>, vector<16x1792xbf16>,
    %c0_69 = arith.constant 0 : index
    %c0_70 = arith.constant 0 : index
    %c301 = arith.constant 301 : index
    %66 = vector.load %arg2[%c0_69, %c0_70, %c301] : memref<1x16x2176xbf16, #tpu.memory_space<vmem>>, vector<1x16x1792xbf16>
    %67 = vector.shape_cast %66 : vector<1x16x1792xbf16> to vector<16x1792xbf16>
    %c352 = arith.constant 352 : index
    %c0_71 = arith.constant 0 : index
    %68 = vector.load %arg6[%c352, %c0_71] : memref<432x1792xbf16, #tpu.memory_space<vmem>>, vector<16x1792xbf16>
    tpu.vector_store %arg6[%c352, %c0_71], %67 {strides = array<i32>} : memref<432x1792xbf16, #tpu.memory_space<vmem>>, vector<16x1792xbf16>,
    %c0_72 = arith.constant 0 : index
    %c0_73 = arith.constant 0 : index
    %c302 = arith.constant 302 : index
    %69 = vector.load %arg2[%c0_72, %c0_73, %c302] : memref<1x16x2176xbf16, #tpu.memory_space<vmem>>, vector<1x16x1792xbf16>
    %70 = vector.shape_cast %69 : vector<1x16x1792xbf16> to vector<16x1792xbf16>
    %c368 = arith.constant 368 : index
    %c0_74 = arith.constant 0 : index
    %71 = vector.load %arg6[%c368, %c0_74] : memref<432x1792xbf16, #tpu.memory_space<vmem>>, vector<16x1792xbf16>
    tpu.vector_store %arg6[%c368, %c0_74], %70 {strides = array<i32>} : memref<432x1792xbf16, #tpu.memory_space<vmem>>, vector<16x1792xbf16>,
    %c0_75 = arith.constant 0 : index
    %c0_76 = arith.constant 0 : index
    %c312 = arith.constant 312 : index
    %72 = vector.load %arg2[%c0_75, %c0_76, %c312] : memref<1x16x2176xbf16, #tpu.memory_space<vmem>>, vector<1x16x1792xbf16>
    %73 = vector.shape_cast %72 : vector<1x16x1792xbf16> to vector<16x1792xbf16>
    %c384 = arith.constant 384 : index
    %c0_77 = arith.constant 0 : index
    %74 = vector.load %arg6[%c384, %c0_77] : memref<432x1792xbf16, #tpu.memory_space<vmem>>, vector<16x1792xbf16>
    tpu.vector_store %arg6[%c384, %c0_77], %73 {strides = array<i32>} : memref<432x1792xbf16, #tpu.memory_space<vmem>>, vector<16x1792xbf16>,
    %c0_78 = arith.constant 0 : index
    %c0_79 = arith.constant 0 : index
    %c313 = arith.constant 313 : index
    %75 = vector.load %arg2[%c0_78, %c0_79, %c313] : memref<1x16x2176xbf16, #tpu.memory_space<vmem>>, vector<1x16x1792xbf16>
    %76 = vector.shape_cast %75 : vector<1x16x1792xbf16> to vector<16x1792xbf16>
    %c400 = arith.constant 400 : index
    %c0_80 = arith.constant 0 : index
    %77 = vector.load %arg6[%c400, %c0_80] : memref<432x1792xbf16, #tpu.memory_space<vmem>>, vector<16x1792xbf16>
    tpu.vector_store %arg6[%c400, %c0_80], %76 {strides = array<i32>} : memref<432x1792xbf16, #tpu.memory_space<vmem>>, vector<16x1792xbf16>,
    %c0_81 = arith.constant 0 : index
    %c0_82 = arith.constant 0 : index
    %c314 = arith.constant 314 : index
    %78 = vector.load %arg2[%c0_81, %c0_82, %c314] : memref<1x16x2176xbf16, #tpu.memory_space<vmem>>, vector<1x16x1792xbf16>
    %79 = vector.shape_cast %78 : vector<1x16x1792xbf16> to vector<16x1792xbf16>
    %c416 = arith.constant 416 : index
    %c0_83 = arith.constant 0 : index
    %80 = vector.load %arg6[%c416, %c0_83] : memref<432x1792xbf16, #tpu.memory_space<vmem>>, vector<16x1792xbf16>
    tpu.vector_store %arg6[%c416, %c0_83], %79 {strides = array<i32>} : memref<432x1792xbf16, #tpu.memory_space<vmem>>, vector<16x1792xbf16>,
    %c0_84 = arith.constant 0 : index
    %c0_85 = arith.constant 0 : index
    %81 = vector.load %arg3[%c0_84, %c0_85] : memref<8x432xbf16, #tpu.memory_space<vmem>>, vector<8x432xbf16>
    %c0_86 = arith.constant 0 : index
    %c0_87 = arith.constant 0 : index
    %82 = vector.load %arg6[%c0_86, %c0_87] : memref<432x1792xbf16, #tpu.memory_space<vmem>>, vector<432x1792xbf16>
    %cst = arith.constant dense<0.000000e+00> : vector<8x1792xf32>
    %83 = tpu.matmul %81, %82, %cst {dimension_numbers = #tpu.dot_dimension_numbers<[1], [0], [0], [1], [0, 0, 1, 1], [], []>} : vector<8x432xbf16>, vector<432x1792xbf16>, vector<8x1792xf32> -> vector<8x1792xf32>
    %c0_88 = arith.constant 0 : index
    %c0_89 = arith.constant 0 : index
    %84 = vector.load %arg4[%c0_88, %c0_89] : memref<8x1xf32, #tpu.memory_space<vmem>>, vector<8x1xf32>
    %85 = vector.broadcast %84 : vector<8x1xf32> to vector<8x1792xf32>
    %86 = arith.addf %83, %85 : vector<8x1792xf32>
    %c0_90 = arith.constant 0 : index
    %c0_91 = arith.constant 0 : index
    %c0_92 = arith.constant 0 : index
    %87 = vector.load %arg5[%c0_90, %c0_91, %c0_92] : memref<1x8x1792xf32, #tpu.memory_space<vmem>>, vector<1x8x1792xf32>
    %88 = vector.shape_cast %87 : vector<1x8x1792xf32> to vector<8x1792xf32>
    %89 = vector.shape_cast %86 : vector<8x1792xf32> to vector<1x8x1792xf32>
    tpu.vector_store %arg5[%c0_90, %c0_91, %c0_92], %89 {strides = array<i32>} : memref<1x8x1792xf32, #tpu.memory_space<vmem>>, vector<1x8x1792xf32>,
    return
  }
  func.func @transform_0(%arg0: i32, %arg1: i32) -> (i32, i32, i32) {
    %c0_i32 = arith.constant 0 : i32
    %c0_i32_0 = arith.constant 0 : i32
    %c0_i32_1 = arith.constant 0 : i32
    return %arg0, %c0_i32, %c0_i32_0 : i32, i32, i32
  }
  func.func @transform_1(%arg0: i32, %arg1: i32) -> (i32, i32) {
    %c0_i32 = arith.constant 0 : i32
    %c0_i32_0 = arith.constant 0 : i32
    %c0_i32_1 = arith.constant 0 : i32
    return %c0_i32, %c0_i32_0 : i32, i32
  }
  func.func @transform_2(%arg0: i32, %arg1: i32) -> (i32, i32) {
    %c0_i32 = arith.constant 0 : i32
    %c0_i32_0 = arith.constant 0 : i32
    %c0_i32_1 = arith.constant 0 : i32
    return %c0_i32, %c0_i32_0 : i32, i32
  }
  func.func @transform_3(%arg0: i32, %arg1: i32) -> (i32, i32, i32) {
    %c0_i32 = arith.constant 0 : i32
    %c0_i32_0 = arith.constant 0 : i32
    return %arg0, %c0_i32, %arg1 : i32, i32, i32
  }
}

</mosaic_0001>

<bundles_post_ra>
// kernel: coord_conv_transpose3d.1
= control target key start
LH: loop header
LB: loop body
LE: loop exit
PB: predicated region body
PF: predicated region fallthrough
CT: control target
= control target key end

     0   :  { %s5966_s12 = smov 0   ;;  %s5968_s13 = smov 0   ;;  %s7893_s0 = inlined_call_operand.vmem [shape: bf16[2,16,2176], index: 0, kind: input, shape index: {}]   ;;  %s7894_s1 = inlined_call_operand.vmem [shape: bf16[8,432], index: 1, kind: input, shape index: {}]   ;;  %s7895_s2 = inlined_call_operand.vmem [shape: f32[8,1], index: 2, kind: input, shape index: {}]   ;;  %s7896_s3 = inlined_call_operand.vmem [shape: f32[2,8,1792], index: 3, kind: output, shape index: {}]  }
   0x1   :  { %s5970_s14 = smov 0  }
   0x2 LB: > { %s25_s15 = sadd.s32 1, %s5913_s13  ;;  %p5269_p0 = scmp.ge.s32.totalorder %s5917_s14, 1  ;;  %s5917_s14 = sphi %s5970_s14, %s13_s14   ;;  %s5913_s13 = sphi %s5968_s13, %s8206_s13   ;;  %s5909_s12 = sphi %s5966_s12, %s8205_s12  }
   0x3   : > { %p27_p1 = scmp.ge.s32.totalorder %s25_s15, 2  ;;  %p151_p2 = scmp.lt.s32.totalorder %s5917_s14, 3 }
   0x5   : > { %s8208_s15 = smov (%p27_p1, %s25_s15), 0  ;;  %p152_p3 = pnand %p5269_p0, %p151_p2 }
   0x7   : > { %155 = sbr.rel (%p152_p3) target bundleno = 1135 (0x46f), region = 32 }
   0xe   : > { %p179_p4 = scmp.lt.s32.totalorder %s5909_s12, 1  ;;  %s5919_s20 = smov 127   ;;  %vm400_vm0 = vcmask 1039360   ;;  %vm550_vm1 = vcmask 1031168   ;;  %vm700_vm2 = vcmask 949248   ;;  %vm850_vm3 = vcmask 941056  }
   0xf   : > { %s5920_s21 = smov 126   ;;  %s5921_s22 = smov 116   ;;  %vm1000_vm4 = vcmask 932864   ;;  %vm7946_vm5 = vcmask 392192   ;;  %vm7942_vm6 = vcmask 711680   ;;  %vm1150_vm7 = vcmask 850944  }
  0x10   : > { %s8210_s12 = smov (!%p179_p4, %s5909_s12), 1  ;;  %s5922_s23 = smov 115   ;;  %vm7938_vm8 = vcmask 703488   ;;  %vm1300_vm9 = vcmask 842752   ;;  %vm7934_vm10 = vcmask 785408   ;;  %vm1450_vm11 = vcmask 834560  }
  0x11   : > { %s5729_s16 = smul.u32 136, %s8210_s12  ;;  %s7903_s24 = smov 114   ;;  %vm7930_vm12 = vcmask 777216   ;;  %vm1600_vm13 = vcmask 916480   ;;  %vm7928_vm14 = vcmask 769024   ;;  %vm1750_vm15 = vcmask 908288  }
  0x12   : > { %s5924_s25 = smov 87   ;;  %s5925_s26 = smov 104  }
  0x13   : > { %s5990_s19 = scalar_lea.vmem %s7893_s0, %s5729_s16  ;;  %s5926_s27 = smov 86  }
  0x14   : > { %v5993_v0 = vld [vmem:[%s5990_s19 + $0x8] ss:$68 sps:$4 sm:$0xff]   ;;  %v6001_v2 = vld [vmem:[%s5990_s19] ss:$68 sps:$4 sm:$0xff]   ;;  %v295_v4 = vld [vmem:[%s5990_s19 + $0x10] sm:$0xff]  ;;  %s5927_s28 = smov 103  }
  0x15   : > { %v5996_v1 = vld [vmem:[%s5990_s19 + $0xc] ss:$68 sps:$4 sm:$0xff]   ;;  %374 = vrot.lane.b32.xlu1 %v5993_v0, %s5919_s20  ;;  %v6004_v3 = vld [vmem:[%s5990_s19 + $0x4] ss:$68 sps:$4 sm:$0xff]   ;;  %v303_v5 = vld [vmem:[%s5990_s19 + $0x54] sm:$0xff]  ;;  %s5928_s29 = smov 96  }
  0x16   : > { %370 = vrot.lane.b32.xlu0 %v6001_v2, %s5919_s20  ;;  %4596 = vmatprep.subr.bf16.mxu1 %v6004_v3  ;;  %v6014_v6 = vcombine.high %v295_v4, %v303_v5  ;;  %v6018_v7 = vcombine.low %v295_v4, %v303_v5  ;;  %v6023_v8 = vld [vmem:[%s5990_s19 + $0x1c] ss:$68 sps:$4 sm:$0xff]   ;;  %v6031_v10 = vld [vmem:[%s5990_s19 + $0x24] ss:$68 sps:$4 sm:$0xff]   ;;  %v5797_v12 = vld [vmem:[%s5990_s19 + $0x2c] ss:$68 sps:$4 sm:$0xff]  }
  0x17   : > { %4597 = vmatpush1.bf16.msra.mxu1 %v6001_v2  ;;  %v6026_v9 = vld [vmem:[%s5990_s19 + $0x18] ss:$68 sps:$4 sm:$0xff]   ;;  %v6036_v11 = vld [vmem:[%s5990_s19 + $0x20] ss:$68 sps:$4 sm:$0xff]   ;;  %v6044_v13 = vld [vmem:[%s5990_s19 + $0x28] ss:$68 sps:$4 sm:$0xff]  }
  0x18   : > { %v5800_v14 = vld [vmem:[%s5990_s19 + $0x34] ss:$68 sps:$4 sm:$0xff]   ;;  %v6135_v34 = vld [vmem:[%s5990_s19 + $0x8] ss:$68 sps:$4 sm:$0xff]   ;;  %s5929_s30 = smov 102   ;;  %s5930_s4 = smov 95  }
  0x19   : > { %376 = vrot.lane.b32.xlu1 %v5996_v1, %s5919_s20  ;;  %v5802_v15 = vld [vmem:[%s5990_s19 + $0x30] ss:$68 sps:$4 sm:$0xff]   ;;  %v5803_v16 = vld [vmem:[%s5990_s19 + $0x38] ss:$68 sps:$4 sm:$0xff]   ;;  %v6152_v39 = vld [vmem:[%s5990_s19 + $0x4] ss:$68 sps:$4 sm:$0xff]  }
  0x1a   : > { %372 = vrot.lane.b32.xlu0 %v6004_v3, %s5919_s20  ;;  %v5804_v17 = vld [vmem:[%s5990_s19 + $0x38] ss:$68 sps:$4 sm:$0xff]   ;;  %v6142_v36 = vld [vmem:[%s5990_s19 + $0xc] sm:$0xff]  ;;  %s5931_s5 = smov 112   ;;  %s5932_s6 = smov 94  }
  0x1b   : > { %v5805_v18 = vld [vmem:[%s5990_s19 + $0x38] ss:$68 sps:$4 sm:$0xff]   ;;  %v6145_v37 = vld [vmem:[%s5990_s19 + $0x50] sm:$0xff]  ;;  %s5933_s7 = smov 111   ;;  %s5934_s8 = smov 84  }
  0x1c   : > { %v5806_v19 = vld [vmem:[%s5990_s19 + $0x38] ss:$68 sps:$4 sm:$0xff]   ;;  %v6158_v41 = vcombine.low %v6142_v36, %v6145_v37  ;;  %s5935_s9 = smov 110   ;;  %s5936_s10 = smov 83  }
  0x1d   : > { %380 = vrot.lane.b32.xlu1 %v6014_v6, %s5919_s20  ;;  %s5937_s11 = smov 100   ;;  %s5938_s16 = smov 82  }
  0x1e   : > { %378 = vrot.lane.b32.xlu0 %v6018_v7, %s5919_s20  ;;  %s5939_s17 = smov 99   ;;  %s7905_s18 = smov 72  }
  0x21   : > { %384 = vrot.lane.b32.xlu1 %v6023_v8, %s5919_s20 }
  0x22   : > { %382 = vrot.lane.b32.xlu0 %v6026_v9, %s5919_s20 }
  0x25   : > { %388 = vrot.lane.b32.xlu1 %v6031_v10, %s5919_s20 }
  0x26   : > { %386 = vrot.lane.b32.xlu0 %v6036_v11, %s5919_s20 }
  0x29   : > { %392 = vrot.lane.b32.xlu1 %v5797_v12, %s5919_s20 }
  0x2a   : > { %390 = vrot.lane.b32.xlu0 %v6044_v13, %s5919_s20 }
  0x2d   : > { %396 = vrot.lane.b32.xlu1 %v5800_v14, %s5919_s20 }
  0x2e   : > { %394 = vrot.lane.b32.xlu0 %v5802_v15, %s5919_s20 }
  0x31   : > { %520 = vrot.lane.b32.xlu1 %v6001_v2, %s5920_s21 }
  0x32   : > { %398 = vrot.lane.b32.xlu0 %v5803_v16, %s5919_s20  ;;  %s5941_s20 = smov 98  }
  0x35   : > { %524 = vrot.lane.b32.xlu1 %v5993_v0, %s5920_s21 }
  0x36   : > { %522 = vrot.lane.b32.xlu0 %v6004_v3, %s5920_s21 }
  0x39   : > { %528 = vrot.lane.b32.xlu1 %v6018_v7, %s5920_s21 }
  0x3a   : > { %526 = vrot.lane.b32.xlu0 %v5996_v1, %s5920_s21 }
  0x3d   : > { %532 = vrot.lane.b32.xlu1 %v6026_v9, %s5920_s21 }
  0x3e   : > { %530 = vrot.lane.b32.xlu0 %v6014_v6, %s5920_s21 }
  0x41   : > { %536 = vrot.lane.b32.xlu1 %v6036_v11, %s5920_s21 }
  0x42   : > { %534 = vrot.lane.b32.xlu0 %v6023_v8, %s5920_s21 }
  0x45   : > { %540 = vrot.lane.b32.xlu1 %v6044_v13, %s5920_s21 }
  0x46   : > { %538 = vrot.lane.b32.xlu0 %v6031_v10, %s5920_s21 }
  0x49   : > { %544 = vrot.lane.b32.xlu1 %v5802_v15, %s5920_s21 }
  0x4a   : > { %542 = vrot.lane.b32.xlu0 %v5797_v12, %s5920_s21 }
  0x4d   : > { %548 = vrot.lane.b32.xlu1 %v5804_v17, %s5920_s21 }
  0x4e   : > { %546 = vrot.lane.b32.xlu0 %v5800_v14, %s5920_s21  ;;  %s7910_s21 = smov 71  }
  0x51   : > { %672 = vrot.lane.b32.xlu1 %v6004_v3, %s5921_s22 }
  0x52   : > { %670 = vrot.lane.b32.xlu0 %v6001_v2, %s5921_s22 }
  0x55   : > { %676 = vrot.lane.b32.xlu1 %v5996_v1, %s5921_s22 }
  0x56   : > { %674 = vrot.lane.b32.xlu0 %v5993_v0, %s5921_s22 }
  0x59   : > { %680 = vrot.lane.b32.xlu1 %v6014_v6, %s5921_s22 }
  0x5a   : > { %678 = vrot.lane.b32.xlu0 %v6018_v7, %s5921_s22 }
  0x5d   : > { %684 = vrot.lane.b32.xlu1 %v6023_v8, %s5921_s22 }
  0x5e   : > { %682 = vrot.lane.b32.xlu0 %v6026_v9, %s5921_s22 }
  0x61   : > { %688 = vrot.lane.b32.xlu1 %v6031_v10, %s5921_s22 }
  0x62   : > { %686 = vrot.lane.b32.xlu0 %v6036_v11, %s5921_s22 }
  0x65   : > { %692 = vrot.lane.b32.xlu1 %v5797_v12, %s5921_s22 }
  0x66   : > { %690 = vrot.lane.b32.xlu0 %v6044_v13, %s5921_s22 }
  0x69   : > { %696 = vrot.lane.b32.xlu1 %v5800_v14, %s5921_s22 }
  0x6a   : > { %694 = vrot.lane.b32.xlu0 %v5802_v15, %s5921_s22 }
  0x6d   : > { %820 = vrot.lane.b32.xlu1 %v6001_v2, %s5922_s23 }
  0x6e   : > { %698 = vrot.lane.b32.xlu0 %v5805_v18, %s5921_s22  ;;  %s7998_s22 = smov 71  }
  0x71   : > { %824 = vrot.lane.b32.xlu1 %v5993_v0, %s5922_s23 }
  0x72   : > { %822 = vrot.lane.b32.xlu0 %v6004_v3, %s5922_s23 }
  0x75   : > { %828 = vrot.lane.b32.xlu1 %v6018_v7, %s5922_s23 }
  0x76   : > { %826 = vrot.lane.b32.xlu0 %v5996_v1, %s5922_s23 }
  0x79   : > { %832 = vrot.lane.b32.xlu1 %v6026_v9, %s5922_s23 }
  0x7a   : > { %830 = vrot.lane.b32.xlu0 %v6014_v6, %s5922_s23 }
  0x7d   : > { %836 = vrot.lane.b32.xlu1 %v6036_v11, %s5922_s23 }
  0x7e   : > { %834 = vrot.lane.b32.xlu0 %v6023_v8, %s5922_s23 }
  0x81   : > { %840 = vrot.lane.b32.xlu1 %v6044_v13, %s5922_s23 }
  0x82   : > { %838 = vrot.lane.b32.xlu0 %v6031_v10, %s5922_s23 }
  0x85   : > { %844 = vrot.lane.b32.xlu1 %v5802_v15, %s5922_s23 }
  0x86   : > { %842 = vrot.lane.b32.xlu0 %v5797_v12, %s5922_s23 }
  0x87   : > { %v6093_v20 = vpop.permute.xlu1 %374 }
  0x88   : > { %v371_v21 = vpop.permute.xlu0 %370 }
  0x89   : > { %848 = vrot.lane.b32.xlu1 %v5806_v19, %s5922_s23 }
  0x8a   : > { %846 = vrot.lane.b32.xlu0 %v5800_v14, %s5922_s23  ;;  %s8070_s23 = smov 114  }
  0x8b   : > { %v6095_v22 = vpop.permute.xlu1 %376 }
  0x8c   : > { %v373_v23 = vpop.permute.xlu0 %372 }
  0x8d   : > { %972 = vrot.lane.b32.xlu1 %v6004_v3, %s7903_s24  ;;  %v402_v24 = vsel %vm400_vm0, %v373_v23, %v6093_v20  ;;  %v401_v25 = vsel %vm400_vm0, %v371_v21, %v373_v23 }
  0x8e   : > { %970 = vrot.lane.b32.xlu0 %v6001_v2, %s7903_s24  ;;  %4598 = vmatprep.subr.bf16.mxu1 %v402_v24 }
  0x8f   : > { %v6104_v26 = vpop.permute.xlu1 %380  ;;  %4599 = vmatpush1.bf16.msra.mxu1 %v401_v25 }
  0x90   : > { %v6106_v27 = vpop.permute.xlu0 %378 }
  0x91   : > { %976 = vrot.lane.b32.xlu1 %v5996_v1, %s7903_s24 }
  0x92   : > { %974 = vrot.lane.b32.xlu0 %v5993_v0, %s7903_s24 }
  0x93   : > { %v6112_v28 = vpop.permute.xlu1 %384 }
  0x94   : > { %7956 = vst [vmem:[#allocation3_spill] sm:$0xff] %v6112_v28  ;;  %v6114_v29 = vpop.permute.xlu0 %382 }
  0x95   : > { %980 = vrot.lane.b32.xlu1 %v6014_v6, %s7903_s24 }
  0x96   : > { %978 = vrot.lane.b32.xlu0 %v6018_v7, %s7903_s24 }
  0x97   : > { %v6120_v30 = vpop.permute.xlu1 %388 }
  0x98   : > { %7957 = vst [vmem:[#allocation4_spill] sm:$0xff] %v6120_v30  ;;  %v6122_v31 = vpop.permute.xlu0 %386 }
  0x99   : > { %7958 = vst [vmem:[#allocation5_spill] sm:$0xff] %v6122_v31  ;;  %984 = vrot.lane.b32.xlu1 %v6023_v8, %s7903_s24 }
  0x9a   : > { %982 = vrot.lane.b32.xlu0 %v6026_v9, %s7903_s24 }
  0x9b   : > { %v6128_v32 = vpop.permute.xlu1 %392 }
  0x9c   : > { %7959 = vst [vmem:[#allocation6_spill] sm:$0xff] %v6128_v32  ;;  %v6130_v33 = vpop.permute.xlu0 %390 }
  0x9d   : > { %7960 = vst [vmem:[#allocation7_spill] sm:$0xff] %v6130_v33  ;;  %988 = vrot.lane.b32.xlu1 %v6031_v10, %s7903_s24 }
  0x9e   : > { %986 = vrot.lane.b32.xlu0 %v6036_v11, %s7903_s24 }
  0x9f   : > { %v6139_v35 = vpop.permute.xlu1 %396 }
  0xa0   : > { %7961 = vst [vmem:[#allocation8_spill] sm:$0xff] %v6139_v35  ;;  %v6147_v38 = vpop.permute.xlu0 %394 }
  0xa1   : > { %7962 = vst [vmem:[#allocation9_spill] sm:$0xff] %v6147_v38  ;;  %2622 = vrot.lane.b32.xlu1 %v6135_v34, %s5924_s25 }
  0xa2   : > { %990 = vrot.lane.b32.xlu0 %v6044_v13, %s7903_s24  ;;  %s5944_s24 = smov 70  }
  0xa3   : > { %v521_v40 = vpop.permute.xlu1 %520 }
  0xa4   : > { %v6160_v42 = vpop.permute.xlu0 %398 }
  0xa5   : > { %7963 = vst [vmem:[#allocation10_spill] sm:$0xff] %v6160_v42  ;;  %2620 = vrot.lane.b32.xlu1 %v6152_v39, %s5924_s25 }
  0xa6   : > { %2624 = vrot.lane.b32.xlu0 %v6158_v41, %s5924_s25 }
  0xa7   : > { %v6166_v43 = vpop.permute.xlu1 %524 }
  0xa8   : > { %v523_v44 = vpop.permute.xlu0 %522 }
  0xa9   : > { %1124 = vrot.lane.b32.xlu1 %v5993_v0, %s5925_s26  ;;  %v552_v45 = vsel %vm550_vm1, %v523_v44, %v6166_v43  ;;  %v551_v46 = vsel %vm550_vm1, %v521_v40, %v523_v44 }
  0xaa   : > { %1122 = vrot.lane.b32.xlu0 %v6004_v3, %s5925_s26  ;;  %4600 = vmatprep.subr.bf16.mxu1 %v552_v45 }
  0xab   : > { %v6175_v47 = vpop.permute.xlu1 %528  ;;  %4601 = vmatpush1.bf16.msra.mxu1 %v551_v46 }
  0xac   : > { %v6177_v48 = vpop.permute.xlu0 %526 }
  0xad   : > { %2774 = vrot.lane.b32.xlu1 %v6158_v41, %s5926_s27 }
  0xae   : > { %2772 = vrot.lane.b32.xlu0 %v6135_v34, %s5926_s27 }
  0xaf   : > { %v6183_v49 = vpop.permute.xlu1 %532 }
  0xb0   : > { %v6185_v50 = vpop.permute.xlu0 %530 }
  0xb1   : > { %2770 = vrot.lane.b32.xlu1 %v6152_v39, %s5926_s27 }
  0xb2   : > { %1120 = vrot.lane.b32.xlu0 %v6001_v2, %s5925_s26 }
  0xb3   : > { %v6191_v51 = vpop.permute.xlu1 %536 }
  0xb4   : > { %7964 = vst [vmem:[#allocation11_spill] sm:$0xff] %v6191_v51  ;;  %v6193_v52 = vpop.permute.xlu0 %534 }
  0xb5   : > { %7965 = vst [vmem:[#allocation12_spill] sm:$0xff] %v6193_v52  ;;  %1274 = vrot.lane.b32.xlu1 %v5993_v0, %s5927_s28 }
  0xb6   : > { %1272 = vrot.lane.b32.xlu0 %v6004_v3, %s5927_s28 }
  0xb7   : > { %v6199_v53 = vpop.permute.xlu1 %540 }
  0xb8   : > { %7966 = vst [vmem:[#allocation13_spill] sm:$0xff] %v6199_v53  ;;  %v6201_v54 = vpop.permute.xlu0 %538 }
  0xb9   : > { %7967 = vst [vmem:[#allocation14_spill] sm:$0xff] %v6201_v54  ;;  %2924 = vrot.lane.b32.xlu1 %v6018_v7, %s5928_s29 }
  0xba   : > { %2922 = vrot.lane.b32.xlu0 %v5996_v1, %s5928_s29 }
  0xbb   : > { %v6207_v55 = vpop.permute.xlu1 %544 }
  0xbc   : > { %7968 = vst [vmem:[#allocation15_spill] sm:$0xff] %v6207_v55  ;;  %v6209_v56 = vpop.permute.xlu0 %542 }
  0xbd   : > { %7969 = vst [vmem:[#allocation16_spill] sm:$0xff] %v6209_v56  ;;  %2920 = vrot.lane.b32.xlu1 %v5993_v0, %s5928_s29 }
  0xbe   : > { %1270 = vrot.lane.b32.xlu0 %v6001_v2, %s5927_s28 }
  0xbf   : > { %v6215_v57 = vpop.permute.xlu1 %548 }
  0xc0   : > { %7970 = vst [vmem:[#allocation17_spill] sm:$0xff] %v6215_v57  ;;  %v6217_v58 = vpop.permute.xlu0 %546 }
  0xc1   : > { %7971 = vst [vmem:[#allocation18_spill] sm:$0xff] %v6217_v58  ;;  %1424 = vrot.lane.b32.xlu1 %v5993_v0, %s5929_s30  ;;  %v6397_v58 = vld [vmem:[%s7894_s1 + $0x8] sm:$0xff] }
  0xc2   : > { %1422 = vrot.lane.b32.xlu0 %v6004_v3, %s5929_s30  ;;  %v6405_v56 = vcombine.high %v6397_v58, %v6397_v58 }
  0xc3   : > { %v673_v59 = vpop.permute.xlu1 %672 }
  0xc4   : > { %v671_v60 = vpop.permute.xlu0 %670  ;;  %5680 = vmatprep.mubr.msk.bf16.mxu0 %vm7946_vm5, %v6405_v56  ;;  %vm7953_vm5 = vcmask 719872  }
  0xc5   : > { %3074 = vrot.lane.b32.xlu1 %v6018_v7, %s5930_s4  ;;  %v701_v3 = vsel %vm700_vm2, %v671_v60, %v673_v59 }
  0xc6   : > { %3072 = vrot.lane.b32.xlu0 %v5996_v1, %s5930_s4 }
  0xc7   : > { %v6227_v61 = vpop.permute.xlu1 %676 }
  0xc8   : > { %v6229_v62 = vpop.permute.xlu0 %674 }
  0xc9   : > { %3070 = vrot.lane.b32.xlu1 %v5993_v0, %s5930_s4  ;;  %v702_v63 = vsel %vm700_vm2, %v673_v59, %v6229_v62 }
  0xca   : > { %1420 = vrot.lane.b32.xlu0 %v6001_v2, %s5929_s30  ;;  %4602 = vmatprep.subr.bf16.mxu1 %v702_v63 }
  0xcb   : > { %v6238_v4 = vpop.permute.xlu1 %680  ;;  %4603 = vmatpush1.bf16.msra.mxu1 %v701_v3 }
  0xcc   : > { %v6240_v5 = vpop.permute.xlu0 %678 }
  0xcd   : > { %1574 = vrot.lane.b32.xlu1 %v6158_v41, %s5931_s5 }
  0xce   : > { %1572 = vrot.lane.b32.xlu0 %v6135_v34, %s5931_s5 }
  0xcf   : > { %v6246_v8 = vpop.permute.xlu1 %684 }
  0xd0   : > { %7972 = vst [vmem:[#allocation19_spill] sm:$0xff] %v6246_v8  ;;  %v6248_v9 = vpop.permute.xlu0 %682 }
  0xd1   : > { %3224 = vrot.lane.b32.xlu1 %v6018_v7, %s5932_s6 }
  0xd2   : > { %3222 = vrot.lane.b32.xlu0 %v5996_v1, %s5932_s6 }
  0xd3   : > { %v6254_v2 = vpop.permute.xlu1 %688 }
  0xd4   : > { %7973 = vst [vmem:[#allocation20_spill] sm:$0xff] %v6254_v2  ;;  %v6256_v10 = vpop.permute.xlu0 %686 }
  0xd5   : > { %7974 = vst [vmem:[#allocation21_spill] sm:$0xff] %v6256_v10  ;;  %3220 = vrot.lane.b32.xlu1 %v5993_v0, %s5932_s6 }
  0xd6   : > { %1570 = vrot.lane.b32.xlu0 %v6152_v39, %s5931_s5 }
  0xd7   : > { %v6262_v11 = vpop.permute.xlu1 %692 }
  0xd8   : > { %7975 = vst [vmem:[#allocation22_spill] sm:$0xff] %v6262_v11  ;;  %v6264_v12 = vpop.permute.xlu0 %690 }
  0xd9   : > { %7976 = vst [vmem:[#allocation23_spill] sm:$0xff] %v6264_v12  ;;  %1724 = vrot.lane.b32.xlu1 %v6158_v41, %s5933_s7 }
  0xda   : > { %1722 = vrot.lane.b32.xlu0 %v6135_v34, %s5933_s7 }
  0xdb   : > { %v6270_v13 = vpop.permute.xlu1 %696 }
  0xdc   : > { %7977 = vst [vmem:[#allocation24_spill] sm:$0xff] %v6270_v13  ;;  %v6272_v14 = vpop.permute.xlu0 %694 }
  0xdd   : > { %7978 = vst [vmem:[#allocation25_spill] sm:$0xff] %v6272_v14  ;;  %3374 = vrot.lane.b32.xlu1 %v6018_v7, %s5934_s8  ;;  %v6392_v14 = vld [vmem:[%s7894_s1] sm:$0xff] }
  0xde   : > { %3372 = vrot.lane.b32.xlu0 %v5996_v1, %s5934_s8  ;;  %v6401_v57 = vcombine.high %v6392_v14, %v6392_v14 }
  0xdf   : > { %v821_v15 = vpop.permute.xlu1 %820 }
  0xe0   : > { %v6278_v16 = vpop.permute.xlu0 %698  ;;  %4628 = vmatprep.mubr.bf16.mxu1 %v6401_v57 }
  0xe1   : > { %7979 = vst [vmem:[#allocation26_spill] sm:$0xff] %v6278_v16  ;;  %3370 = vrot.lane.b32.xlu1 %v5993_v0, %s5934_s8  ;;  %v6370_v16 = vld [vmem:[%s5990_s19 + $0xc] ss:$68 sps:$4 sm:$0xff]  }
  0xe2   : > { %1720 = vrot.lane.b32.xlu0 %v6152_v39, %s5933_s7 }
  0xe3   : > { %v6284_v17 = vpop.permute.xlu1 %824 }
  0xe4   : > { %v823_v18 = vpop.permute.xlu0 %822 }
  0xe5   : > { %1874 = vrot.lane.b32.xlu1 %v6158_v41, %s5935_s9  ;;  %v852_v19 = vsel %vm850_vm3, %v823_v18, %v6284_v17  ;;  %v851_v21 = vsel %vm850_vm3, %v821_v15, %v823_v18 }
  0xe6   : > { %1872 = vrot.lane.b32.xlu0 %v6135_v34, %s5935_s9  ;;  %4604 = vmatprep.subr.bf16.mxu1 %v852_v19 }
  0xe7   : > { %v6293_v23 = vpop.permute.xlu1 %828  ;;  %4605 = vmatpush1.bf16.msra.mxu1 %v851_v21 }
  0xe8   : > { %v6295_v24 = vpop.permute.xlu0 %826 }
  0xe9   : > { %3524 = vrot.lane.b32.xlu1 %v6018_v7, %s5936_s10 }
  0xea   : > { %3522 = vrot.lane.b32.xlu0 %v5996_v1, %s5936_s10 }
  0xeb   : > { %v6301_v25 = vpop.permute.xlu1 %832 }
  0xec   : > { %v6303_v40 = vpop.permute.xlu0 %830 }
  0xed   : > { %3520 = vrot.lane.b32.xlu1 %v5993_v0, %s5936_s10 }
  0xee   : > { %1870 = vrot.lane.b32.xlu0 %v6152_v39, %s5935_s9 }
  0xef   : > { %v6309_v44 = vpop.permute.xlu1 %836 }
  0xf0   : > { %7980 = vst [vmem:[#allocation27_spill] sm:$0xff] %v6309_v44  ;;  %v6311_v45 = vpop.permute.xlu0 %834 }
  0xf1   : > { %7981 = vst [vmem:[#allocation28_spill] sm:$0xff] %v6311_v45  ;;  %2024 = vrot.lane.b32.xlu1 %v6158_v41, %s5937_s11 }
  0xf2   : > { %2022 = vrot.lane.b32.xlu0 %v6135_v34, %s5937_s11 }
  0xf3   : > { %v6317_v46 = vpop.permute.xlu1 %840 }
  0xf4   : > { %7982 = vst [vmem:[#allocation29_spill] sm:$0xff] %v6317_v46  ;;  %v6319_v59 = vpop.permute.xlu0 %838 }
  0xf5   : > { %7983 = vst [vmem:[#allocation30_spill] sm:$0xff] %v6319_v59  ;;  %3674 = vrot.lane.b32.xlu1 %v6018_v7, %s5938_s16 }
  0xf6   : > { %3672 = vrot.lane.b32.xlu0 %v5996_v1, %s5938_s16 }
  0xf7   : > { %v6325_v60 = vpop.permute.xlu1 %844 }
  0xf8   : > { %7984 = vst [vmem:[#allocation31_spill] sm:$0xff] %v6325_v60  ;;  %v6327_v63 = vpop.permute.xlu0 %842 }
  0xf9   : > { %7985 = vst [vmem:[#allocation32_spill] sm:$0xff] %v6327_v63  ;;  %3670 = vrot.lane.b32.xlu1 %v5993_v0, %s5938_s16 }
  0xfa   : > { %2020 = vrot.lane.b32.xlu0 %v6152_v39, %s5937_s11 }
  0xfb   : > { %v6333_v3 = vpop.permute.xlu1 %848 }
  0xfc   : > { %7986 = vst [vmem:[#allocation33_spill] sm:$0xff] %v6333_v3  ;;  %v6335_v15 = vpop.permute.xlu0 %846 }
  0xfd   : > { %7987 = vst [vmem:[#allocation34_spill] sm:$0xff] %v6335_v15  ;;  %2174 = vrot.lane.b32.xlu1 %v6158_v41, %s5939_s17 }
  0xfe   : > { %2172 = vrot.lane.b32.xlu0 %v6135_v34, %s5939_s17 }
  0xff   : > { %v973_v18 = vpop.permute.xlu1 %972 }
 0x100   : > { %v971_v19 = vpop.permute.xlu0 %970 }
 0x101   : > { %3824 = vrot.lane.b32.xlu1 %v6018_v7, %s7905_s18  ;;  %v1001_v7 = vsel %vm1000_vm4, %v971_v19, %v973_v18 }
 0x102   : > { %3822 = vrot.lane.b32.xlu0 %v5996_v1, %s7905_s18 }
 0x103   : > { %v6345_v21 = vpop.permute.xlu1 %976 }
 0x104   : > { %v6347_v15 = vpop.permute.xlu0 %974 }
 0x105   : > { %3820 = vrot.lane.b32.xlu1 %v5993_v0, %s7905_s18  ;;  %v1002_v3 = vsel %vm1000_vm4, %v973_v18, %v6347_v15  ;;  %v6363_v0 = vld [vmem:[%s5990_s19 + $0x10] ss:$68 sps:$4 sm:$0xff]   ;;  %v6377_v18 = vld [vmem:[%s5990_s19 + $0x8] ss:$68 sps:$4 sm:$0xff]   ;;  %s7997_s18 = smov 72  }
 0x106   : > { %2170 = vrot.lane.b32.xlu0 %v6152_v39, %s5939_s17  ;;  %4606 = vmatprep.subr.bf16.mxu1 %v1002_v3 }
 0x107   : > { %v6356_v63 = vpop.permute.xlu1 %980  ;;  %4607 = vmatpush1.bf16.msra.mxu1 %v1001_v7 }
 0x108   : > { %v6358_v60 = vpop.permute.xlu0 %978 }
 0x109   : > { %2324 = vrot.lane.b32.xlu1 %v6158_v41, %s5941_s20 }
 0x10a   : > { %2322 = vrot.lane.b32.xlu0 %v6135_v34, %s5941_s20 }
 0x10b   : > { %v6367_v13 = vpop.permute.xlu1 %984 }
 0x10c   : > { %7988 = vst [vmem:[#allocation35_spill] sm:$0xff] %v6367_v13  ;;  %v6372_v3 = vpop.permute.xlu0 %982  ;;  %v6445_v13 = vld [vmem:[%s5990_s19 + $0x14] ss:$68 sps:$4 sm:$0xff]  }
 0x10d   : > { %3974 = vrot.lane.b32.xlu1 %v6363_v0, %s7910_s21 }
 0x10e   : > { %3972 = vrot.lane.b32.xlu0 %v6370_v16, %s7910_s21 }
 0x10f   : > { %v6381_v19 = vpop.permute.xlu1 %988 }
 0x110   : > { %7989 = vst [vmem:[#allocation36_spill] sm:$0xff] %v6381_v19  ;;  %v6383_v7 = vpop.permute.xlu0 %986  ;;  %v6438_v19 = vld [vmem:[%s5990_s19 + $0x18] ss:$68 sps:$4 sm:$0xff]  }
 0x111   : > { %7990 = vst [vmem:[#allocation37_spill] sm:$0xff] %v6383_v7  ;;  %3970 = vrot.lane.b32.xlu1 %v6377_v18, %s7910_s21  ;;  %s5943_s21 = smov 88  }
 0x112   : > { %2320 = vrot.lane.b32.xlu0 %v6152_v39, %s5941_s20 }
 0x113   : > { %v2623_v11 = vpop.permute.xlu1 %2622 }
 0x114   : > { %v6407_v55 = vpop.permute.xlu0 %990 }
 0x115   : > { %7991 = vst [vmem:[#allocation38_spill] sm:$0xff] %v6407_v55  ;;  %2474 = vrot.lane.b32.xlu1 %v6158_v41, %s5943_s21 }
 0x116   : > { %2472 = vrot.lane.b32.xlu0 %v6135_v34, %s5943_s21 }
 0x117   : > { %v2621_v35 = vpop.permute.xlu1 %2620 }
 0x118   : > { %v6416_v42 = vpop.permute.xlu0 %2624  ;;  %v2651_v32 = vsel %vm7942_vm6, %v2621_v35, %v2623_v11 }
 0x119   : > { %4124 = vrot.lane.b32.xlu1 %v6363_v0, %s5944_s24  ;;  %v2652_v41 = vsel %vm7942_vm6, %v2623_v11, %v6416_v42  ;;  %vm7951_vm6 = vcmask 801792  }
 0x11a   : > { %4122 = vrot.lane.b32.xlu0 %v6370_v16, %s5944_s24  ;;  %4637 = vmatprep.subr.bf16.mxu0 %v2652_v41 }
 0x11b   : > { %v6425_v38 = vpop.permute.xlu1 %1124  ;;  %4638 = vmatpush1.bf16.msra.mxu0 %v2651_v32 }
 0x11c   : > { %v1123_v34 = vpop.permute.xlu0 %1122 }
 0x11d   : > { %4120 = vrot.lane.b32.xlu1 %v6377_v18, %s5944_s24  ;;  %v1152_v35 = vsel %vm1150_vm7, %v1123_v34, %v6425_v38 }
 0x11e   : > { %2470 = vrot.lane.b32.xlu0 %v6152_v39, %s5943_s21  ;;  %4608 = vmatprep.subr.bf16.mxu1 %v1152_v35 }
 0x11f   : > { %v6433_v11 = vpop.permute.xlu1 %2774 }
 0x120   : > { %v2773_v41 = vpop.permute.xlu0 %2772 }
 0x121   : > { %1128 = vrot.lane.b32.xlu1 %v6363_v0, %s5925_s26  ;;  %v2802_v32 = vsel %vm7938_vm8, %v2773_v41, %v6433_v11 }
 0x122   : > { %1126 = vrot.lane.b32.xlu0 %v5996_v1, %s5925_s26  ;;  %4639 = vmatprep.subr.bf16.mxu0 %v2802_v32 }
 0x123   : > { %v2771_v55 = vpop.permute.xlu1 %2770 }
 0x124   : > { %v2801_v39 = vsel %vm7938_vm8, %v2771_v55, %v2773_v41  ;;  %v1121_v35 = vpop.permute.xlu0 %1120  ;;  %vm7952_vm8 = vcmask 809984  }
 0x125   : > { %1132 = vrot.lane.b32.xlu1 %v6438_v19, %s5925_s26  ;;  %4640 = vmatpush1.bf16.msra.mxu0 %v2801_v39  ;;  %v1151_v7 = vsel %vm1150_vm7, %v1121_v35, %v1123_v34 }
 0x126   : > { %1130 = vrot.lane.b32.xlu0 %v6445_v13, %s5925_s26  ;;  %4609 = vmatpush1.bf16.msra.mxu1 %v1151_v7 }
 0x127   : > { %v6453_v59 = vpop.permute.xlu1 %1274 }
 0x128   : > { %v1273_v32 = vpop.permute.xlu0 %1272 }
 0x129   : > { %1278 = vrot.lane.b32.xlu1 %v6363_v0, %s5927_s28  ;;  %v1302_v55 = vsel %vm1300_vm9, %v1273_v32, %v6453_v59 }
 0x12a   : > { %1276 = vrot.lane.b32.xlu0 %v5996_v1, %s5927_s28  ;;  %4610 = vmatprep.subr.bf16.mxu1 %v1302_v55 }
 0x12b   : > { %v6461_v41 = vpop.permute.xlu1 %2924 }
 0x12c   : > { %v2923_v34 = vpop.permute.xlu0 %2922 }
 0x12d   : > { %1282 = vrot.lane.b32.xlu1 %v6438_v19, %s5927_s28  ;;  %v2952_v7 = vsel %vm7934_vm10, %v2923_v34, %v6461_v41 }
 0x12e   : > { %1280 = vrot.lane.b32.xlu0 %v6445_v13, %s5927_s28  ;;  %4641 = vmatprep.subr.bf16.mxu0 %v2952_v7 }
 0x12f   : > { %v2921_v39 = vpop.permute.xlu1 %2920 }
 0x130   : > { %v2951_v35 = vsel %vm7934_vm10, %v2921_v39, %v2923_v34  ;;  %v1271_v46 = vpop.permute.xlu0 %1270  ;;  %v6480_v34 = vld [vmem:[%s5990_s19 + $0x14] ss:$68 sps:$4 sm:$0xff]   ;;  %v6495_v39 = vld [vmem:[%s5990_s19 + $0x1c] ss:$68 sps:$4 sm:$0xff]   ;;  %vm7954_vm10 = vcmask 818176  }
 0x131   : > { %1428 = vrot.lane.b32.xlu1 %v6363_v0, %s5929_s30  ;;  %4642 = vmatpush1.bf16.msra.mxu0 %v2951_v35  ;;  %v1301_v55 = vsel %vm1300_vm9, %v1271_v46, %v1273_v32  ;;  %v6486_v46 = vcombine.high %v6142_v36, %v6145_v37  ;;  %v6502_v37 = vld [vmem:[%s5990_s19 + $0x18] ss:$68 sps:$4 sm:$0xff]  }
 0x132   : > { %1426 = vrot.lane.b32.xlu0 %v5996_v1, %s5929_s30  ;;  %4611 = vmatpush1.bf16.msra.mxu1 %v1301_v55 }
 0x133   : > { %v6475_v45 = vpop.permute.xlu1 %1424 }
 0x134   : > { %v1423_v44 = vpop.permute.xlu0 %1422 }
 0x135   : > { %1432 = vrot.lane.b32.xlu1 %v6438_v19, %s5929_s30  ;;  %v1452_v7 = vsel %vm1450_vm11, %v1423_v44, %v6475_v45 }
 0x136   : > { %1430 = vrot.lane.b32.xlu0 %v6445_v13, %s5929_s30  ;;  %4612 = vmatprep.subr.bf16.mxu1 %v1452_v7 }
 0x137   : > { %v6490_v1 = vpop.permute.xlu1 %3074 }
 0x138   : > { %v3073_v32 = vpop.permute.xlu0 %3072 }
 0x139   : > { %1578 = vrot.lane.b32.xlu1 %v6480_v34, %s5931_s5  ;;  %v3102_v35 = vsel %vm7930_vm12, %v3073_v32, %v6490_v1 }
 0x13a   : > { %1576 = vrot.lane.b32.xlu0 %v6486_v46, %s5931_s5  ;;  %4643 = vmatprep.subr.bf16.mxu0 %v3102_v35 }
 0x13b   : > { %v3071_v36 = vpop.permute.xlu1 %3070 }
 0x13c   : > { %v3101_v55 = vsel %vm7930_vm12, %v3071_v36, %v3073_v32  ;;  %v1421_v7 = vpop.permute.xlu0 %1420  ;;  %vm7955_vm12 = vcmask 900096  }
 0x13d   : > { %1582 = vrot.lane.b32.xlu1 %v6495_v39, %s5931_s5  ;;  %4644 = vmatpush1.bf16.msra.mxu0 %v3101_v55  ;;  %v1451_v2 = vsel %vm1450_vm11, %v1421_v7, %v1423_v44 }
 0x13e   : > { %1580 = vrot.lane.b32.xlu0 %v6502_v37, %s5931_s5  ;;  %4613 = vmatpush1.bf16.msra.mxu1 %v1451_v2 }
 0x13f   : > { %v6510_v12 = vpop.permute.xlu1 %1574 }
 0x140   : > { %v1573_v35 = vpop.permute.xlu0 %1572 }
 0x141   : > { %1728 = vrot.lane.b32.xlu1 %v6480_v34, %s5933_s7  ;;  %v1602_v32 = vsel %vm1600_vm13, %v1573_v35, %v6510_v12 }
 0x142   : > { %1726 = vrot.lane.b32.xlu0 %v6486_v46, %s5933_s7  ;;  %4614 = vmatprep.subr.bf16.mxu1 %v1602_v32 }
 0x143   : > { %v6518_v36 = vpop.permute.xlu1 %3224 }
 0x144   : > { %v3223_v44 = vpop.permute.xlu0 %3222 }
 0x145   : > { %1732 = vrot.lane.b32.xlu1 %v6495_v39, %s5933_s7  ;;  %v3252_v2 = vsel %vm7928_vm14, %v3223_v44, %v6518_v36 }
 0x146   : > { %1730 = vrot.lane.b32.xlu0 %v6502_v37, %s5933_s7  ;;  %4645 = vmatprep.subr.bf16.mxu0 %v3252_v2 }
 0x147   : > { %v3221_v55 = vpop.permute.xlu1 %3220 }
 0x148   : > { %v3251_v7 = vsel %vm7928_vm14, %v3221_v55, %v3223_v44  ;;  %v1571_v8 = vpop.permute.xlu0 %1570  ;;  %vm7932_vm14 = vcmask 687104  }
 0x149   : > { %1878 = vrot.lane.b32.xlu1 %v6480_v34, %s5935_s9  ;;  %4646 = vmatpush1.bf16.msra.mxu0 %v3251_v7  ;;  %v1601_v32 = vsel %vm1600_vm13, %v1571_v8, %v1573_v35 }
 0x14a   : > { %1876 = vrot.lane.b32.xlu0 %v6486_v46, %s5935_s9  ;;  %4615 = vmatpush1.bf16.msra.mxu1 %v1601_v32 }
 0x14b   : > { %v6532_v10 = vpop.permute.xlu1 %1724 }
 0x14c   : > { %v1723_v54 = vpop.permute.xlu0 %1722 }
 0x14d   : > { %1882 = vrot.lane.b32.xlu1 %v6495_v39, %s5935_s9  ;;  %v1752_v44 = vsel %vm1750_vm15, %v1723_v54, %v6532_v10 }
 0x14e   : > { %1880 = vrot.lane.b32.xlu0 %v6502_v37, %s5935_s9  ;;  %4616 = vmatprep.subr.bf16.mxu1 %v1752_v44 }
 0x14f   : > { %v6540_v2 = vpop.permute.xlu1 %3374 }
 0x150   : > { %v3373_v8 = vpop.permute.xlu0 %3372 }
 0x151   : > { %2028 = vrot.lane.b32.xlu1 %v6480_v34, %s5937_s11  ;;  %v3402_v35 = vsel %vm7932_vm14, %v3373_v8, %v6540_v2 }
 0x152   : > { %2026 = vrot.lane.b32.xlu0 %v6486_v46, %s5937_s11  ;;  %4647 = vmatprep.subr.bf16.mxu0 %v3402_v35 }
 0x153   : > { %v3371_v55 = vpop.permute.xlu1 %3370 }
 0x154   : > { %v3401_v7 = vsel %vm7932_vm14, %v3371_v55, %v3373_v8  ;;  %v1721_v32 = vpop.permute.xlu0 %1720  ;;  %vm7936_vm14 = vcmask 678912  }
 0x155   : > { %2032 = vrot.lane.b32.xlu1 %v6495_v39, %s5937_s11  ;;  %4648 = vmatpush1.bf16.msra.mxu0 %v3401_v7  ;;  %v1751_v44 = vsel %vm1750_vm15, %v1721_v32, %v1723_v54 }
 0x156   : > { %2030 = vrot.lane.b32.xlu0 %v6502_v37, %s5937_s11  ;;  %4617 = vmatpush1.bf16.msra.mxu1 %v1751_v44 }
 0x157   : > { %v6554_v53 = vpop.permute.xlu1 %1874 }
 0x158   : > { %v1873_v52 = vpop.permute.xlu0 %1872 }
 0x159   : > { %2178 = vrot.lane.b32.xlu1 %v6480_v34, %s5939_s17  ;;  %v1902_v8 = vsel %vm7955_vm12, %v1873_v52, %v6554_v53 }
 0x15a   : > { %2176 = vrot.lane.b32.xlu0 %v6486_v46, %s5939_s17  ;;  %4618 = vmatprep.subr.bf16.mxu1 %v1902_v8 }
 0x15b   : > { %v6562_v35 = vpop.permute.xlu1 %3524 }
 0x15c   : > { %7992 = vst [vmem:[#allocation39_spill] sm:$0xff] %v6562_v35  ;;  %v3523_v54 = vpop.permute.xlu0 %3522 }
 0x15d   : > { %2182 = vrot.lane.b32.xlu1 %v6495_v39, %s5939_s17  ;;  %v3552_v55 = vsel %vm7936_vm14, %v3523_v54, %v6562_v35 }
 0x15e   : > { %2180 = vrot.lane.b32.xlu0 %v6502_v37, %s5939_s17  ;;  %4649 = vmatprep.subr.bf16.mxu0 %v3552_v55 }
 0x15f   : > { %v3521_v7 = vpop.permute.xlu1 %3520 }
 0x160   : > { %v3551_v32 = vsel %vm7936_vm14, %v3521_v7, %v3523_v54  ;;  %v1871_v44 = vpop.permute.xlu0 %1870  ;;  %vm7940_vm14 = vcmask 670720  }
 0x161   : > { %2328 = vrot.lane.b32.xlu1 %v6480_v34, %s5941_s20  ;;  %4650 = vmatpush1.bf16.msra.mxu0 %v3551_v32  ;;  %v1901_v8 = vsel %vm7955_vm12, %v1871_v44, %v1873_v52 }
 0x162   : > { %2326 = vrot.lane.b32.xlu0 %v6486_v46, %s5941_s20  ;;  %4619 = vmatpush1.bf16.msra.mxu1 %v1901_v8 }
 0x163   : > { %v6576_v51 = vpop.permute.xlu1 %2024 }
 0x164   : > { %v2023_v30 = vpop.permute.xlu0 %2022 }
 0x165   : > { %2332 = vrot.lane.b32.xlu1 %v6495_v39, %s5941_s20  ;;  %v2052_v54 = vsel %vm7954_vm10, %v2023_v30, %v6576_v51 }
 0x166   : > { %2330 = vrot.lane.b32.xlu0 %v6502_v37, %s5941_s20  ;;  %4620 = vmatprep.subr.bf16.mxu1 %v2052_v54 }
 0x167   : > { %v6584_v55 = vpop.permute.xlu1 %3674 }
 0x168   : > { %7993 = vst [vmem:[#allocation40_spill] sm:$0xff] %v6584_v55  ;;  %v3673_v52 = vpop.permute.xlu0 %3672 }
 0x169   : > { %2478 = vrot.lane.b32.xlu1 %v6480_v34, %s5943_s21  ;;  %v3702_v7 = vsel %vm7940_vm14, %v3673_v52, %v6584_v55 }
 0x16a   : > { %2476 = vrot.lane.b32.xlu0 %v6486_v46, %s5943_s21  ;;  %4651 = vmatprep.subr.bf16.mxu0 %v3702_v7 }
 0x16b   : > { %v3671_v32 = vpop.permute.xlu1 %3670 }
 0x16c   : > { %v3701_v44 = vsel %vm7940_vm14, %v3671_v32, %v3673_v52  ;;  %v2021_v8 = vpop.permute.xlu0 %2020  ;;  %vm7944_vm14 = vcmask 588800  }
 0x16d   : > { %2482 = vrot.lane.b32.xlu1 %v6495_v39, %s5943_s21  ;;  %4652 = vmatpush1.bf16.msra.mxu0 %v3701_v44  ;;  %v2051_v54 = vsel %vm7954_vm10, %v2021_v8, %v2023_v30 }
 0x16e   : > { %2480 = vrot.lane.b32.xlu0 %v6502_v37, %s5943_s21  ;;  %4621 = vmatpush1.bf16.msra.mxu1 %v2051_v54 }
 0x16f   : > { %v6598_v33 = vpop.permute.xlu1 %2174 }
 0x170   : > { %v2173_v28 = vpop.permute.xlu0 %2172 }
 0x171   : > { %2628 = vrot.lane.b32.xlu1 %v6480_v34, %s5924_s25  ;;  %v2202_v52 = vsel %vm7952_vm8, %v2173_v28, %v6598_v33 }
 0x172   : > { %2626 = vrot.lane.b32.xlu0 %v6486_v46, %s5924_s25  ;;  %4622 = vmatprep.subr.bf16.mxu1 %v2202_v52 }
 0x173   : > { %v6606_v7 = vpop.permute.xlu1 %3824 }
 0x174   : > { %7994 = vst [vmem:[#allocation41_spill] sm:$0xff] %v6606_v7  ;;  %v3823_v30 = vpop.permute.xlu0 %3822 }
 0x175   : > { %2632 = vrot.lane.b32.xlu1 %v6495_v39, %s5924_s25  ;;  %v3852_v32 = vsel %vm7944_vm14, %v3823_v30, %v6606_v7 }
 0x176   : > { %2630 = vrot.lane.b32.xlu0 %v6502_v37, %s5924_s25  ;;  %4653 = vmatprep.subr.bf16.mxu0 %v3852_v32  ;;  %v6627_v32 = vld [vmem:[%s5990_s19 + $0x20] sm:$0xff] }
 0x177   : > { %v3821_v44 = vpop.permute.xlu1 %3820 }
 0x178   : > { %v3851_v8 = vsel %vm7944_vm14, %v3821_v44, %v3823_v30  ;;  %v2171_v54 = vpop.permute.xlu0 %2170  ;;  %vm7947_vm14 = vcmask 580608  }
 0x179   : > { %2778 = vrot.lane.b32.xlu1 %v6480_v34, %s5926_s27  ;;  %4654 = vmatpush1.bf16.msra.mxu0 %v3851_v8  ;;  %v2201_v52 = vsel %vm7952_vm8, %v2171_v54, %v2173_v28  ;;  %v6630_v34 = vld [vmem:[%s5990_s19 + $0x64] sm:$0xff]  ;;  %v6647_v8 = vld [vmem:[%s5990_s19 + $0x1c] ss:$68 sps:$4 sm:$0xff]  }
 0x17a   : > { %2776 = vrot.lane.b32.xlu0 %v6486_v46, %s5926_s27  ;;  %4623 = vmatpush1.bf16.msra.mxu1 %v2201_v52 }
 0x17b   : > { %v6620_v31 = vpop.permute.xlu1 %2324 }
 0x17c   : > { %v2323_v7 = vpop.permute.xlu0 %2322 }
 0x17d   : > { %2782 = vrot.lane.b32.xlu1 %v6495_v39, %s5926_s27  ;;  %v2352_v30 = vsel %vm7951_vm6, %v2323_v7, %v6620_v31  ;;  %v6640_v39 = vcombine.low %v6627_v32, %v6630_v34 }
 0x17e   : > { %2780 = vrot.lane.b32.xlu0 %v6502_v37, %s5926_s27  ;;  %4624 = vmatprep.subr.bf16.mxu1 %v2352_v30 }
 0x17f   : > { %v6634_v28 = vpop.permute.xlu1 %3974 }
 0x180   : > { %7995 = vst [vmem:[#allocation42_spill] sm:$0xff] %v6634_v28  ;;  %v3973_v46 = vpop.permute.xlu0 %3972 }
 0x181   : > { %2928 = vrot.lane.b32.xlu1 %v6438_v19, %s5928_s29  ;;  %v4002_v44 = vsel %vm7947_vm14, %v3973_v46, %v6634_v28 }
 0x182   : > { %2926 = vrot.lane.b32.xlu0 %v6014_v6, %s5928_s29  ;;  %4655 = vmatprep.subr.bf16.mxu0 %v4002_v44 }
 0x183   : > { %v3971_v37 = vpop.permute.xlu1 %3970 }
 0x184   : > { %v4001_v54 = vsel %vm7947_vm14, %v3971_v37, %v3973_v46  ;;  %v2321_v52 = vpop.permute.xlu0 %2320  ;;  %vm4150_vm14 = vcmask 572416  }
 0x185   : > { %2932 = vrot.lane.b32.xlu1 %v6640_v39, %s5928_s29  ;;  %4656 = vmatpush1.bf16.msra.mxu0 %v4001_v54  ;;  %v2351_v30 = vsel %vm7951_vm6, %v2321_v52, %v2323_v7 }
 0x186   : > { %2930 = vrot.lane.b32.xlu0 %v6647_v8, %s5928_s29  ;;  %4625 = vmatpush1.bf16.msra.mxu1 %v2351_v30 }
 0x187   : > { %v6655_v28 = vpop.permute.xlu1 %2474 }
 0x188   : > { %v2473_v44 = vpop.permute.xlu0 %2472 }
 0x189   : > { %3078 = vrot.lane.b32.xlu1 %v6438_v19, %s5930_s4  ;;  %v2502_v46 = vsel %vm7953_vm5, %v2473_v44, %v6655_v28 }
 0x18a   : > { %3076 = vrot.lane.b32.xlu0 %v6014_v6, %s5930_s4  ;;  %4626 = vmatprep.subr.bf16.mxu1 %v2502_v46  ;;  %v6674_v46 = vcombine.low %v6397_v58, %v6397_v58 }
 0x18b   : > { %v6663_v37 = vpop.permute.xlu1 %4124 }
 0x18c   : > { %7996 = vst [vmem:[#allocation43_spill] sm:$0xff] %v6663_v37  ;;  %v4123_v7 = vpop.permute.xlu0 %4122 }
 0x18d   : > { %3082 = vrot.lane.b32.xlu1 %v6640_v39, %s5930_s4  ;;  %v4152_v54 = vsel %vm4150_vm14, %v4123_v7, %v6663_v37  ;;  %v6682_v37 = vcombine.low %v6392_v14, %v6392_v14  ;;  %v406_v14 = vsel %vm400_vm0, %v6104_v26, %v6114_v29 }
 0x18e   : > { %3080 = vrot.lane.b32.xlu0 %v6647_v8, %s5930_s4  ;;  %4657 = vmatprep.subr.bf16.mxu0 %v4152_v54 }
 0x18f   : > { %v4121_v52 = vpop.permute.xlu1 %4120 }
 0x190   : > { %v4151_v30 = vsel %vm4150_vm14, %v4121_v52, %v4123_v7  ;;  %v2471_v55 = vpop.permute.xlu0 %2470  ;;  %v403_v52 = vsel %vm400_vm0, %v6093_v20, %v6095_v22  ;;  %v706_v20 = vsel %vm700_vm2, %v6238_v4, %v6248_v9 }
 0x191   : > { %3228 = vrot.lane.b32.xlu1 %v6438_v19, %s5932_s6  ;;  %4658 = vmatpush1.bf16.msra.mxu0 %v4151_v30  ;;  %v2501_v35 = vsel %vm7953_vm5, %v2471_v55, %v2473_v44  ;;  %v405_v44 = vsel %vm400_vm0, %v6106_v27, %v6104_v26  ;;  %v554_v26 = vsel %vm550_vm1, %v6177_v48, %v6175_v47 }
 0x192   : > { %4760 = vmatprep.subr.bf16.mxu0 %v6445_v13  ;;  %3226 = vrot.lane.b32.xlu0 %v6014_v6, %s5932_s6  ;;  %v404_v6 = vsel %vm400_vm0, %v6095_v22, %v6106_v27  ;;  %v555_v30 = vsel %vm550_vm1, %v6175_v47, %v6185_v50  ;;  %v553_v22 = vsel %vm550_vm1, %v6166_v43, %v6177_v48 }
 0x193   : > { %4627 = vmatpush1.bf16.msra.mxu1 %v2501_v35  ;;  %v6686_v58 = vpop.permute.xlu1 %1128  ;;  %v5888_v35 = vld [vmem:[%s5990_s19 + $0x10] sm:$0xff]  ;;  %v704_v47 = vsel %vm700_vm2, %v6227_v61, %v6240_v5  ;;  %v856_v43 = vsel %vm850_vm3, %v6303_v40, %v6301_v25  ;;  %v703_v48 = vsel %vm700_vm2, %v6229_v62, %v6227_v61  ;;  %v1006_v61 = vsel %vm1000_vm4, %v6356_v63, %v6372_v3 }
 0x194   : > { %4678 = vmatprep.subr.bf16.mxu1 %v6370_v16  ;;  %4670 = vmatmul.mubr.bf16.vlgmr.msra.gmra.mrb[0].mxu0 %v6674_v46  ;;  %v6690_v7 = vpop.permute.xlu0 %1126  ;;  %v853_v62 = vsel %vm850_vm3, %v6284_v17, %v6295_v24 }
 0x195   : > { %3232 = vrot.lane.b32.xlu1 %v6640_v39, %s5932_s6  ;;  %4761 = vmatpush1.bf16.msra.mxu0 %v6363_v0  ;;  %v5889_v0 = vld [vmem:[%s5990_s19 + $0x54] sm:$0xff] }
 0x196   : > { %4629 = vmatmul.mubr.bf16.vlgmr.msra.gmra.mrb[0].mxu1 %v6682_v37  ;;  %4762 = vmatprep.subr.bf16.mxu0 %v406_v14  ;;  %v6709_v55 = vcombine.high %v5888_v35, %v5889_v0  ;;  %v855_v0 = vsel %vm850_vm3, %v6293_v23, %v6303_v40 }
 0x197   : > { %3230 = vrot.lane.b32.xlu0 %v6647_v8, %s5932_s6  ;;  %4679 = vmatpush1.bf16.msra.mxu1 %v6377_v18  ;;  %v6705_v16 = vpop.permute.xlu1 %1132  ;;  %v556_v18 = vsel %vm550_vm1, %v6185_v50, %v6183_v49 }
 0x198   : > { %4680 = vmatprep.subr.bf16.mxu1 %v404_v6  ;;  %4710 = vmatprep.mubr.bf16.mxu1 %v6401_v57  ;;  %v1131_v54 = vpop.permute.xlu0 %1130  ;;  %v705_v6 = vsel %vm700_vm2, %v6240_v5, %v6238_v4  ;;  %v854_v4 = vsel %vm850_vm3, %v6295_v24, %v6293_v23  ;;  %v1004_v23 = vsel %vm1000_vm4, %v6345_v21, %v6358_v60 }
 0x199   : > { %3378 = vrot.lane.b32.xlu1 %v6438_v19, %s5934_s8  ;;  %4763 = vmatpush1.bf16.msra.mxu0 %v405_v44  ;;  %v1156_v17 = vsel %vm1150_vm7, %v1131_v54, %v6705_v16  ;;  %v1003_v24 = vsel %vm1000_vm4, %v6347_v15, %v6345_v21  ;;  %v1153_v21 = vsel %vm1150_vm7, %v6425_v38, %v6690_v7 }
 0x19a   : > { %4764 = vmatprep.subr.bf16.mxu0 %v556_v18  ;;  %4792 = vmatprep.mubr.bf16.mxu0 %v6401_v57  ;;  %v1005_v18 = vsel %vm1000_vm4, %v6358_v60, %v6356_v63  ;;  %v1154_v60 = vsel %vm1150_vm7, %v6690_v7, %v6686_v58 }
 0x19b   : > { %3376 = vrot.lane.b32.xlu0 %v6709_v55, %s5934_s8  ;;  %4681 = vmatpush1.bf16.msra.mxu1 %v403_v52  ;;  %v6729_v27 = vpop.permute.xlu1 %1278 }
 0x19c   : > { %4682 = vmatprep.subr.bf16.mxu1 %v554_v26  ;;  %v6734_v14 = vpop.permute.xlu0 %1276  ;;  %v1155_v26 = vsel %vm1150_vm7, %v6686_v58, %v1131_v54 }
 0x19d   : > { %3382 = vrot.lane.b32.xlu1 %v6640_v39, %s5934_s8  ;;  %4765 = vmatpush1.bf16.msra.mxu0 %v555_v30  ;;  %v1304_v58 = vsel %vm1300_vm9, %v6734_v14, %v6729_v27  ;;  %v1303_v7 = vsel %vm1300_vm9, %v6453_v59, %v6734_v14 }
 0x19e   : > { %4766 = vmatprep.subr.bf16.mxu0 %v706_v20 }
 0x19f   : > { %3380 = vrot.lane.b32.xlu0 %v6647_v8, %s5934_s8  ;;  %4683 = vmatpush1.bf16.msra.mxu1 %v553_v22  ;;  %v6749_v50 = vpop.permute.xlu1 %1282 }
 0x1a0   : > { %4684 = vmatprep.subr.bf16.mxu1 %v704_v47  ;;  %v1281_v35 = vpop.permute.xlu0 %1280 }
 0x1a1   : > { %3528 = vrot.lane.b32.xlu1 %v6438_v19, %s5936_s10  ;;  %4767 = vmatpush1.bf16.msra.mxu0 %v705_v6  ;;  %v1306_v15 = vsel %vm1300_vm9, %v1281_v35, %v6749_v50  ;;  %v1305_v20 = vsel %vm1300_vm9, %v6729_v27, %v1281_v35 }
 0x1a2   : > { %4768 = vmatprep.subr.bf16.mxu0 %v856_v43 }
 0x1a3   : > { %3526 = vrot.lane.b32.xlu0 %v6709_v55, %s5936_s10  ;;  %4685 = vmatpush1.bf16.msra.mxu1 %v703_v48  ;;  %v1429_v5 = vpop.permute.xlu1 %1428 }
 0x1a4   : > { %4686 = vmatprep.subr.bf16.mxu1 %v854_v4  ;;  %v1427_v44 = vpop.permute.xlu0 %1426 }
 0x1a5   : > { %3532 = vrot.lane.b32.xlu1 %v6640_v39, %s5936_s10  ;;  %4769 = vmatpush1.bf16.msra.mxu0 %v855_v0  ;;  %v1454_v47 = vsel %vm1450_vm11, %v1427_v44, %v1429_v5  ;;  %v1453_v59 = vsel %vm1450_vm11, %v6475_v45, %v1427_v44 }
 0x1a6   : > { %4770 = vmatprep.subr.bf16.mxu0 %v1006_v61 }
 0x1a7   : > { %3530 = vrot.lane.b32.xlu0 %v6647_v8, %s5936_s10  ;;  %4687 = vmatpush1.bf16.msra.mxu1 %v853_v62  ;;  %v6783_v40 = vpop.permute.xlu1 %1432 }
 0x1a8   : > { %4688 = vmatprep.subr.bf16.mxu1 %v1004_v23  ;;  %v1431_v52 = vpop.permute.xlu0 %1430 }
 0x1a9   : > { %3678 = vrot.lane.b32.xlu1 %v6438_v19, %s5938_s16  ;;  %4771 = vmatpush1.bf16.msra.mxu0 %v1005_v18  ;;  %v1456_v38 = vsel %vm1450_vm11, %v1431_v52, %v6783_v40  ;;  %v1455_v6 = vsel %vm1450_vm11, %v1429_v5, %v1431_v52 }
 0x1aa   : > { %4772 = vmatprep.subr.bf16.mxu0 %v1156_v17 }
 0x1ab   : > { %3676 = vrot.lane.b32.xlu0 %v6709_v55, %s5938_s16  ;;  %4689 = vmatpush1.bf16.msra.mxu1 %v1003_v24  ;;  %v1579_v63 = vpop.permute.xlu1 %1578 }
 0x1ac   : > { %4690 = vmatprep.subr.bf16.mxu1 %v1154_v60  ;;  %v1577_v30 = vpop.permute.xlu0 %1576 }
 0x1ad   : > { %3682 = vrot.lane.b32.xlu1 %v6640_v39, %s5938_s16  ;;  %4773 = vmatpush1.bf16.msra.mxu0 %v1155_v26  ;;  %v1603_v45 = vsel %vm1600_vm13, %v6510_v12, %v1577_v30 }
 0x1ae   : > { %4774 = vmatprep.subr.bf16.mxu0 %v1306_v15 }
 0x1af   : > { %3680 = vrot.lane.b32.xlu0 %v6647_v8, %s5938_s16  ;;  %4691 = vmatpush1.bf16.msra.mxu1 %v1153_v21  ;;  %v6814_v54 = vpop.permute.xlu1 %1582 }
 0x1b0   : > { %4692 = vmatprep.subr.bf16.mxu1 %v1304_v58  ;;  %v1581_v22 = vpop.permute.xlu0 %1580  ;;  %v6890_v58 = vcombine.high %v6627_v32, %v6630_v34 }
 0x1b1   : > { %3828 = vrot.lane.b32.xlu1 %v6438_v19, %s7997_s18  ;;  %4775 = vmatpush1.bf16.msra.mxu0 %v1305_v20  ;;  %v1606_v43 = vsel %vm1600_vm13, %v1581_v22, %v6814_v54  ;;  %v1605_v48 = vsel %vm1600_vm13, %v1579_v63, %v1581_v22 }
 0x1b2   : > { %4776 = vmatprep.subr.bf16.mxu0 %v1456_v38 }
 0x1b3   : > { %3826 = vrot.lane.b32.xlu0 %v6709_v55, %s7997_s18  ;;  %4693 = vmatpush1.bf16.msra.mxu1 %v1303_v7  ;;  %v1729_v27 = vpop.permute.xlu1 %1728  ;;  %v1604_v55 = vsel %vm1600_vm13, %v1577_v30, %v1579_v63  ;;  %v6881_v30 = vld [vmem:[%s5990_s19 + $0x28] ss:$68 sps:$4 sm:$0xff]  }
 0x1b4   : > { %4694 = vmatprep.subr.bf16.mxu1 %v1454_v47  ;;  %v1727_v35 = vpop.permute.xlu0 %1726 }
 0x1b5   : > { %3832 = vrot.lane.b32.xlu1 %v6640_v39, %s7997_s18  ;;  %4777 = vmatpush1.bf16.msra.mxu0 %v1455_v6  ;;  %v1754_v0 = vsel %vm1750_vm15, %v1727_v35, %v1729_v27  ;;  %v1753_v12 = vsel %vm1750_vm15, %v6532_v10, %v1727_v35 }
 0x1b6   : > { %4778 = vmatprep.subr.bf16.mxu0 %v1606_v43 }
 0x1b7   : > { %3830 = vrot.lane.b32.xlu0 %v6647_v8, %s7997_s18  ;;  %4695 = vmatpush1.bf16.msra.mxu1 %v1453_v59  ;;  %v6838_v14 = vpop.permute.xlu1 %1732 }
 0x1b8   : > { %4696 = vmatprep.subr.bf16.mxu1 %v1604_v55  ;;  %v1731_v4 = vpop.permute.xlu0 %1730 }
 0x1b9   : > { %3978 = vrot.lane.b32.xlu1 %v6438_v19, %s7998_s22  ;;  %4779 = vmatpush1.bf16.msra.mxu0 %v1605_v48  ;;  %v1756_v5 = vsel %vm1750_vm15, %v1731_v4, %v6838_v14  ;;  %v1755_v61 = vsel %vm1750_vm15, %v1729_v27, %v1731_v4 }
 0x1ba   : > { %4780 = vmatprep.subr.bf16.mxu0 %v1756_v5 }
 0x1bb   : > { %3976 = vrot.lane.b32.xlu0 %v6445_v13, %s7998_s22  ;;  %4697 = vmatpush1.bf16.msra.mxu1 %v1603_v45  ;;  %v1879_v44 = vpop.permute.xlu1 %1878  ;;  %v6927_v45 = vld [vmem:[%s5990_s19 + $0x24] ss:$68 sps:$4 sm:$0xff]  }
 0x1bc   : > { %4698 = vmatprep.subr.bf16.mxu1 %v1754_v0  ;;  %v1877_v62 = vpop.permute.xlu0 %1876  ;;  %v6937_v0 = vld [vmem:[%s5990_s19 + $0x20] ss:$68 sps:$4 sm:$0xff]  }
 0x1bd   : > { %3982 = vrot.lane.b32.xlu1 %v6640_v39, %s7998_s22  ;;  %4781 = vmatpush1.bf16.msra.mxu0 %v1755_v61  ;;  %v1904_v23 = vsel %vm7955_vm12, %v1877_v62, %v1879_v44  ;;  %v1903_v17 = vsel %vm7955_vm12, %v6554_v53, %v1877_v62  ;;  %v6942_v61 = vld [vmem:[%s5990_s19 + $0x2c] ss:$68 sps:$4 sm:$0xff]  }
 0x1bf   : > { %3980 = vrot.lane.b32.xlu0 %v6647_v8, %s7998_s22  ;;  %4699 = vmatpush1.bf16.msra.mxu1 %v1753_v12  ;;  %v6858_v18 = vpop.permute.xlu1 %1882 }
 0x1c0   : > { %4700 = vmatprep.subr.bf16.mxu1 %v1904_v23  ;;  %v1881_v52 = vpop.permute.xlu0 %1880  ;;  %v6950_v23 = vld [vmem:[%s5990_s19 + $0x28] ss:$68 sps:$4 sm:$0xff]  }
 0x1c1   : > { %4128 = vrot.lane.b32.xlu1 %v6438_v19, %s5944_s24  ;;  %v1906_v24 = vsel %vm7955_vm12, %v1881_v52, %v6858_v18  ;;  %v1905_v10 = vsel %vm7955_vm12, %v1879_v44, %v1881_v52 }
 0x1c2   : > { %4782 = vmatprep.subr.bf16.mxu0 %v1906_v24 }
 0x1c3   : > { %4126 = vrot.lane.b32.xlu0 %v6445_v13, %s5944_s24  ;;  %4701 = vmatpush1.bf16.msra.mxu1 %v1903_v17  ;;  %v2029_v60 = vpop.permute.xlu1 %2028 }
 0x1c4   : > { %4783 = vmatpush1.bf16.msra.mxu0 %v1905_v10  ;;  %v2027_v63 = vpop.permute.xlu0 %2026 }
 0x1c5   : > { %4132 = vrot.lane.b32.xlu1 %v6640_v39, %s5944_s24  ;;  %v2054_v19 = vsel %vm7954_vm10, %v2027_v63, %v2029_v60  ;;  %v2053_v53 = vsel %vm7954_vm10, %v6576_v51, %v2027_v63 }
 0x1c6   : > { %4702 = vmatprep.subr.bf16.mxu1 %v2054_v19 }
 0x1c7   : > { %4130 = vrot.lane.b32.xlu0 %v6647_v8, %s5944_s24  ;;  %v6876_v26 = vpop.permute.xlu1 %2032  ;;  %4703 = vmatpush1.bf16.msra.mxu1 %v2053_v53 }
 0x1c8   : > { %v2031_v13 = vpop.permute.xlu0 %2030 }
 0x1c9   : > { %1136 = vrot.lane.b32.xlu1 %v6640_v39, %s5925_s26  ;;  %v2056_v15 = vsel %vm7954_vm10, %v2031_v13, %v6876_v26  ;;  %v2055_v21 = vsel %vm7954_vm10, %v2029_v60, %v2031_v13  ;;  %vm8003_vm10 = vcmask 703488  }
 0x1ca   : > { %4784 = vmatprep.subr.bf16.mxu0 %v2056_v15  ;;  %vm8004_vm12 = vmmov %vm8003_vm10 }
 0x1cb   : > { %1134 = vrot.lane.b32.xlu0 %v6647_v8, %s5925_s26  ;;  %v2179_v51 = vpop.permute.xlu1 %2178  ;;  %4785 = vmatpush1.bf16.msra.mxu0 %v2055_v21 }
 0x1cc   : > { %v2177_v20 = vpop.permute.xlu0 %2176 }
 0x1cd   : > { %1140 = vrot.lane.b32.xlu1 %v6881_v30, %s5925_s26  ;;  %v2204_v22 = vsel %vm7952_vm8, %v2177_v20, %v2179_v51  ;;  %v2203_v38 = vsel %vm7952_vm8, %v6598_v33, %v2177_v20 }
 0x1ce   : > { %4704 = vmatprep.subr.bf16.mxu1 %v2204_v22 }
 0x1cf   : > { %1138 = vrot.lane.b32.xlu0 %v6890_v58, %s5925_s26  ;;  %v6899_v7 = vpop.permute.xlu1 %2182  ;;  %4705 = vmatpush1.bf16.msra.mxu1 %v2203_v38 }
 0x1d0   : > { %v2181_v47 = vpop.permute.xlu0 %2180 }
 0x1d1   : > { %1286 = vrot.lane.b32.xlu1 %v6640_v39, %s5927_s28  ;;  %v2206_v32 = vsel %vm7952_vm8, %v2181_v47, %v6899_v7  ;;  %v2205_v34 = vsel %vm7952_vm8, %v2179_v51, %v2181_v47  ;;  %vm8000_vm8 = vcmask 711680  }
 0x1d2   : > { %4786 = vmatprep.subr.bf16.mxu0 %v2206_v32 }
 0x1d3   : > { %1284 = vrot.lane.b32.xlu0 %v6647_v8, %s5927_s28  ;;  %v2329_v33 = vpop.permute.xlu1 %2328  ;;  %4787 = vmatpush1.bf16.msra.mxu0 %v2205_v34 }
 0x1d4   : > { %v2327_v27 = vpop.permute.xlu0 %2326 }
 0x1d5   : > { %1290 = vrot.lane.b32.xlu1 %v6881_v30, %s5927_s28  ;;  %v2354_v6 = vsel %vm7951_vm6, %v2327_v27, %v2329_v33  ;;  %v2353_v35 = vsel %vm7951_vm6, %v6620_v31, %v2327_v27 }
 0x1d6   : > { %4706 = vmatprep.subr.bf16.mxu1 %v2354_v6 }
 0x1d7   : > { %1288 = vrot.lane.b32.xlu0 %v6890_v58, %s5927_s28  ;;  %v6915_v43 = vpop.permute.xlu1 %2332  ;;  %4707 = vmatpush1.bf16.msra.mxu1 %v2353_v35 }
 0x1d8   : > { %v2331_v59 = vpop.permute.xlu0 %2330 }
 0x1d9   : > { %1436 = vrot.lane.b32.xlu1 %v6640_v39, %s5929_s30  ;;  %v2356_v55 = vsel %vm7951_vm6, %v2331_v59, %v6915_v43  ;;  %v2355_v48 = vsel %vm7951_vm6, %v2329_v33, %v2331_v59  ;;  %vm7999_vm6 = vcmask 392192  }
 0x1da   : > { %4788 = vmatprep.subr.bf16.mxu0 %v2356_v55 }
 0x1db   : > { %1434 = vrot.lane.b32.xlu0 %v6647_v8, %s5929_s30  ;;  %v2479_v31 = vpop.permute.xlu1 %2478  ;;  %4789 = vmatpush1.bf16.msra.mxu0 %v2355_v48 }
 0x1dc   : > { %v2477_v4 = vpop.permute.xlu0 %2476 }
 0x1dd   : > { %1440 = vrot.lane.b32.xlu1 %v6881_v30, %s5929_s30  ;;  %v2504_v39 = vsel %vm7953_vm5, %v2477_v4, %v2479_v31  ;;  %v2503_v5 = vsel %vm7953_vm5, %v6655_v28, %v2477_v4 }
 0x1de   : > { %4708 = vmatprep.subr.bf16.mxu1 %v2504_v39 }
 0x1df   : > { %1438 = vrot.lane.b32.xlu0 %v6890_v58, %s5929_s30  ;;  %v6934_v8 = vpop.permute.xlu1 %2482  ;;  %4709 = vmatpush1.bf16.msra.mxu1 %v2503_v5 }
 0x1e0   : > { %v2481_v44 = vpop.permute.xlu0 %2480 }
 0x1e1   : > { %1586 = vrot.lane.b32.xlu1 %v6927_v45, %s5931_s5  ;;  %v2506_v62 = vsel %vm7953_vm5, %v2481_v44, %v6934_v8  ;;  %v2505_v28 = vsel %vm7953_vm5, %v2479_v31, %v2481_v44  ;;  %vm8001_vm5 = vmmov %vm8000_vm8 }
 0x1e2   : > { %4790 = vmatprep.subr.bf16.mxu0 %v2506_v62  ;;  %4711 = vmatmul.mubr.bf16.vlgmr.msra.gmra.mrb[4].mxu1 %v6682_v37 }
 0x1e3   : > { %1584 = vrot.lane.b32.xlu0 %v6937_v0, %s5931_s5  ;;  %v2629_v12 = vpop.permute.xlu1 %2628  ;;  %4791 = vmatpush1.bf16.msra.mxu0 %v2505_v28 }
 0x1e4   : > { %v2627_v52 = vpop.permute.xlu0 %2626  ;;  %5681 = vmatprep.mubr.msk.bf16.mxu1 %vm7999_vm6, %v6405_v56 }
 0x1e5   : > { %1590 = vrot.lane.b32.xlu1 %v6942_v61, %s5931_s5  ;;  %v2654_v17 = vsel %vm8000_vm8, %v2627_v52, %v2629_v12  ;;  %v2653_v24 = vsel %vm8001_vm5, %v6416_v42, %v2627_v52  ;;  %vm8002_vm8 = vmmov %vm8001_vm5 }
 0x1e6   : > { %4719 = vmatprep.subr.bf16.mxu1 %v2654_v17  ;;  %4793 = vmatmul.mubr.bf16.vlgmr.msra.gmra.mrb[4].mxu0 %v6682_v37 }
 0x1e7   : > { %1588 = vrot.lane.b32.xlu0 %v6950_v23, %s5931_s5  ;;  %v6962_v10 = vpop.permute.xlu1 %2632  ;;  %4720 = vmatpush1.bf16.msra.mxu1 %v2653_v24 }
 0x1e8   : > { %v2631_v60 = vpop.permute.xlu0 %2630  ;;  %5682 = vmatprep.mubr.msk.bf16.mxu0 %vm7999_vm6, %v6405_v56  ;;  %vm8005_vm6 = vmmov %vm8003_vm10 }
 0x1e9   : > { %1736 = vrot.lane.b32.xlu1 %v6927_v45, %s5933_s7  ;;  %v2656_v63 = vsel %vm8002_vm8, %v2631_v60, %v6962_v10  ;;  %v2655_v42 = vsel %vm8001_vm5, %v2629_v12, %v2631_v60  ;;  %vm8006_vm8 = vmmov %vm8005_vm6 }
 0x1ea   : > { %4801 = vmatprep.subr.bf16.mxu0 %v2656_v63 }
 0x1eb   : > { %1734 = vrot.lane.b32.xlu0 %v6937_v0, %s5933_s7  ;;  %v2779_v19 = vpop.permute.xlu1 %2778  ;;  %4802 = vmatpush1.bf16.msra.mxu0 %v2655_v42 }
 0x1ec   : > { %v2777_v53 = vpop.permute.xlu0 %2776 }
 0x1ed   : > { %1740 = vrot.lane.b32.xlu1 %v6942_v61, %s5933_s7  ;;  %v2804_v13 = vsel %vm8003_vm10, %v2777_v53, %v2779_v19  ;;  %v2803_v15 = vsel %vm8004_vm12, %v6433_v11, %v2777_v53  ;;  %vm8007_vm10 = vcmask 785408  }
 0x1ee   : > { %4721 = vmatprep.subr.bf16.mxu1 %v2804_v13  ;;  %vm8008_vm12 = vmmov %vm8007_vm10 }
 0x1ef   : > { %1738 = vrot.lane.b32.xlu0 %v6950_v23, %s5933_s7  ;;  %v6981_v21 = vpop.permute.xlu1 %2782  ;;  %4722 = vmatpush1.bf16.msra.mxu1 %v2803_v15  ;;  %vm8009_vm5 = vmmov %vm8007_vm10 }
 0x1f0   : > { %v2781_v51 = vpop.permute.xlu0 %2780 }
 0x1f1   : > { %1886 = vrot.lane.b32.xlu1 %v6927_v45, %s5935_s9  ;;  %v2806_v20 = vsel %vm8005_vm6, %v2781_v51, %v6981_v21  ;;  %v2805_v22 = vsel %vm8006_vm8, %v2779_v19, %v2781_v51  ;;  %vm8010_vm6 = vmmov %vm8009_vm5  ;;  %vm8011_vm8 = vcmask 777216  }
 0x1f2   : > { %4803 = vmatprep.subr.bf16.mxu0 %v2806_v20  ;;  %v8024_v20 = vld [vmem:[#allocation39_spill] sm:$0xff] }
 0x1f3   : > { %1884 = vrot.lane.b32.xlu0 %v6937_v0, %s5935_s9  ;;  %v2929_v11 = vpop.permute.xlu1 %2928  ;;  %4804 = vmatpush1.bf16.msra.mxu0 %v2805_v22 }
 0x1f4   : > { %v2927_v38 = vpop.permute.xlu0 %2926 }
 0x1f5   : > { %1890 = vrot.lane.b32.xlu1 %v6942_v61, %s5935_s9  ;;  %v2954_v47 = vsel %vm8007_vm10, %v2927_v38, %v2929_v11  ;;  %v2953_v32 = vsel %vm8008_vm12, %v6461_v41, %v2927_v38  ;;  %vm8012_vm10 = vmmov %vm8011_vm8 }
 0x1f6   : > { %4723 = vmatprep.subr.bf16.mxu1 %v2954_v47  ;;  %vm8013_vm12 = vmmov %vm8011_vm8 }
 0x1f7   : > { %1888 = vrot.lane.b32.xlu0 %v6950_v23, %s5935_s9  ;;  %v6997_v34 = vpop.permute.xlu1 %2932  ;;  %4724 = vmatpush1.bf16.msra.mxu1 %v2953_v32 }
 0x1f8   : > { %v2931_v33 = vpop.permute.xlu0 %2930 }
 0x1f9   : > { %2036 = vrot.lane.b32.xlu1 %v6927_v45, %s5937_s11  ;;  %v2956_v27 = vsel %vm8009_vm5, %v2931_v33, %v6997_v34  ;;  %v2955_v6 = vsel %vm8010_vm6, %v2929_v11, %v2931_v33  ;;  %vm8014_vm5 = vmmov %vm8011_vm8  ;;  %vm8015_vm6 = vcmask 769024  }
 0x1fa   : > { %4805 = vmatprep.subr.bf16.mxu0 %v2956_v27 }
 0x1fb   : > { %2034 = vrot.lane.b32.xlu0 %v6937_v0, %s5937_s11  ;;  %v3079_v41 = vpop.permute.xlu1 %3078  ;;  %4806 = vmatpush1.bf16.msra.mxu0 %v2955_v6 }
 0x1fc   : > { %v3077_v35 = vpop.permute.xlu0 %3076 }
 0x1fd   : > { %2040 = vrot.lane.b32.xlu1 %v6942_v61, %s5937_s11  ;;  %v3104_v59 = vsel %vm8011_vm8, %v3077_v35, %v3079_v41  ;;  %v3103_v55 = vsel %vm8012_vm10, %v6490_v1, %v3077_v35  ;;  %vm8016_vm8 = vmmov %vm8015_vm6 }
 0x1fe   : > { %4725 = vmatprep.subr.bf16.mxu1 %v3104_v59  ;;  %vm8017_vm10 = vmmov %vm8015_vm6 }
 0x1ff   : > { %2038 = vrot.lane.b32.xlu0 %v6950_v23, %s5937_s11  ;;  %v7013_v48 = vpop.permute.xlu1 %3082  ;;  %4726 = vmatpush1.bf16.msra.mxu1 %v3103_v55 }
 0x200   : > { %v3081_v31 = vpop.permute.xlu0 %3080 }
 0x201   : > { %2186 = vrot.lane.b32.xlu1 %v6927_v45, %s5939_s17  ;;  %v3106_v4 = vsel %vm8013_vm12, %v3081_v31, %v7013_v48  ;;  %v3105_v39 = vsel %vm8014_vm5, %v3079_v41, %v3081_v31  ;;  %vm8018_vm12 = vmmov %vm8015_vm6  ;;  %vm8019_vm5 = vcmask 687104   ;;  %v8029_v41 = vld [vmem:[#allocation40_spill] sm:$0xff] }
 0x202   : > { %4807 = vmatprep.subr.bf16.mxu0 %v3106_v4 }
 0x203   : > { %2184 = vrot.lane.b32.xlu0 %v6937_v0, %s5939_s17  ;;  %v3229_v1 = vpop.permute.xlu1 %3228  ;;  %4808 = vmatpush1.bf16.msra.mxu0 %v3105_v39 }
 0x204   : > { %v3227_v5 = vpop.permute.xlu0 %3226 }
 0x205   : > { %2190 = vrot.lane.b32.xlu1 %v6942_v61, %s5939_s17  ;;  %v3254_v44 = vsel %vm8015_vm6, %v3227_v5, %v3229_v1  ;;  %v3253_v62 = vsel %vm8016_vm8, %v6518_v36, %v3227_v5  ;;  %vm8020_vm6 = vmmov %vm8019_vm5 }
 0x206   : > { %4727 = vmatprep.subr.bf16.mxu1 %v3254_v44  ;;  %vm8021_vm8 = vmmov %vm8019_vm5  ;;  %v8034_v44 = vld [vmem:[#allocation41_spill] sm:$0xff] }
 0x207   : > { %2188 = vrot.lane.b32.xlu0 %v6950_v23, %s5939_s17  ;;  %v7029_v28 = vpop.permute.xlu1 %3232  ;;  %4728 = vmatpush1.bf16.msra.mxu1 %v3253_v62  ;;  %v7092_v62 = vld [vmem:[%s5990_s19 + $0x30] sm:$0xff] }
 0x209   : > { %v3231_v12 = vpop.permute.xlu0 %3230  ;;  %2336 = vrot.lane.b32.xlu1 %v6927_v45, %s5941_s20 }
 0x20a   : > { %v3256_v52 = vsel %vm8017_vm10, %v3231_v12, %v7029_v28  ;;  %v3255_v17 = vsel %vm8018_vm12, %v3229_v1, %v3231_v12  ;;  %vm8022_vm10 = vmmov %vm8019_vm5  ;;  %vm8023_vm12 = vcmask 678912   ;;  %v7095_v12 = vld [vmem:[%s5990_s19 + $0x74] sm:$0xff] }
 0x20b   : > { %2334 = vrot.lane.b32.xlu0 %v6937_v0, %s5941_s20  ;;  %4809 = vmatprep.subr.bf16.mxu0 %v3256_v52  ;;  %v3379_v36 = vpop.permute.xlu1 %3378 }
 0x20c   : > { %4810 = vmatpush1.bf16.msra.mxu0 %v3255_v17 }
 0x20d   : > { %v3377_v24 = vpop.permute.xlu0 %3376  ;;  %2340 = vrot.lane.b32.xlu1 %v6942_v61, %s5941_s20 }
 0x20e   : > { %v3404_v60 = vsel %vm8019_vm5, %v3377_v24, %v3379_v36  ;;  %v3403_v63 = vsel %vm8020_vm6, %v6540_v2, %v3377_v24  ;;  %vm8025_vm5 = vmmov %vm8023_vm12  ;;  %v7113_v24 = vld [vmem:[%s5990_s19 + $0x2c] ss:$68 sps:$4 sm:$0xff]  }
 0x20f   : > { %2338 = vrot.lane.b32.xlu0 %v6950_v23, %s5941_s20  ;;  %4729 = vmatprep.subr.bf16.mxu1 %v3404_v60  ;;  %v7045_v42 = vpop.permute.xlu1 %3382  ;;  %vm8026_vm6 = vmmov %vm8025_vm5 }
 0x210   : > { %4730 = vmatpush1.bf16.msra.mxu1 %v3403_v63 }
 0x211   : > { %v3381_v19 = vpop.permute.xlu0 %3380  ;;  %2486 = vrot.lane.b32.xlu1 %v6927_v45, %s5943_s21 }
 0x212   : > { %v3406_v53 = vsel %vm8021_vm8, %v3381_v19, %v7045_v42  ;;  %v3405_v13 = vsel %vm8022_vm10, %v3379_v36, %v3381_v19  ;;  %vm8027_vm8 = vmmov %vm8025_vm5  ;;  %vm8028_vm10 = vcmask 670720   ;;  %v8039_v19 = vld [vmem:[#allocation42_spill] sm:$0xff] }
 0x213   : > { %2484 = vrot.lane.b32.xlu0 %v6937_v0, %s5943_s21  ;;  %4811 = vmatprep.subr.bf16.mxu0 %v3406_v53  ;;  %v3529_v2 = vpop.permute.xlu1 %3528 }
 0x214   : > { %4812 = vmatpush1.bf16.msra.mxu0 %v3405_v13 }
 0x215   : > { %v3527_v15 = vpop.permute.xlu0 %3526  ;;  %2490 = vrot.lane.b32.xlu1 %v6942_v61, %s5943_s21 }
 0x216   : > { %v3554_v51 = vsel %vm8023_vm12, %v3527_v15, %v3529_v2  ;;  %v3553_v22 = vsel %vm8025_vm5, %v8024_v20, %v3527_v15  ;;  %vm8030_vm12 = vmmov %vm8028_vm10 }
 0x217   : > { %2488 = vrot.lane.b32.xlu0 %v6950_v23, %s5943_s21  ;;  %4731 = vmatprep.subr.bf16.mxu1 %v3554_v51  ;;  %v7061_v11 = vpop.permute.xlu1 %3532  ;;  %vm8031_vm5 = vmmov %vm8028_vm10 }
 0x218   : > { %4732 = vmatpush1.bf16.msra.mxu1 %v3553_v22 }
 0x219   : > { %v3531_v38 = vpop.permute.xlu0 %3530  ;;  %2636 = vrot.lane.b32.xlu1 %v6927_v45, %s5924_s25 }
 0x21a   : > { %v3556_v47 = vsel %vm8026_vm6, %v3531_v38, %v7061_v11  ;;  %v3555_v32 = vsel %vm8027_vm8, %v3529_v2, %v3531_v38  ;;  %vm8032_vm6 = vmmov %vm8031_vm5  ;;  %vm8033_vm8 = vcmask 588800   ;;  %v5846_v38 = vld [vmem:[%s5990_s19 + $0x1c] ss:$68 sps:$4 sm:$0xff]  }
 0x21b   : > { %2634 = vrot.lane.b32.xlu0 %v6937_v0, %s5924_s25  ;;  %4813 = vmatprep.subr.bf16.mxu0 %v3556_v47  ;;  %v3679_v33 = vpop.permute.xlu1 %3678 }
 0x21c   : > { %4814 = vmatpush1.bf16.msra.mxu0 %v3555_v32  ;;  %v8043_v32 = vld [vmem:[#allocation43_spill] sm:$0xff] }
 0x21d   : > { %v3677_v27 = vpop.permute.xlu0 %3676  ;;  %2640 = vrot.lane.b32.xlu1 %v6942_v61, %s5924_s25 }
 0x21e   : > { %v3704_v6 = vsel %vm8028_vm10, %v3677_v27, %v3679_v33  ;;  %v3703_v35 = vsel %vm8030_vm12, %v8029_v41, %v3677_v27  ;;  %vm8035_vm10 = vmmov %vm8033_vm8  ;;  %v5844_v41 = vld [vmem:[%s5990_s19 + $0x18] ss:$68 sps:$4 sm:$0xff]  }
 0x21f   : > { %2638 = vrot.lane.b32.xlu0 %v6950_v23, %s5924_s25  ;;  %4733 = vmatprep.subr.bf16.mxu1 %v3704_v6  ;;  %v7077_v59 = vpop.permute.xlu1 %3682  ;;  %vm8036_vm12 = vmmov %vm8033_vm8 }
 0x220   : > { %4734 = vmatpush1.bf16.msra.mxu1 %v3703_v35 }
 0x221   : > { %v3681_v55 = vpop.permute.xlu0 %3680  ;;  %2786 = vrot.lane.b32.xlu1 %v6927_v45, %s5926_s27 }
 0x222   : > { %v3706_v31 = vsel %vm8031_vm5, %v3681_v55, %v7077_v59  ;;  %v3705_v4 = vsel %vm8032_vm6, %v3679_v33, %v3681_v55  ;;  %vm8037_vm5 = vmmov %vm8033_vm8  ;;  %vm8038_vm6 = vcmask 580608  }
 0x223   : > { %2784 = vrot.lane.b32.xlu0 %v6937_v0, %s5926_s27  ;;  %4815 = vmatprep.subr.bf16.mxu0 %v3706_v31  ;;  %v3829_v39 = vpop.permute.xlu1 %3828  ;;  %v5849_v31 = vld [vmem:[%s5990_s19 + $0x24] ss:$68 sps:$4 sm:$0xff]  }
 0x224   : > { %4816 = vmatpush1.bf16.msra.mxu0 %v3705_v4 }
 0x225   : > { %v3827_v1 = vpop.permute.xlu0 %3826  ;;  %2790 = vrot.lane.b32.xlu1 %v6942_v61, %s5926_s27  ;;  %v7105_v61 = vcombine.low %v7092_v62, %v7095_v12 }
 0x226   : > { %v3854_v5 = vsel %vm8033_vm8, %v3827_v1, %v3829_v39  ;;  %v3853_v45 = vsel %vm8035_vm10, %v8034_v44, %v3827_v1  ;;  %vm8040_vm8 = vmmov %vm8038_vm6  ;;  %v8045_v44 = vld [vmem:[#allocation3_spill] sm:$0xff] }
 0x227   : > { %2788 = vrot.lane.b32.xlu0 %v6950_v23, %s5926_s27  ;;  %4735 = vmatprep.subr.bf16.mxu1 %v3854_v5  ;;  %v7099_v0 = vpop.permute.xlu1 %3832  ;;  %vm8041_vm10 = vmmov %vm8038_vm6  ;;  %v8044_v5 = vld [vmem:[#allocation5_spill] sm:$0xff] }
 0x228   : > { %4736 = vmatpush1.bf16.msra.mxu1 %v3853_v45  ;;  %v408_v45 = vsel %vm400_vm0, %v8045_v44, %v8044_v5 }
 0x229   : > { %v3831_v52 = vpop.permute.xlu0 %3830  ;;  %2936 = vrot.lane.b32.xlu1 %v6881_v30, %s5928_s29 }
 0x22a   : > { %v3856_v17 = vsel %vm8036_vm12, %v3831_v52, %v7099_v0  ;;  %v3855_v36 = vsel %vm8037_vm5, %v3829_v39, %v3831_v52  ;;  %vm8042_vm12 = vmmov %vm8038_vm6  ;;  %v5847_v39 = vld [vmem:[%s5990_s19 + $0x20] ss:$68 sps:$4 sm:$0xff]   ;;  %vm8064_vm5 = vcmask 900096  }
 0x22b   : > { %2934 = vrot.lane.b32.xlu0 %v6890_v58, %s5928_s29  ;;  %4817 = vmatprep.subr.bf16.mxu0 %v3856_v17  ;;  %v3979_v23 = vpop.permute.xlu1 %3978  ;;  %v407_v17 = vsel %vm400_vm0, %v6114_v29, %v8045_v44  ;;  %v8056_v44 = vld [vmem:[#allocation27_spill] sm:$0xff] }
 0x22c   : > { %4818 = vmatpush1.bf16.msra.mxu0 %v3855_v36  ;;  %v8046_v36 = vld [vmem:[#allocation7_spill] sm:$0xff] }
 0x22d   : > { %v3977_v60 = vpop.permute.xlu0 %3976  ;;  %2940 = vrot.lane.b32.xlu1 %v7105_v61, %s5928_s29 }
 0x22e   : > { %v4004_v63 = vsel %vm8038_vm6, %v3977_v60, %v3979_v23  ;;  %v4003_v53 = vsel %vm8040_vm8, %v8039_v19, %v3977_v60  ;;  %v8048_v19 = vld [vmem:[#allocation11_spill] sm:$0xff]  ;;  %vm8065_vm6 = vmmov %vm8064_vm5 }
 0x22f   : > { %2938 = vrot.lane.b32.xlu0 %v7113_v24, %s5928_s29  ;;  %4737 = vmatprep.subr.bf16.mxu1 %v4004_v63  ;;  %v7122_v13 = vpop.permute.xlu1 %3982  ;;  %vm8066_vm8 = vmmov %vm8064_vm5 }
 0x230   : > { %4738 = vmatpush1.bf16.msra.mxu1 %v4003_v53  ;;  %v8049_v53 = vld [vmem:[#allocation12_spill] sm:$0xff] }
 0x231   : > { %v3981_v2 = vpop.permute.xlu0 %3980  ;;  %3086 = vrot.lane.b32.xlu1 %v6881_v30, %s5930_s4 }
 0x232   : > { %v4006_v15 = vsel %vm8041_vm10, %v3981_v2, %v7122_v13  ;;  %v4005_v51 = vsel %vm8042_vm12, %v3979_v23, %v3981_v2  ;;  %v8047_v23 = vld [vmem:[#allocation4_spill] sm:$0xff]  ;;  %v558_v2 = vsel %vm550_vm1, %v8049_v53, %v8048_v19  ;;  %vm8067_vm10 = vmmov %vm8064_vm5  ;;  %vm8068_vm12 = vcmask 818176  }
 0x233   : > { %3084 = vrot.lane.b32.xlu0 %v6890_v58, %s5930_s4  ;;  %4819 = vmatprep.subr.bf16.mxu0 %v4006_v15  ;;  %v4129_v20 = vpop.permute.xlu1 %4128  ;;  %v410_v60 = vsel %vm400_vm0, %v8047_v23, %v8046_v36  ;;  %v409_v29 = vsel %vm400_vm0, %v8044_v5, %v8047_v23 }
 0x234   : > { %4820 = vmatpush1.bf16.msra.mxu0 %v4005_v51  ;;  %v557_v51 = vsel %vm550_vm1, %v6183_v49, %v8049_v53  ;;  %v8059_v53 = vld [vmem:[#allocation30_spill] sm:$0xff] }
 0x235   : > { %v4127_v22 = vpop.permute.xlu0 %4126  ;;  %3090 = vrot.lane.b32.xlu1 %v7105_v61, %s5930_s4 }
 0x236   : > { %v4154_v47 = vsel %vm4150_vm14, %v4127_v22, %v4129_v20  ;;  %v4153_v33 = vsel %vm4150_vm14, %v8043_v32, %v4127_v22  ;;  %v8051_v22 = vld [vmem:[#allocation14_spill] sm:$0xff]  ;;  %v8052_v32 = vld [vmem:[#allocation21_spill] sm:$0xff] }
 0x237   : > { %3088 = vrot.lane.b32.xlu0 %v7113_v24, %s5930_s4  ;;  %4739 = vmatprep.subr.bf16.mxu1 %v4154_v47  ;;  %v7139_v27 = vpop.permute.xlu1 %4132  ;;  %v559_v49 = vsel %vm550_vm1, %v8048_v19, %v8051_v22  ;;  %v8058_v19 = vld [vmem:[#allocation29_spill] sm:$0xff] }
 0x238   : > { %4740 = vmatpush1.bf16.msra.mxu1 %v4153_v33  ;;  %v8053_v33 = vld [vmem:[#allocation19_spill] sm:$0xff] }
 0x239   : > { %v4131_v6 = vpop.permute.xlu0 %4130  ;;  %3236 = vrot.lane.b32.xlu1 %v6881_v30, %s5932_s6  ;;  %4842 = vmatprep.subr.bf16.mxu1 %v5846_v38 }
 0x23a   : > { %v4156_v35 = vsel %vm4150_vm14, %v4131_v6, %v7139_v27  ;;  %v4155_v55 = vsel %vm4150_vm14, %v4129_v20, %v4131_v6  ;;  %v8050_v20 = vld [vmem:[#allocation13_spill] sm:$0xff]  ;;  %v708_v6 = vsel %vm700_vm2, %v8053_v33, %v8052_v32 }
 0x23b   : > { %3234 = vrot.lane.b32.xlu0 %v6890_v58, %s5932_s6  ;;  %4821 = vmatprep.subr.bf16.mxu0 %v4156_v35  ;;  %v7150_v4 = vpop.permute.xlu1 %1136  ;;  %v560_v38 = vsel %vm550_vm1, %v8051_v22, %v8050_v20  ;;  %v707_v35 = vsel %vm700_vm2, %v6248_v9, %v8053_v33  ;;  %v8061_v22 = vld [vmem:[#allocation35_spill] sm:$0xff] }
 0x23c   : > { %4752 = vmatmul.mubr.bf16.vlgmr.msra.gmra.mrb[4].mxu1 %v6674_v46  ;;  %4822 = vmatpush1.bf16.msra.mxu0 %v4155_v55  ;;  %v8054_v55 = vld [vmem:[#allocation23_spill] sm:$0xff]  ;;  %v1007_v33 = vsel %vm1000_vm4, %v6372_v3, %v8061_v22 }
 0x23d   : > { %4843 = vmatpush1.bf16.msra.mxu1 %v5844_v41  ;;  %v7154_v1 = vpop.permute.xlu0 %1134  ;;  %3240 = vrot.lane.b32.xlu1 %v7105_v61, %s5932_s6 }
 0x23e   : > { %4844 = vmatprep.subr.bf16.mxu1 %v408_v45  ;;  %4924 = vmatprep.subr.bf16.mxu0 %v5849_v31  ;;  %v8055_v31 = vld [vmem:[#allocation20_spill] sm:$0xff] }
 0x23f   : > { %3238 = vrot.lane.b32.xlu0 %v7113_v24, %s5932_s6  ;;  %4834 = vmatmul.mubr.bf16.vlgmr.msra.gmra.mrb[4].mxu0 %v6674_v46  ;;  %v7164_v52 = vpop.permute.xlu1 %1140  ;;  %v8057_v45 = vld [vmem:[#allocation28_spill] sm:$0xff]  ;;  %v709_v9 = vsel %vm700_vm2, %v8052_v32, %v8055_v31 }
 0x240   : > { %4925 = vmatpush1.bf16.msra.mxu0 %v5847_v39  ;;  %4874 = vmatprep.mubr.bf16.mxu1 %v6401_v57  ;;  %v710_v39 = vsel %vm700_vm2, %v8055_v31, %v8054_v55 }
 0x241   : > { %4845 = vmatpush1.bf16.msra.mxu1 %v407_v17  ;;  %v7173_v63 = vpop.permute.xlu0 %1138  ;;  %4926 = vmatprep.subr.bf16.mxu0 %v410_v60  ;;  %v858_v17 = vsel %vm850_vm3, %v8057_v45, %v8056_v44  ;;  %v857_v60 = vsel %vm850_vm3, %v6301_v25, %v8057_v45  ;;  %v859_v25 = vsel %vm850_vm3, %v8056_v44, %v8059_v53 }
 0x242   : > { %4846 = vmatprep.subr.bf16.mxu1 %v558_v2  ;;  %3386 = vrot.lane.b32.xlu1 %v6881_v30, %s5934_s8  ;;  %v860_v2 = vsel %vm850_vm3, %v8059_v53, %v8058_v19  ;;  %v1157_v45 = vsel %vm1150_vm7, %v6705_v16, %v7154_v1  ;;  %v1159_v16 = vsel %vm1150_vm7, %v7150_v4, %v7173_v63 }
 0x243   : > { %3384 = vrot.lane.b32.xlu0 %v6890_v58, %s5934_s8  ;;  %v7185_v15 = vpop.permute.xlu1 %1286  ;;  %4956 = vmatprep.mubr.bf16.mxu0 %v6401_v57 }
 0x244   : > { %4927 = vmatpush1.bf16.msra.mxu0 %v409_v29 }
 0x245   : > { %4847 = vmatpush1.bf16.msra.mxu1 %v557_v51  ;;  %v1285_v47 = vpop.permute.xlu0 %1284  ;;  %4928 = vmatprep.subr.bf16.mxu0 %v560_v38  ;;  %v8060_v51 = vld [vmem:[#allocation37_spill] sm:$0xff] }
 0x246   : > { %4848 = vmatprep.subr.bf16.mxu1 %v708_v6  ;;  %3390 = vrot.lane.b32.xlu1 %v7105_v61, %s5934_s8  ;;  %v1008_v38 = vsel %vm1000_vm4, %v8061_v22, %v8060_v51  ;;  %v8062_v6 = vld [vmem:[#allocation38_spill] sm:$0xff]  ;;  %v1307_v53 = vsel %vm1300_vm9, %v6749_v50, %v1285_v47 }
 0x247   : > { %3388 = vrot.lane.b32.xlu0 %v7113_v24, %s5934_s8  ;;  %v7204_v41 = vpop.permute.xlu1 %1290 }
 0x248   : > { %4929 = vmatpush1.bf16.msra.mxu0 %v559_v49  ;;  %v8063_v49 = vld [vmem:[#allocation36_spill] sm:$0xff] }
 0x249   : > { %4849 = vmatpush1.bf16.msra.mxu1 %v707_v35  ;;  %v1289_v5 = vpop.permute.xlu0 %1288  ;;  %4930 = vmatprep.subr.bf16.mxu0 %v710_v39  ;;  %v1010_v35 = vsel %vm1000_vm4, %v8063_v49, %v8062_v6  ;;  %v1158_v39 = vsel %vm1150_vm7, %v7154_v1, %v7150_v4  ;;  %v1009_v3 = vsel %vm1000_vm4, %v8060_v51, %v8063_v49 }
 0x24a   : > { %4850 = vmatprep.subr.bf16.mxu1 %v858_v17  ;;  %3536 = vrot.lane.b32.xlu1 %v6881_v30, %s5936_s10  ;;  %v1160_v17 = vsel %vm1150_vm7, %v7173_v63, %v7164_v52  ;;  %v1309_v4 = vsel %vm1300_vm9, %v7185_v15, %v1289_v5 }
 0x24b   : > { %3534 = vrot.lane.b32.xlu0 %v6890_v58, %s5936_s10  ;;  %v1437_v23 = vpop.permute.xlu1 %1436 }
 0x24c   : > { %4931 = vmatpush1.bf16.msra.mxu0 %v709_v9 }
 0x24d   : > { %4851 = vmatpush1.bf16.msra.mxu1 %v857_v60  ;;  %v1435_v29 = vpop.permute.xlu0 %1434  ;;  %4932 = vmatprep.subr.bf16.mxu0 %v860_v2  ;;  %v1308_v60 = vsel %vm1300_vm9, %v1285_v47, %v7185_v15  ;;  %v1310_v2 = vsel %vm1300_vm9, %v1289_v5, %v7204_v41 }
 0x24e   : > { %4852 = vmatprep.subr.bf16.mxu1 %v1008_v38  ;;  %3540 = vrot.lane.b32.xlu1 %v7105_v61, %s5936_s10  ;;  %v1458_v22 = vsel %vm1450_vm11, %v1435_v29, %v1437_v23  ;;  %v1457_v63 = vsel %vm1450_vm11, %v6783_v40, %v1435_v29 }
 0x24f   : > { %3538 = vrot.lane.b32.xlu0 %v7113_v24, %s5936_s10  ;;  %v7238_v32 = vpop.permute.xlu1 %1440 }
 0x250   : > { %4933 = vmatpush1.bf16.msra.mxu0 %v859_v25 }
 0x251   : > { %4853 = vmatpush1.bf16.msra.mxu1 %v1007_v33  ;;  %v1439_v31 = vpop.permute.xlu0 %1438  ;;  %4934 = vmatprep.subr.bf16.mxu0 %v1010_v35 }
 0x252   : > { %4854 = vmatprep.subr.bf16.mxu1 %v1158_v39  ;;  %3686 = vrot.lane.b32.xlu1 %v6881_v30, %s5938_s16  ;;  %v1460_v47 = vsel %vm1450_vm11, %v1439_v31, %v7238_v32  ;;  %v1459_v15 = vsel %vm1450_vm11, %v1437_v23, %v1439_v31 }
 0x253   : > { %3684 = vrot.lane.b32.xlu0 %v6890_v58, %s5938_s16  ;;  %v1587_v44 = vpop.permute.xlu1 %1586 }
 0x254   : > { %4935 = vmatpush1.bf16.msra.mxu0 %v1009_v3  ;;  %v7316_v3 = vld [vmem:[%s5990_s19 + $0x28] ss:$68 sps:$4 sm:$0xff]  }
 0x255   : > { %4855 = vmatpush1.bf16.msra.mxu1 %v1157_v45  ;;  %v1585_v9 = vpop.permute.xlu0 %1584  ;;  %4936 = vmatprep.subr.bf16.mxu0 %v1160_v17  ;;  %v5890_v45 = vld [vmem:[%s5990_s19 + $0x20] sm:$0xff] }
 0x256   : > { %4856 = vmatprep.subr.bf16.mxu1 %v1308_v60  ;;  %3690 = vrot.lane.b32.xlu1 %v7105_v61, %s5938_s16  ;;  %v1608_v25 = vsel %vm1600_vm13, %v1585_v9, %v1587_v44  ;;  %v1607_v40 = vsel %vm1600_vm13, %v6814_v54, %v1585_v9  ;;  %v5891_v17 = vld [vmem:[%s5990_s19 + $0x64] sm:$0xff] }
 0x257   : > { %3688 = vrot.lane.b32.xlu0 %v7113_v24, %s5938_s16  ;;  %v7271_v1 = vpop.permute.xlu1 %1590  ;;  %v5668_v9 = vcombine.high %v5890_v45, %v5891_v17 }
 0x258   : > { %4937 = vmatpush1.bf16.msra.mxu0 %v1159_v16 }
 0x259   : > { %4857 = vmatpush1.bf16.msra.mxu1 %v1307_v53  ;;  %v1589_v51 = vpop.permute.xlu0 %1588  ;;  %4938 = vmatprep.subr.bf16.mxu0 %v1310_v2  ;;  %v7332_v2 = vld [vmem:[%s5990_s19 + $0x2c] ss:$68 sps:$4 sm:$0xff]  }
 0x25a   : > { %4858 = vmatprep.subr.bf16.mxu1 %v1458_v22  ;;  %3836 = vrot.lane.b32.xlu1 %v6881_v30, %s7997_s18  ;;  %v1610_v29 = vsel %vm1600_vm13, %v1589_v51, %v7271_v1  ;;  %v1609_v23 = vsel %vm1600_vm13, %v1587_v44, %v1589_v51 }
 0x25b   : > { %3834 = vrot.lane.b32.xlu0 %v6890_v58, %s7997_s18  ;;  %v1737_v50 = vpop.permute.xlu1 %1736 }
 0x25c   : > { %4939 = vmatpush1.bf16.msra.mxu0 %v1309_v4 }
 0x25d   : > { %4859 = vmatpush1.bf16.msra.mxu1 %v1457_v63  ;;  %v1735_v38 = vpop.permute.xlu0 %1734  ;;  %4940 = vmatprep.subr.bf16.mxu0 %v1460_v47 }
 0x25e   : > { %4860 = vmatprep.subr.bf16.mxu1 %v1608_v25  ;;  %3840 = vrot.lane.b32.xlu1 %v7105_v61, %s7997_s18  ;;  %v1758_v49 = vsel %vm1750_vm15, %v1735_v38, %v1737_v50  ;;  %v1757_v35 = vsel %vm1750_vm15, %v6838_v14, %v1735_v38  ;;  %v5854_v25 = vld [vmem:[%s5990_s19 + $0x38] ss:$68 sps:$4 sm:$0xff]  }
 0x25f   : > { %3838 = vrot.lane.b32.xlu0 %v7113_v24, %s7997_s18  ;;  %v7294_v5 = vpop.permute.xlu1 %1740 }
 0x260   : > { %4941 = vmatpush1.bf16.msra.mxu0 %v1459_v15  ;;  %v5892_v15 = vld [vmem:[%s5990_s19 + $0x2c] ss:$68 sps:$4 sm:$0xff]  }
 0x261   : > { %4861 = vmatpush1.bf16.msra.mxu1 %v1607_v40  ;;  %v1739_v33 = vpop.permute.xlu0 %1738  ;;  %4942 = vmatprep.subr.bf16.mxu0 %v1610_v29  ;;  %v7353_v40 = vcombine.high %v7092_v62, %v7095_v12 }
 0x262   : > { %4862 = vmatprep.subr.bf16.mxu1 %v1758_v49  ;;  %3986 = vrot.lane.b32.xlu1 %v6881_v30, %s7998_s22  ;;  %v1760_v31 = vsel %vm1750_vm15, %v1739_v33, %v7294_v5  ;;  %v1759_v14 = vsel %vm1750_vm15, %v1737_v50, %v1739_v33 }
 0x263   : > { %3984 = vrot.lane.b32.xlu0 %v6890_v58, %s7998_s22  ;;  %v1887_v54 = vpop.permute.xlu1 %1886 }
 0x264   : > { %4943 = vmatpush1.bf16.msra.mxu0 %v1609_v23 }
 0x265   : > { %4863 = vmatpush1.bf16.msra.mxu1 %v1757_v35  ;;  %v1885_v39 = vpop.permute.xlu0 %1884  ;;  %4944 = vmatprep.subr.bf16.mxu0 %v1760_v31  ;;  %v5856_v35 = vld [vmem:[%s5990_s19 + $0x38] ss:$68 sps:$4 sm:$0xff]  }
 0x266   : > { %3990 = vrot.lane.b32.xlu1 %v7105_v61, %s7998_s22  ;;  %v1908_v30 = vsel %vm8064_vm5, %v1885_v39, %v1887_v54  ;;  %v1907_v58 = vsel %vm8065_vm6, %v6858_v18, %v1885_v39  ;;  %vm8069_vm5 = vmmov %vm8068_vm12 }
 0x267   : > { %3988 = vrot.lane.b32.xlu0 %v7113_v24, %s7998_s22  ;;  %4864 = vmatprep.subr.bf16.mxu1 %v1908_v30  ;;  %v7321_v44 = vpop.permute.xlu1 %1890  ;;  %vm8071_vm6 = vmmov %vm8069_vm5 }
 0x268   : > { %4945 = vmatpush1.bf16.msra.mxu0 %v1759_v14 }
 0x269   : > { %4865 = vmatpush1.bf16.msra.mxu1 %v1907_v58  ;;  %v1889_v60 = vpop.permute.xlu0 %1888 }
 0x26a   : > { %4136 = vrot.lane.b32.xlu1 %v7316_v3, %s5944_s24  ;;  %v1910_v18 = vsel %vm8066_vm8, %v1889_v60, %v7321_v44  ;;  %v1909_v16 = vsel %vm8067_vm10, %v1887_v54, %v1889_v60  ;;  %vm8072_vm8 = vmmov %vm8069_vm5  ;;  %vm8073_vm10 = vcmask 809984  }
 0x26b   : > { %4134 = vrot.lane.b32.xlu0 %v5668_v9, %s5944_s24  ;;  %4946 = vmatprep.subr.bf16.mxu0 %v1910_v18  ;;  %v2037_v53 = vpop.permute.xlu1 %2036  ;;  %v5857_v9 = vld [vmem:[%s5990_s19 + $0x38] ss:$68 sps:$4 sm:$0xff]  }
 0x26c   : > { %4947 = vmatpush1.bf16.msra.mxu0 %v1909_v16 }
 0x26d   : > { %v2035_v51 = vpop.permute.xlu0 %2034 }
 0x26e   : > { %4140 = vrot.lane.b32.xlu1 %v7105_v61, %s5944_s24  ;;  %v2058_v22 = vsel %vm8068_vm12, %v2035_v51, %v2037_v53  ;;  %v2057_v4 = vsel %vm8069_vm5, %v6876_v26, %v2035_v51  ;;  %vm8074_vm12 = vmmov %vm8073_vm10 }
 0x26f   : > { %4138 = vrot.lane.b32.xlu0 %v7332_v2, %s5944_s24  ;;  %4866 = vmatprep.subr.bf16.mxu1 %v2058_v22  ;;  %v7341_v50 = vpop.permute.xlu1 %2040  ;;  %vm8075_vm5 = vmmov %vm8073_vm10 }
 0x270   : > { %4867 = vmatpush1.bf16.msra.mxu1 %v2057_v4 }
 0x271   : > { %v2039_v63 = vpop.permute.xlu0 %2038 }
 0x272   : > { %994 = vrot.lane.b32.xlu1 %v7105_v61, %s8070_s23  ;;  %v2060_v47 = vsel %vm8071_vm6, %v2039_v63, %v7341_v50  ;;  %v2059_v38 = vsel %vm8072_vm8, %v2037_v53, %v2039_v63  ;;  %vm8076_vm6 = vmmov %vm8075_vm5  ;;  %vm8077_vm8 = vcmask 801792   ;;  %v5858_v63 = vld [vmem:[%s5990_s19 + $0x38] ss:$68 sps:$4 sm:$0xff]  }
 0x273   : > { %992 = vrot.lane.b32.xlu0 %v5892_v15, %s8070_s23  ;;  %4948 = vmatprep.subr.bf16.mxu0 %v2060_v47  ;;  %v2187_v26 = vpop.permute.xlu1 %2186  ;;  %v7418_v15 = vld [vmem:[%s5990_s19 + $0x30] ss:$68 sps:$4 sm:$0xff]  }
 0x274   : > { %4949 = vmatpush1.bf16.msra.mxu0 %v2059_v38 }
 0x275   : > { %v2185_v29 = vpop.permute.xlu0 %2184 }
 0x276   : > { %998 = vrot.lane.b32.xlu1 %v5854_v25, %s8070_s23  ;;  %v2208_v33 = vsel %vm8073_vm10, %v2185_v29, %v2187_v26  ;;  %v2207_v49 = vsel %vm8074_vm12, %v6899_v7, %v2185_v29  ;;  %vm8078_vm10 = vmmov %vm8077_vm8  ;;  %v7411_v25 = vld [vmem:[%s5990_s19 + $0x34] ss:$68 sps:$4 sm:$0xff]  }
 0x277   : > { %996 = vrot.lane.b32.xlu0 %v7353_v40, %s8070_s23  ;;  %4868 = vmatprep.subr.bf16.mxu1 %v2208_v33  ;;  %v7361_v23 = vpop.permute.xlu1 %2190  ;;  %vm8079_vm12 = vmmov %vm8077_vm8  ;;  %v5862_v33 = vld [vmem:[%s5990_s19 + $0x3c] ss:$68 sps:$4 sm:$0xff]  }
 0x278   : > { %4869 = vmatpush1.bf16.msra.mxu1 %v2207_v49 }
 0x279   : > { %v2189_v54 = vpop.permute.xlu0 %2188 }
 0x27a   : > { %1144 = vrot.lane.b32.xlu1 %v7105_v61, %s5925_s26  ;;  %v2210_v62 = vsel %vm8075_vm5, %v2189_v54, %v7361_v23  ;;  %v2209_v12 = vsel %vm8076_vm6, %v2187_v26, %v2189_v54  ;;  %vm8080_vm5 = vmmov %vm8077_vm8  ;;  %vm8081_vm6 = vcmask 719872   ;;  %v7432_v54 = vld [vmem:[%s5990_s19 + $0x38] ss:$68 sps:$4 sm:$0xff]  }
 0x27b   : > { %1142 = vrot.lane.b32.xlu0 %v7113_v24, %s5925_s26  ;;  %4950 = vmatprep.subr.bf16.mxu0 %v2210_v62  ;;  %v2337_v7 = vpop.permute.xlu1 %2336 }
 0x27c   : > { %4951 = vmatpush1.bf16.msra.mxu0 %v2209_v12 }
 0x27d   : > { %v2335_v31 = vpop.permute.xlu0 %2334 }
 0x27e   : > { %1148 = vrot.lane.b32.xlu1 %v5856_v35, %s5925_s26  ;;  %v2358_v39 = vsel %vm8077_vm8, %v2335_v31, %v2337_v7  ;;  %v2357_v30 = vsel %vm8078_vm10, %v6915_v43, %v2335_v31  ;;  %vm8082_vm8 = vmmov %vm8081_vm6 }
 0x27f   : > { %1146 = vrot.lane.b32.xlu0 %v7353_v40, %s5925_s26  ;;  %4870 = vmatprep.subr.bf16.mxu1 %v2358_v39  ;;  %v7377_v58 = vpop.permute.xlu1 %2340  ;;  %vm8083_vm10 = vmmov %vm8081_vm6  ;;  %s5730_s26 = smul.u32 112, %s8210_s12 }
 0x280   : > { %4871 = vmatpush1.bf16.msra.mxu1 %v2357_v30 }
 0x281   : > { %v2339_v14 = vpop.permute.xlu0 %2338 }
 0x282   : > { %1294 = vrot.lane.b32.xlu1 %v7105_v61, %s5927_s28  ;;  %v2360_v45 = vsel %vm8079_vm12, %v2339_v14, %v7377_v58  ;;  %v2359_v17 = vsel %vm8080_vm5, %v2337_v7, %v2339_v14  ;;  %vm8084_vm12 = vmmov %vm8081_vm6  ;;  %vm8085_vm5 = vcmask 392192   ;;  %v5864_v14 = vld [vmem:[%s5990_s19 + $0x3c] ss:$68 sps:$4 sm:$0xff]  }
 0x283   : > { %1292 = vrot.lane.b32.xlu0 %v7113_v24, %s5927_s28  ;;  %4952 = vmatprep.subr.bf16.mxu0 %v2360_v45  ;;  %v2487_v43 = vpop.permute.xlu1 %2486 }
 0x284   : > { %4953 = vmatpush1.bf16.msra.mxu0 %v2359_v17 }
 0x285   : > { %v2485_v60 = vpop.permute.xlu0 %2484 }
 0x286   : > { %1298 = vrot.lane.b32.xlu1 %v5857_v9, %s5927_s28  ;;  %v2508_v18 = vsel %vm8081_vm6, %v2485_v60, %v2487_v43  ;;  %v2507_v16 = vsel %vm8082_vm8, %v6934_v8, %v2485_v60  ;;  %vm8086_vm6 = vcmask 711680  }
 0x287   : > { %1296 = vrot.lane.b32.xlu0 %v7353_v40, %s5927_s28  ;;  %4872 = vmatprep.subr.bf16.mxu1 %v2508_v18  ;;  %v7393_v53 = vpop.permute.xlu1 %2490  ;;  %vm8087_vm8 = vmmov %vm8086_vm6 }
 0x288   : > { %4873 = vmatpush1.bf16.msra.mxu1 %v2507_v16 }
 0x289   : > { %v2489_v51 = vpop.permute.xlu0 %2488 }
 0x28a   : > { %1444 = vrot.lane.b32.xlu1 %v7105_v61, %s5929_s30  ;;  %v2510_v22 = vsel %vm8083_vm10, %v2489_v51, %v7393_v53  ;;  %v2509_v4 = vsel %vm8084_vm12, %v2487_v43, %v2489_v51  ;;  %vm8088_vm10 = vmmov %vm8085_vm5  ;;  %v5865_v51 = vld [vmem:[%s5990_s19 + $0x3c] ss:$68 sps:$4 sm:$0xff]  }
 0x28b   : > { %1442 = vrot.lane.b32.xlu0 %v7113_v24, %s5929_s30  ;;  %4954 = vmatprep.subr.bf16.mxu0 %v2510_v22  ;;  %v2637_v8 = vpop.permute.xlu1 %2636  ;;  %vm8089_vm12 = vmmov %vm8086_vm6  ;;  %v7466_v22 = vpop.f32.mrb[0].mxu1 }
 0x28c   : > { %4955 = vmatpush1.bf16.msra.mxu0 %v2509_v4  ;;  %4875 = vmatmul.mubr.bf16.vlgmr.msra.gmra.mrb[8].mxu1 %v6682_v37  ;;  %v5945_v4 = vmov 0  }
 0x28d   : > { %v2635_v47 = vpop.permute.xlu0 %2634  ;;  %5683 = vmatprep.mubr.msk.bf16.mxu1 %vm8085_vm5, %v6405_v56  ;;  %vm8090_vm5 = vmmov %vm8086_vm6  ;;  %5782 = vset.pattern.permute.xlu0 %v5945_v4 }
 0x28e   : > { %1448 = vrot.lane.b32.xlu1 %v5858_v63, %s5929_s30  ;;  %v2658_v61 = vsel %vm8086_vm6, %v2635_v47, %v2637_v8  ;;  %v2657_v38 = vsel %vm8087_vm8, %v6962_v10, %v2635_v47  ;;  %vm8091_vm6 = vcmask 703488   ;;  %v7468_v63 = vpop.f32.mrb[0].mxu0 }
 0x28f   : > { %1446 = vrot.lane.b32.xlu0 %v7353_v40, %s5929_s30  ;;  %4883 = vmatprep.subr.bf16.mxu1 %v2658_v61  ;;  %v7415_v24 = vpop.permute.xlu1 %2640  ;;  %vm8092_vm8 = vmmov %vm8091_vm6  ;;  %v7470_v47 = vpop.f32.mrb[1].mxu0 }
 0x290   : > { %4884 = vmatpush1.bf16.msra.mxu1 %v2657_v38  ;;  %4957 = vmatmul.mubr.bf16.vlgmr.msra.gmra.mrb[8].mxu0 %v6682_v37 }
 0x291   : > { %v2639_v26 = vpop.permute.xlu0 %2638  ;;  %5684 = vmatprep.mubr.msk.bf16.mxu0 %vm8088_vm10, %v6405_v56  ;;  %vm8093_vm10 = vmmov %vm8091_vm6 }
 0x292   : > { %1594 = vrot.lane.b32.xlu1 %v7411_v25, %s5931_s5  ;;  %v2660_v10 = vsel %vm8089_vm12, %v2639_v26, %v7415_v24  ;;  %v2659_v29 = vsel %vm8090_vm5, %v2637_v8, %v2639_v26  ;;  %vm8094_vm12 = vmmov %vm8091_vm6  ;;  %vm8095_vm5 = vcmask 785408   ;;  %v7476_v26 = vpop.f32.mrb[1].mxu1 }
 0x293   : > { %1592 = vrot.lane.b32.xlu0 %v7418_v15, %s5931_s5  ;;  %4965 = vmatprep.subr.bf16.mxu0 %v2660_v10  ;;  %v2787_v49 = vpop.permute.xlu1 %2786  ;;  %v4675_v10 = vpop.f32.mrb[2].mxu0 }
 0x294   : > { %4966 = vmatpush1.bf16.msra.mxu0 %v2659_v29  ;;  %v5868_v10 = vld [vmem:[%s5990_s19 + $0x3c] ss:$68 sps:$4 sm:$0xff]  }
 0x295   : > { %v2785_v62 = vpop.permute.xlu0 %2784 }
 0x296   : > { %1598 = vrot.lane.b32.xlu1 %v5862_v33, %s5931_s5  ;;  %v2808_v12 = vsel %vm8091_vm6, %v2785_v62, %v2787_v49  ;;  %v2807_v35 = vsel %vm8092_vm8, %v6981_v21, %v2785_v62  ;;  %vm8096_vm6 = vmmov %vm8095_vm5  ;;  %v4634_v33 = vpop.f32.mrb[2].mxu1  ;;  %v4676_v62 = vpop.f32.mrb[3].mxu0 }
 0x297   : > { %1596 = vrot.lane.b32.xlu0 %v7432_v54, %s5931_s5  ;;  %4885 = vmatprep.subr.bf16.mxu1 %v2808_v12  ;;  %v7440_v7 = vpop.permute.xlu1 %2790  ;;  %vm8097_vm8 = vmmov %vm8095_vm5 }
 0x298   : > { %4886 = vmatpush1.bf16.msra.mxu1 %v2807_v35 }
 0x299   : > { %v2789_v31 = vpop.permute.xlu0 %2788 }
 0x29a   : > { %1744 = vrot.lane.b32.xlu1 %v7411_v25, %s5933_s7  ;;  %v2810_v39 = vsel %vm8093_vm10, %v2789_v31, %v7440_v7  ;;  %v2809_v30 = vsel %vm8094_vm12, %v2787_v49, %v2789_v31  ;;  %vm8098_vm10 = vmmov %vm8095_vm5  ;;  %vm8099_vm12 = vcmask 777216   ;;  %v4635_v49 = vpop.f32.mrb[3].mxu1  ;;  %v5866_v31 = vld [vmem:[%s5990_s19 + $0x3c] ss:$68 sps:$4 sm:$0xff]  }
 0x29b   : > { %1742 = vrot.lane.b32.xlu0 %v7418_v15, %s5933_s7  ;;  %4967 = vmatprep.subr.bf16.mxu0 %v2810_v39  ;;  %v2937_v21 = vpop.permute.xlu1 %2936 }
 0x29c   : > { %4968 = vmatpush1.bf16.msra.mxu0 %v2809_v30 }
 0x29d   : > { %v2935_v45 = vpop.permute.xlu0 %2934 }
 0x29e   : > { %1748 = vrot.lane.b32.xlu1 %v5864_v14, %s5933_s7  ;;  %v2958_v17 = vsel %vm8095_vm5, %v2935_v45, %v2937_v21  ;;  %v2957_v9 = vsel %vm8096_vm6, %v6997_v34, %v2935_v45  ;;  %vm8100_vm5 = vmmov %vm8099_vm12 }
 0x29f   : > { %1746 = vrot.lane.b32.xlu0 %v7432_v54, %s5933_s7  ;;  %4887 = vmatprep.subr.bf16.mxu1 %v2958_v17  ;;  %v7456_v43 = vpop.permute.xlu1 %2940  ;;  %vm8101_vm6 = vmmov %vm8100_vm5 }
 0x2a0   : > { %4888 = vmatpush1.bf16.msra.mxu1 %v2957_v9 }
 0x2a1   : > { %v2939_v60 = vpop.permute.xlu0 %2938 }
 0x2a2   : > { %1894 = vrot.lane.b32.xlu1 %v7411_v25, %s5935_s9  ;;  %v2960_v18 = vsel %vm8097_vm8, %v2939_v60, %v7456_v43  ;;  %v2959_v16 = vsel %vm8098_vm10, %v2937_v21, %v2939_v60  ;;  %vm8102_vm8 = vmmov %vm8100_vm5  ;;  %vm8103_vm10 = vcmask 769024  }
 0x2a3   : > { %1892 = vrot.lane.b32.xlu0 %v7418_v15, %s5935_s9  ;;  %4969 = vmatprep.subr.bf16.mxu0 %v2960_v18  ;;  %v3087_v34 = vpop.permute.xlu1 %3086  ;;  %v5867_v18 = vld [vmem:[%s5990_s19 + $0x3c] ss:$68 sps:$4 sm:$0xff]  }
 0x2a4   : > { %4970 = vmatpush1.bf16.msra.mxu0 %v2959_v16 }
 0x2a5   : > { %v3085_v8 = vpop.permute.xlu0 %3084 }
 0x2a6   : > { %1898 = vrot.lane.b32.xlu1 %v5865_v51, %s5935_s9  ;;  %v3108_v61 = vsel %vm8099_vm12, %v3085_v8, %v3087_v34  ;;  %v3107_v38 = vsel %vm8100_vm5, %v7013_v48, %v3085_v8  ;;  %vm8104_vm12 = vmmov %vm8103_vm10 }
 0x2a7   : > { %1896 = vrot.lane.b32.xlu0 %v7432_v54, %s5935_s9  ;;  %4889 = vmatprep.subr.bf16.mxu1 %v3108_v61  ;;  %v7480_v29 = vpop.permute.xlu1 %3090  ;;  %vm8105_vm5 = vmmov %vm8103_vm10 }
 0x2a8   : > { %4890 = vmatpush1.bf16.msra.mxu1 %v3107_v38 }
 0x2a9   : > { %v3089_v12 = vpop.permute.xlu0 %3088 }
 0x2aa   : > { %2044 = vrot.lane.b32.xlu1 %v7411_v25, %s5937_s11  ;;  %v3110_v48 = vsel %vm8101_vm6, %v3089_v12, %v7480_v29  ;;  %v3109_v35 = vsel %vm8102_vm8, %v3087_v34, %v3089_v12  ;;  %vm8106_vm6 = vmmov %vm8105_vm5  ;;  %vm8107_vm8 = vcmask 687104  }
 0x2ab   : > { %2042 = vrot.lane.b32.xlu0 %v7418_v15, %s5937_s11  ;;  %4971 = vmatprep.subr.bf16.mxu0 %v3110_v48  ;;  %v3237_v39 = vpop.permute.xlu1 %3236 }
 0x2ac   : > { %4972 = vmatpush1.bf16.msra.mxu0 %v3109_v35 }
 0x2ad   : > { %v3235_v30 = vpop.permute.xlu0 %3234 }
 0x2ae   : > { %2048 = vrot.lane.b32.xlu1 %v5866_v31, %s5937_s11  ;;  %v3258_v14 = vsel %vm8103_vm10, %v3235_v30, %v3237_v39  ;;  %v3257_v21 = vsel %vm8104_vm12, %v7029_v28, %v3235_v30  ;;  %vm8108_vm10 = vmmov %vm8107_vm8 }
 0x2af   : > { %2046 = vrot.lane.b32.xlu0 %v7432_v54, %s5937_s11  ;;  %4891 = vmatprep.subr.bf16.mxu1 %v3258_v14  ;;  %v7496_v45 = vpop.permute.xlu1 %3240  ;;  %vm8109_vm12 = vmmov %vm8107_vm8 }
 0x2b0   : > { %4892 = vmatpush1.bf16.msra.mxu1 %v3257_v21 }
 0x2b1   : > { %v3239_v17 = vpop.permute.xlu0 %3238 }
 0x2b2   : > { %2194 = vrot.lane.b32.xlu1 %v7411_v25, %s5939_s17  ;;  %v3260_v9 = vsel %vm8105_vm5, %v3239_v17, %v7496_v45  ;;  %v3259_v60 = vsel %vm8106_vm6, %v3237_v39, %v3239_v17  ;;  %vm8110_vm5 = vmmov %vm8107_vm8  ;;  %vm8111_vm6 = vcmask 678912   ;;  %v5869_v39 = vld [vmem:[%s5990_s19 + $0x3c] ss:$68 sps:$4 sm:$0xff]  }
 0x2b3   : > { %2192 = vrot.lane.b32.xlu0 %v7418_v15, %s5939_s17  ;;  %4973 = vmatprep.subr.bf16.mxu0 %v3260_v9 }
 0x2b4   : > { %4974 = vmatpush1.bf16.msra.mxu0 %v3259_v60  ;;  %v3387_v28 = vpop.permute.xlu1 %3386 }
 0x2b5   : > { %v3385_v16 = vpop.permute.xlu0 %3384 }
 0x2b6   : > { %2198 = vrot.lane.b32.xlu1 %v5867_v18, %s5939_s17  ;;  %v3408_v51 = vsel %vm8107_vm8, %v3385_v16, %v3387_v28  ;;  %v3407_v34 = vsel %vm8108_vm10, %v7045_v42, %v3385_v16  ;;  %vm8112_vm8 = vmmov %vm8111_vm6 }
 0x2b7   : > { %2196 = vrot.lane.b32.xlu0 %v7432_v54, %s5939_s17  ;;  %4893 = vmatprep.subr.bf16.mxu1 %v3408_v51  ;;  %vm8113_vm10 = vmmov %vm8111_vm6 }
 0x2b8   : > { %4894 = vmatpush1.bf16.msra.mxu1 %v3407_v34  ;;  %v7512_v4 = vpop.permute.xlu1 %3390 }
 0x2b9   : > { %v3389_v8 = vpop.permute.xlu0 %3388 }
 0x2ba   : > { %2344 = vrot.lane.b32.xlu1 %v7411_v25, %s5941_s20  ;;  %v3410_v61 = vsel %vm8109_vm12, %v3389_v8, %v7512_v4  ;;  %v3409_v38 = vsel %vm8110_vm5, %v3387_v28, %v3389_v8  ;;  %vm8114_vm12 = vmmov %vm8111_vm6  ;;  %vm8115_vm5 = vcmask 670720   ;;  %v5870_v28 = vld [vmem:[%s5990_s19 + $0x3c] ss:$68 sps:$4 sm:$0xff]  }
 0x2bb   : > { %2342 = vrot.lane.b32.xlu0 %v7418_v15, %s5941_s20  ;;  %4975 = vmatprep.subr.bf16.mxu0 %v3410_v61 }
 0x2bc   : > { %4976 = vmatpush1.bf16.msra.mxu0 %v3409_v38  ;;  %v3537_v42 = vpop.permute.xlu1 %3536 }
 0x2bd   : > { %v3535_v33 = vpop.permute.xlu0 %3534 }
 0x2be   : > { %2348 = vrot.lane.b32.xlu1 %v5868_v10, %s5941_s20  ;;  %v3558_v49 = vsel %vm8111_vm6, %v3535_v33, %v3537_v42  ;;  %v3557_v62 = vsel %vm8112_vm8, %v7061_v11, %v3535_v33  ;;  %vm8116_vm6 = vmmov %vm8115_vm5 }
 0x2bf   : > { %2346 = vrot.lane.b32.xlu0 %v7432_v54, %s5941_s20  ;;  %4895 = vmatprep.subr.bf16.mxu1 %v3558_v49  ;;  %vm8117_vm8 = vmmov %vm8115_vm5 }
 0x2c0   : > { %4896 = vmatpush1.bf16.msra.mxu1 %v3557_v62  ;;  %v7528_v12 = vpop.permute.xlu1 %3540  ;;  %v7575_v62 = vld [vmem:[%s5990_s19 + $0x38] ss:$68 sps:$4 sm:$0xff]  }
 0x2c1   : > { %v3539_v48 = vpop.permute.xlu0 %3538 }
 0x2c2   : > { %2494 = vrot.lane.b32.xlu1 %v7411_v25, %s5943_s21  ;;  %v3560_v35 = vsel %vm8113_vm10, %v3539_v48, %v7528_v12  ;;  %v3559_v31 = vsel %vm8114_vm12, %v3537_v42, %v3539_v48  ;;  %vm8118_vm10 = vmmov %vm8115_vm5  ;;  %vm8119_vm12 = vcmask 588800   ;;  %v5871_v42 = vld [vmem:[%s5990_s19 + $0x3c] ss:$68 sps:$4 sm:$0xff]  }
 0x2c3   : > { %2492 = vrot.lane.b32.xlu0 %v7418_v15, %s5943_s21  ;;  %4977 = vmatprep.subr.bf16.mxu0 %v3560_v35 }
 0x2c4   : > { %4978 = vmatpush1.bf16.msra.mxu0 %v3559_v31  ;;  %v3687_v11 = vpop.permute.xlu1 %3686  ;;  %v5874_v31 = vld [vmem:[%s5990_s19 + $0x40] ss:$68 sps:$4 sm:$0xff]  }
 0x2c5   : > { %v3685_v30 = vpop.permute.xlu0 %3684 }
 0x2c6   : > { %2498 = vrot.lane.b32.xlu1 %v5869_v39, %s5943_s21  ;;  %v3708_v14 = vsel %vm8115_vm5, %v3685_v30, %v3687_v11  ;;  %v3707_v21 = vsel %vm8116_vm6, %v7077_v59, %v3685_v30  ;;  %vm8120_vm5 = vmmov %vm8119_vm12 }
 0x2c7   : > { %2496 = vrot.lane.b32.xlu0 %v7432_v54, %s5943_s21  ;;  %4897 = vmatprep.subr.bf16.mxu1 %v3708_v14  ;;  %vm8121_vm6 = vmmov %vm8120_vm5 }
 0x2c8   : > { %4898 = vmatpush1.bf16.msra.mxu1 %v3707_v21  ;;  %v7544_v17 = vpop.permute.xlu1 %3690 }
 0x2c9   : > { %v3689_v9 = vpop.permute.xlu0 %3688 }
 0x2ca   : > { %2644 = vrot.lane.b32.xlu1 %v7411_v25, %s5924_s25  ;;  %v3710_v60 = vsel %vm8117_vm8, %v3689_v9, %v7544_v17  ;;  %v3709_v18 = vsel %vm8118_vm10, %v3687_v11, %v3689_v9  ;;  %vm8122_vm8 = vmmov %vm8120_vm5  ;;  %vm8123_vm10 = vcmask 580608  }
 0x2cb   : > { %2642 = vrot.lane.b32.xlu0 %v7418_v15, %s5924_s25  ;;  %4979 = vmatprep.subr.bf16.mxu0 %v3710_v60  ;;  %v5879_v60 = vld [vmem:[%s5990_s19 + $0x34] ss:$68 sps:$4 sm:$0xff]  }
 0x2cc   : > { %4980 = vmatpush1.bf16.msra.mxu0 %v3709_v18  ;;  %v3837_v59 = vpop.permute.xlu1 %3836 }
 0x2cd   : > { %v3835_v16 = vpop.permute.xlu0 %3834 }
 0x2ce   : > { %2648 = vrot.lane.b32.xlu1 %v5870_v28, %s5924_s25  ;;  %v3858_v51 = vsel %vm8119_vm12, %v3835_v16, %v3837_v59  ;;  %v3857_v34 = vsel %vm8120_vm5, %v7099_v0, %v3835_v16  ;;  %vm8124_vm12 = vmmov %vm8123_vm10  ;;  %v5876_v28 = vld [vmem:[%s5990_s19 + $0x40] ss:$68 sps:$4 sm:$0xff]  }
 0x2cf   : > { %2646 = vrot.lane.b32.xlu0 %v7432_v54, %s5924_s25  ;;  %4899 = vmatprep.subr.bf16.mxu1 %v3858_v51  ;;  %vm8125_vm5 = vmmov %vm8123_vm10  ;;  %v8127_v51 = vld [vmem:[#allocation9_spill] sm:$0xff] }
 0x2d0   : > { %4900 = vmatpush1.bf16.msra.mxu1 %v3857_v34  ;;  %v7560_v8 = vpop.permute.xlu1 %3840  ;;  %v8128_v34 = vld [vmem:[#allocation6_spill] sm:$0xff] }
 0x2d1   : > { %v3839_v61 = vpop.permute.xlu0 %3838 }
 0x2d2   : > { %2794 = vrot.lane.b32.xlu1 %v7411_v25, %s5926_s27  ;;  %v3860_v38 = vsel %vm8121_vm6, %v3839_v61, %v7560_v8  ;;  %v3859_v10 = vsel %vm8122_vm8, %v3837_v59, %v3839_v61  ;;  %vm8126_vm6 = vmmov %vm8125_vm5  ;;  %v412_v61 = vsel %vm400_vm0, %v8128_v34, %v8127_v51 }
 0x2d3   : > { %2792 = vrot.lane.b32.xlu0 %v7418_v15, %s5926_s27  ;;  %4981 = vmatprep.subr.bf16.mxu0 %v3860_v38  ;;  %v411_v38 = vsel %vm400_vm0, %v8046_v36, %v8128_v34  ;;  %v5880_v36 = vld [vmem:[%s5990_s19 + $0x40] ss:$68 sps:$4 sm:$0xff]  }
 0x2d4   : > { %4982 = vmatpush1.bf16.msra.mxu0 %v3859_v10  ;;  %v3987_v0 = vpop.permute.xlu1 %3986  ;;  %v8129_v10 = vld [vmem:[#allocation10_spill] sm:$0xff] }
 0x2d5   : > { %v3985_v33 = vpop.permute.xlu0 %3984 }
 0x2d6   : > { %v4007_v49 = vsel %vm8123_vm10, %v7122_v13, %v3985_v33  ;;  %2798 = vrot.lane.b32.xlu1 %v5871_v42, %s5926_s27  ;;  %v4008_v25 = vsel %vm8124_vm12, %v3985_v33, %v3987_v0  ;;  %v8130_v42 = vld [vmem:[#allocation8_spill] sm:$0xff]  ;;  %vm8155_vm12 = vcmask 801792  }
 0x2d7   : > { %2796 = vrot.lane.b32.xlu0 %v7432_v54, %s5926_s27  ;;  %4901 = vmatprep.subr.bf16.mxu1 %v4008_v25  ;;  %v7590_v54 = vld [vmem:[%s5990_s19 + $0x3c] ss:$68 sps:$4 sm:$0xff]   ;;  %v8132_v25 = vld [vmem:[#allocation16_spill] sm:$0xff] }
 0x2d8   : > { %4902 = vmatpush1.bf16.msra.mxu1 %v4007_v49  ;;  %v7579_v15 = vpop.permute.xlu1 %3990  ;;  %v8131_v49 = vld [vmem:[#allocation15_spill] sm:$0xff] }
 0x2d9   : > { %v3989_v48 = vpop.permute.xlu0 %3988 }
 0x2da   : > { %v4009_v35 = vsel %vm8125_vm5, %v3987_v0, %v3989_v48  ;;  %2944 = vrot.lane.b32.xlu1 %v7575_v62, %s5928_s29  ;;  %v4010_v13 = vsel %vm8126_vm6, %v3989_v48, %v7579_v15  ;;  %v414_v0 = vsel %vm400_vm0, %v8130_v42, %v8129_v10  ;;  %v562_v48 = vsel %vm550_vm1, %v8132_v25, %v8131_v49  ;;  %vm8156_vm5 = vmmov %vm8155_vm12 }
 0x2db   : > { %2942 = vrot.lane.b32.xlu0 %v7353_v40, %s5928_s29  ;;  %4983 = vmatprep.subr.bf16.mxu0 %v4010_v13  ;;  %v561_v13 = vsel %vm550_vm1, %v8050_v20, %v8132_v25  ;;  %v8141_v25 = vld [vmem:[#allocation33_spill] sm:$0xff]  ;;  %vm8157_vm6 = vmmov %vm8156_vm5 }
 0x2dc   : > { %4984 = vmatpush1.bf16.msra.mxu0 %v4009_v35  ;;  %v4137_v39 = vpop.permute.xlu1 %4136  ;;  %v413_v35 = vsel %vm400_vm0, %v8127_v51, %v8130_v42  ;;  %v5881_v42 = vld [vmem:[%s5990_s19 + $0x40] ss:$68 sps:$4 sm:$0xff]   ;;  %vm8143_vm0 = vcmask 900096  }
 0x2dd   : > { %v4135_v11 = vpop.permute.xlu0 %4134 }
 0x2de   : > { %v4157_v30 = vsel %vm4150_vm14, %v7139_v27, %v4135_v11  ;;  %2948 = vrot.lane.b32.xlu1 %v5874_v31, %s5928_s29  ;;  %v4158_v14 = vsel %vm4150_vm14, %v4135_v11, %v4137_v39  ;;  %v8134_v11 = vld [vmem:[#allocation18_spill] sm:$0xff] }
 0x2df   : > { %2946 = vrot.lane.b32.xlu0 %v7590_v54, %s5928_s29  ;;  %4903 = vmatprep.subr.bf16.mxu1 %v4158_v14  ;;  %s7860_s29 = scalar_lea.vmem %s7896_s3, %s5730_s26 }
 0x2e0   : > { %4904 = vmatpush1.bf16.msra.mxu1 %v4157_v30  ;;  %v7598_v21 = vpop.permute.xlu1 %4140 }
 0x2e1   : > { %v4139_v9 = vpop.permute.xlu0 %4138  ;;  %5006 = vmatprep.subr.bf16.mxu1 %v7332_v2  ;;  %v5877_v2 = vld [vmem:[%s5990_s19 + $0x30] ss:$68 sps:$4 sm:$0xff]  }
 0x2e2   : > { %v4159_v18 = vsel %vm4150_vm14, %v4137_v39, %v4139_v9  ;;  %3094 = vrot.lane.b32.xlu1 %v7575_v62, %s5930_s4  ;;  %v4160_v27 = vsel %vm4150_vm14, %v4139_v9, %v7598_v21  ;;  %v8133_v39 = vld [vmem:[#allocation17_spill] sm:$0xff] }
 0x2e3   : > { %3092 = vrot.lane.b32.xlu0 %v7353_v40, %s5930_s4  ;;  %4985 = vmatprep.subr.bf16.mxu0 %v4160_v27  ;;  %v564_v30 = vsel %vm550_vm1, %v8134_v11, %v8133_v39  ;;  %v8135_v9 = vld [vmem:[#allocation25_spill] sm:$0xff] }
 0x2e4   : > { %4916 = vmatmul.mubr.bf16.vlgmr.msra.gmra.mrb[8].mxu1 %v6674_v46  ;;  %4986 = vmatpush1.bf16.msra.mxu0 %v4159_v18  ;;  %v7611_v59 = vpop.permute.xlu1 %994 }
 0x2e5   : > { %5007 = vmatpush1.bf16.msra.mxu1 %v7316_v3  ;;  %v993_v16 = vpop.permute.xlu0 %992  ;;  %5088 = vmatprep.subr.bf16.mxu0 %v5879_v60  ;;  %v8136_v60 = vld [vmem:[#allocation22_spill] sm:$0xff] }
 0x2e6   : > { %5008 = vmatprep.subr.bf16.mxu1 %v412_v61  ;;  %3098 = vrot.lane.b32.xlu1 %v5876_v28, %s5930_s4  ;;  %v712_v18 = vsel %vm700_vm2, %v8136_v60, %v8135_v9  ;;  %v711_v20 = vsel %vm700_vm2, %v8054_v55, %v8136_v60  ;;  %v8137_v28 = vld [vmem:[#allocation26_spill] sm:$0xff]  ;;  %v8139_v61 = vld [vmem:[#allocation31_spill] sm:$0xff]  ;;  %v1011_v39 = vsel %vm1000_vm4, %v8062_v6, %v993_v16 }
 0x2e7   : > { %3096 = vrot.lane.b32.xlu0 %v7590_v54, %s5930_s4  ;;  %4998 = vmatmul.mubr.bf16.vlgmr.msra.gmra.mrb[8].mxu0 %v6674_v46 }
 0x2e8   : > { %5089 = vmatpush1.bf16.msra.mxu0 %v5877_v2  ;;  %v999_v3 = vpop.permute.xlu1 %998  ;;  %5038 = vmatprep.mubr.bf16.mxu1 %v6401_v57  ;;  %v8138_v2 = vld [vmem:[#allocation24_spill] sm:$0xff] }
 0x2e9   : > { %5009 = vmatpush1.bf16.msra.mxu1 %v411_v38  ;;  %v997_v33 = vpop.permute.xlu0 %996  ;;  %5090 = vmatprep.subr.bf16.mxu0 %v414_v0  ;;  %v714_v51 = vsel %vm700_vm2, %v8138_v2, %v8137_v28  ;;  %v8140_v38 = vld [vmem:[#allocation32_spill] sm:$0xff]  ;;  %v713_v55 = vsel %vm700_vm2, %v8135_v9, %v8138_v2  ;;  %vm8145_vm2 = vmmov %vm8143_vm0 }
 0x2ea   : > { %5010 = vmatprep.subr.bf16.mxu1 %v562_v48  ;;  %3244 = vrot.lane.b32.xlu1 %v7575_v62, %s5932_s6  ;;  %v862_v10 = vsel %vm850_vm3, %v8140_v38, %v8139_v61  ;;  %v861_v0 = vsel %vm850_vm3, %v8058_v19, %v8140_v38  ;;  %v8142_v48 = vld [vmem:[#allocation34_spill] sm:$0xff] }
 0x2eb   : > { %3242 = vrot.lane.b32.xlu0 %v7353_v40, %s5932_s6  ;;  %5120 = vmatprep.mubr.bf16.mxu0 %v6401_v57  ;;  %v563_v57 = vsel %vm550_vm1, %v8131_v49, %v8134_v11  ;;  %v863_v19 = vsel %vm850_vm3, %v8139_v61, %v8142_v48  ;;  %vm8144_vm1 = vmmov %vm8143_vm0 }
 0x2ec   : > { %5091 = vmatpush1.bf16.msra.mxu0 %v413_v35  ;;  %v1145_v31 = vpop.permute.xlu1 %1144 }
 0x2ed   : > { %5011 = vmatpush1.bf16.msra.mxu1 %v561_v13  ;;  %v1143_v14 = vpop.permute.xlu0 %1142  ;;  %5092 = vmatprep.subr.bf16.mxu0 %v564_v30  ;;  %v1012_v13 = vsel %vm1000_vm4, %v993_v16, %v7611_v59  ;;  %v1014_v30 = vsel %vm1000_vm4, %v997_v33, %v999_v3 }
 0x2ee   : > { %5012 = vmatprep.subr.bf16.mxu1 %v712_v18  ;;  %3248 = vrot.lane.b32.xlu1 %v5880_v36, %s5932_s6  ;;  %v864_v36 = vsel %vm850_vm3, %v8142_v48, %v8141_v25  ;;  %v1162_v60 = vsel %vm1150_vm7, %v1143_v14, %v1145_v31  ;;  %v5882_v18 = vld [vmem:[%s5990_s19 + $0x40] ss:$68 sps:$4 sm:$0xff]   ;;  %v1161_v6 = vsel %vm1150_vm7, %v7164_v52, %v1143_v14  ;;  %vm8146_vm3 = vmmov %vm8143_vm0 }
 0x2ef   : > { %3246 = vrot.lane.b32.xlu0 %v7590_v54, %s5932_s6  ;;  %v5884_v25 = vld [vmem:[%s5990_s19 + $0x40] ss:$68 sps:$4 sm:$0xff]  }
 0x2f0   : > { %5093 = vmatpush1.bf16.msra.mxu0 %v563_v57  ;;  %v1149_v27 = vpop.permute.xlu1 %1148  ;;  %v1013_v57 = vsel %vm1000_vm4, %v7611_v59, %v997_v33  ;;  %vm8147_vm4 = vcmask 818176  }
 0x2f1   : > { %5013 = vmatpush1.bf16.msra.mxu1 %v711_v20  ;;  %v1147_v34 = vpop.permute.xlu0 %1146  ;;  %5094 = vmatprep.subr.bf16.mxu0 %v714_v51 }
 0x2f2   : > { %5014 = vmatprep.subr.bf16.mxu1 %v862_v10  ;;  %3394 = vrot.lane.b32.xlu1 %v7575_v62, %s5934_s8  ;;  %v1164_v3 = vsel %vm1150_vm7, %v1147_v34, %v1149_v27  ;;  %v1163_v59 = vsel %vm1150_vm7, %v1145_v31, %v1147_v34  ;;  %v5883_v31 = vld [vmem:[%s5990_s19 + $0x40] ss:$68 sps:$4 sm:$0xff]   ;;  %vm8148_vm7 = vmmov %vm8147_vm4 }
 0x2f3   : > { %3392 = vrot.lane.b32.xlu0 %v7353_v40, %s5934_s8 }
 0x2f4   : > { %5095 = vmatpush1.bf16.msra.mxu0 %v713_v55  ;;  %v1295_v49 = vpop.permute.xlu1 %1294 }
 0x2f5   : > { %5015 = vmatpush1.bf16.msra.mxu1 %v861_v0  ;;  %v1293_v35 = vpop.permute.xlu0 %1292  ;;  %5096 = vmatprep.subr.bf16.mxu0 %v864_v36 }
 0x2f6   : > { %5016 = vmatprep.subr.bf16.mxu1 %v1012_v13  ;;  %3398 = vrot.lane.b32.xlu1 %v5881_v42, %s5934_s8  ;;  %v1312_v28 = vsel %vm1300_vm9, %v1293_v35, %v1295_v49  ;;  %v1311_v52 = vsel %vm1300_vm9, %v7204_v41, %v1293_v35 }
 0x2f7   : > { %3396 = vrot.lane.b32.xlu0 %v7590_v54, %s5934_s8 }
 0x2f8   : > { %5097 = vmatpush1.bf16.msra.mxu0 %v863_v19  ;;  %v1299_v11 = vpop.permute.xlu1 %1298  ;;  %v5893_v19 = vld [vmem:[%s5990_s19 + $0x30] sm:$0xff] }
 0x2f9   : > { %5017 = vmatpush1.bf16.msra.mxu1 %v1011_v39  ;;  %v1297_v9 = vpop.permute.xlu0 %1296  ;;  %5098 = vmatprep.subr.bf16.mxu0 %v1014_v30  ;;  %v5894_v39 = vld [vmem:[%s5990_s19 + $0x74] sm:$0xff] }
 0x2fa   : > { %5018 = vmatprep.subr.bf16.mxu1 %v1162_v60  ;;  %3544 = vrot.lane.b32.xlu1 %v7575_v62, %s5936_s10  ;;  %v1314_v14 = vsel %vm1300_vm9, %v1297_v9, %v1299_v11  ;;  %v1313_v51 = vsel %vm1300_vm9, %v1295_v49, %v1297_v9  ;;  %v5657_v11 = vcombine.high %v5893_v19, %v5894_v39  ;;  %vm8149_vm9 = vmmov %vm8147_vm4 }
 0x2fb   : > { %3542 = vrot.lane.b32.xlu0 %v7353_v40, %s5936_s10 }
 0x2fc   : > { %5099 = vmatpush1.bf16.msra.mxu0 %v1013_v57  ;;  %v1445_v16 = vpop.permute.xlu1 %1444 }
 0x2fd   : > { %5019 = vmatpush1.bf16.msra.mxu1 %v1161_v6  ;;  %v1443_v20 = vpop.permute.xlu0 %1442  ;;  %5100 = vmatprep.subr.bf16.mxu0 %v1164_v3  ;;  %v5886_v6 = vld [vmem:[%s5990_s19 + $0x40] ss:$68 sps:$4 sm:$0xff]  }
 0x2fe   : > { %5020 = vmatprep.subr.bf16.mxu1 %v1312_v28  ;;  %3548 = vrot.lane.b32.xlu1 %v5882_v18, %s5936_s10  ;;  %v1462_v2 = vsel %vm1450_vm11, %v1443_v20, %v1445_v16  ;;  %v1461_v41 = vsel %vm1450_vm11, %v7238_v32, %v1443_v20 }
 0x2ff   : > { %3546 = vrot.lane.b32.xlu0 %v7590_v54, %s5936_s10 }
 0x300   : > { %5101 = vmatpush1.bf16.msra.mxu0 %v1163_v59  ;;  %v1449_v33 = vpop.permute.xlu1 %1448 }
 0x301   : > { %5021 = vmatpush1.bf16.msra.mxu1 %v1311_v52  ;;  %v1447_v27 = vpop.permute.xlu0 %1446  ;;  %5102 = vmatprep.subr.bf16.mxu0 %v1314_v14 }
 0x302   : > { %5022 = vmatprep.subr.bf16.mxu1 %v1462_v2  ;;  %3694 = vrot.lane.b32.xlu1 %v7575_v62, %s5938_s16  ;;  %v1464_v61 = vsel %vm1450_vm11, %v1447_v27, %v1449_v33  ;;  %v1463_v55 = vsel %vm1450_vm11, %v1445_v16, %v1447_v27  ;;  %vm8150_vm11 = vmmov %vm8147_vm4 }
 0x303   : > { %3692 = vrot.lane.b32.xlu0 %v7353_v40, %s5938_s16 }
 0x304   : > { %5103 = vmatpush1.bf16.msra.mxu0 %v1313_v51  ;;  %v1595_v34 = vpop.permute.xlu1 %1594 }
 0x305   : > { %5023 = vmatpush1.bf16.msra.mxu1 %v1461_v41  ;;  %v1593_v38 = vpop.permute.xlu0 %1592  ;;  %5104 = vmatprep.subr.bf16.mxu0 %v1464_v61 }
 0x306   : > { %v1611_v10 = vsel %vm1600_vm13, %v7271_v1, %v1593_v38  ;;  %3698 = vrot.lane.b32.xlu1 %v5883_v31, %s5938_s16  ;;  %v1612_v42 = vsel %vm1600_vm13, %v1593_v38, %v1595_v34 }
 0x307   : > { %3696 = vrot.lane.b32.xlu0 %v7590_v54, %s5938_s16  ;;  %5024 = vmatprep.subr.bf16.mxu1 %v1612_v42  ;;  %v4573_v42 = vld [vmem:[%s7895_s2] sm:$0xff] }
 0x308   : > { %5105 = vmatpush1.bf16.msra.mxu0 %v1463_v55  ;;  %v1599_v32 = vpop.permute.xlu1 %1598 }
 0x309   : > { %5025 = vmatpush1.bf16.msra.mxu1 %v1611_v10  ;;  %v1597_v0 = vpop.permute.xlu0 %1596 }
 0x30a   : > { %v1613_v49 = vsel %vm1600_vm13, %v1595_v34, %v1597_v0  ;;  %3844 = vrot.lane.b32.xlu1 %v7575_v62, %s7997_s18  ;;  %v1614_v1 = vsel %vm1600_vm13, %v1597_v0, %v1599_v32  ;;  %v5887_v34 = vld [vmem:[%s5990_s19 + $0x40] ss:$68 sps:$4 sm:$0xff]   ;;  %vm8151_vm13 = vcmask 809984  }
 0x30b   : > { %3842 = vrot.lane.b32.xlu0 %v7353_v40, %s7997_s18  ;;  %5106 = vmatprep.subr.bf16.mxu0 %v1614_v1  ;;  %vm8153_vm8 = vmmov %vm8151_vm13 }
 0x30c   : > { %5107 = vmatpush1.bf16.msra.mxu0 %v1613_v49  ;;  %v1745_v48 = vpop.permute.xlu1 %1744  ;;  %vm8154_vm10 = vmmov %vm8153_vm8 }
 0x30d   : > { %v1743_v36 = vpop.permute.xlu0 %1742 }
 0x30e   : > { %v1761_v35 = vsel %vm1750_vm15, %v7294_v5, %v1743_v36  ;;  %3848 = vrot.lane.b32.xlu1 %v5884_v25, %s7997_s18  ;;  %v1762_v13 = vsel %vm1750_vm15, %v1743_v36, %v1745_v48 }
 0x30f   : > { %3846 = vrot.lane.b32.xlu0 %v7590_v54, %s7997_s18  ;;  %5026 = vmatprep.subr.bf16.mxu1 %v1762_v13  ;;  %v7741_v40 = vpop.f32.mrb[4].mxu1 }
 0x310   : > { %5027 = vmatpush1.bf16.msra.mxu1 %v1761_v35  ;;  %v1749_v30 = vpop.permute.xlu1 %1748  ;;  %v7743_v9 = vpop.f32.mrb[5].mxu1 }
 0x311   : > { %v1747_v60 = vpop.permute.xlu0 %1746  ;;  %v4757_v5 = vpop.f32.mrb[6].mxu1 }
 0x312   : > { %v1763_v18 = vsel %vm1750_vm15, %v1745_v48, %v1747_v60  ;;  %3994 = vrot.lane.b32.xlu1 %v7575_v62, %s7998_s22  ;;  %v1764_v57 = vsel %vm1750_vm15, %v1747_v60, %v1749_v30  ;;  %v7750_v16 = vpop.f32.mrb[4].mxu0  ;;  %v4758_v3 = vpop.f32.mrb[7].mxu1  ;;  %vm8152_vm15 = vmmov %vm8151_vm13 }
 0x313   : > { %3992 = vrot.lane.b32.xlu0 %v5657_v11, %s7998_s22  ;;  %5108 = vmatprep.subr.bf16.mxu0 %v1764_v57  ;;  %v7753_v20 = vpop.f32.mrb[5].mxu0 }
 0x314   : > { %5109 = vmatpush1.bf16.msra.mxu0 %v1763_v18  ;;  %v1895_v28 = vpop.permute.xlu1 %1894  ;;  %v4839_v59 = vpop.f32.mrb[6].mxu0 }
 0x315   : > { %v1893_v52 = vpop.permute.xlu0 %1892  ;;  %v4840_v33 = vpop.f32.mrb[7].mxu0 }
 0x316   : > { %v1911_v14 = vsel %vm8143_vm0, %v7321_v44, %v1893_v52  ;;  %3998 = vrot.lane.b32.xlu1 %v5886_v6, %s7998_s22  ;;  %v1912_v27 = vsel %vm8144_vm1, %v1893_v52, %v1895_v28  ;;  %vm8158_vm0 = vmmov %vm8156_vm5  ;;  %vm8159_vm1 = vcmask 719872  }
 0x317   : > { %3996 = vrot.lane.b32.xlu0 %v7590_v54, %s7998_s22  ;;  %5028 = vmatprep.subr.bf16.mxu1 %v1912_v27 }
 0x318   : > { %5029 = vmatpush1.bf16.msra.mxu1 %v1911_v14  ;;  %v1899_v2 = vpop.permute.xlu1 %1898 }
 0x319   : > { %v1897_v31 = vpop.permute.xlu0 %1896 }
 0x31a   : > { %v1913_v51 = vsel %vm8145_vm2, %v1895_v28, %v1897_v31  ;;  %4144 = vrot.lane.b32.xlu1 %v7575_v62, %s5944_s24  ;;  %v1914_v41 = vsel %vm8146_vm3, %v1897_v31, %v1899_v2  ;;  %vm8160_vm2 = vmmov %vm8159_vm1 }
 0x31b   : > { %4142 = vrot.lane.b32.xlu0 %v5657_v11, %s5944_s24  ;;  %5110 = vmatprep.subr.bf16.mxu0 %v1914_v41  ;;  %vm8161_vm3 = vmmov %vm8159_vm1 }
 0x31c   : > { %5111 = vmatpush1.bf16.msra.mxu0 %v1913_v51  ;;  %v2045_v44 = vpop.permute.xlu1 %2044 }
 0x31d   : > { %v2043_v61 = vpop.permute.xlu0 %2042 }
 0x31e   : > { %v2061_v38 = vsel %vm8147_vm4, %v7341_v50, %v2043_v61  ;;  %4148 = vrot.lane.b32.xlu1 %v5887_v34, %s5944_s24  ;;  %v2062_v10 = vsel %vm8148_vm7, %v2043_v61, %v2045_v44  ;;  %vm8162_vm4 = vmmov %vm8159_vm1  ;;  %vm8163_vm7 = vcmask 392192  }
 0x31f   : > { %4146 = vrot.lane.b32.xlu0 %v7590_v54, %s5944_s24  ;;  %5030 = vmatprep.subr.bf16.mxu1 %v2062_v10 }
 0x320   : > { %5031 = vmatpush1.bf16.msra.mxu1 %v2061_v38  ;;  %v2049_v62 = vpop.permute.xlu1 %2048 }
 0x321   : > { %v2047_v55 = vpop.permute.xlu0 %2046 }
 0x322   : > { %v2063_v32 = vsel %vm8149_vm9, %v2045_v44, %v2047_v55  ;;  %v2064_v0 = vsel %vm8150_vm11, %v2047_v55, %v2049_v62  ;;  %vm8164_vm9 = vcmask 711680  }
 0x323   : > { %4576 = vperm.xlu0 %5782, %v4573_v42   ;;  %5112 = vmatprep.subr.bf16.mxu0 %v2064_v0  ;;  %vm8165_vm11 = vmmov %vm8164_vm9 }
 0x324   : > { %5113 = vmatpush1.bf16.msra.mxu0 %v2063_v32  ;;  %v2195_v50 = vpop.permute.xlu1 %2194 }
 0x325   : > { %v2193_v49 = vpop.permute.xlu0 %2192 }
 0x326   : > { %v2211_v54 = vsel %vm8151_vm13, %v7361_v23, %v2193_v49  ;;  %v2212_v1 = vsel %vm8152_vm15, %v2193_v49, %v2195_v50  ;;  %vm8166_vm13 = vmmov %vm8163_vm7 }
 0x327   : > { %5032 = vmatprep.subr.bf16.mxu1 %v2212_v1  ;;  %vm8167_vm15 = vmmov %vm8164_vm9 }
 0x328   : > { %5033 = vmatpush1.bf16.msra.mxu1 %v2211_v54  ;;  %v2199_v25 = vpop.permute.xlu1 %2198 }
 0x329   : > { %v2197_v48 = vpop.permute.xlu0 %2196 }
 0x32a   : > { %v2213_v36 = vsel %vm8153_vm8, %v2195_v50, %v2197_v48  ;;  %v2214_v35 = vsel %vm8154_vm10, %v2197_v48, %v2199_v25  ;;  %vm8168_vm8 = vmmov %vm8164_vm9  ;;  %vm8169_vm10 = vcmask 703488  }
 0x32b   : > { %5114 = vmatprep.subr.bf16.mxu0 %v2214_v35 }
 0x32c   : > { %5115 = vmatpush1.bf16.msra.mxu0 %v2213_v36  ;;  %v2345_v13 = vpop.permute.xlu1 %2344 }
 0x32d   : > { %v2343_v19 = vpop.permute.xlu0 %2342 }
 0x32e   : > { %v2361_v39 = vsel %vm8155_vm12, %v7377_v58, %v2343_v19  ;;  %v2362_v11 = vsel %vm8156_vm5, %v2343_v19, %v2345_v13  ;;  %vm8170_vm12 = vmmov %vm8169_vm10 }
 0x32f   : > { %5034 = vmatprep.subr.bf16.mxu1 %v2362_v11  ;;  %vm8171_vm5 = vmmov %vm8169_vm10 }
 0x330   : > { %5035 = vmatpush1.bf16.msra.mxu1 %v2361_v39  ;;  %v2349_v23 = vpop.permute.xlu1 %2348 }
 0x331   : > { %v2347_v30 = vpop.permute.xlu0 %2346 }
 0x332   : > { %v2363_v60 = vsel %vm8157_vm6, %v2345_v13, %v2347_v30  ;;  %v2364_v5 = vsel %vm8158_vm0, %v2347_v30, %v2349_v23  ;;  %vm8172_vm6 = vmmov %vm8171_vm5  ;;  %vm8173_vm0 = vcmask 785408  }
 0x333   : > { %5116 = vmatprep.subr.bf16.mxu0 %v2364_v5 }
 0x334   : > { %5117 = vmatpush1.bf16.msra.mxu0 %v2363_v60  ;;  %v2495_v18 = vpop.permute.xlu1 %2494 }
 0x335   : > { %v2493_v57 = vpop.permute.xlu0 %2492 }
 0x336   : > { %v2511_v6 = vsel %vm8159_vm1, %v7393_v53, %v2493_v57  ;;  %v2512_v3 = vsel %vm8160_vm2, %v2493_v57, %v2495_v18  ;;  %vm8174_vm1 = vmmov %vm8173_vm0 }
 0x337   : > { %5036 = vmatprep.subr.bf16.mxu1 %v2512_v3  ;;  %vm8175_vm2 = vmmov %vm8173_vm0 }
 0x338   : > { %5037 = vmatpush1.bf16.msra.mxu1 %v2511_v6  ;;  %v2499_v58 = vpop.permute.xlu1 %2498 }
 0x339   : > { %v2497_v28 = vpop.permute.xlu0 %2496 }
 0x33a   : > { %v2513_v59 = vsel %vm8161_vm3, %v2495_v18, %v2497_v28  ;;  %v2514_v52 = vsel %vm8162_vm4, %v2497_v28, %v2499_v58  ;;  %vm8176_vm3 = vmmov %vm8173_vm0  ;;  %vm8177_vm4 = vcmask 777216  }
 0x33b   : > { %5118 = vmatprep.subr.bf16.mxu0 %v2514_v52  ;;  %5039 = vmatmul.mubr.bf16.vlgmr.msra.gmra.mrb[12].mxu1 %v6682_v37 }
 0x33c   : > { %5119 = vmatpush1.bf16.msra.mxu0 %v2513_v59  ;;  %v2645_v33 = vpop.permute.xlu1 %2644  ;;  %5685 = vmatprep.mubr.msk.bf16.mxu1 %vm8163_vm7, %v6405_v56  ;;  %vm8178_vm7 = vmmov %vm8177_vm4 }
 0x33d   : > { %v2643_v14 = vpop.permute.xlu0 %2642 }
 0x33e   : > { %v2661_v53 = vsel %vm8164_vm9, %v7415_v24, %v2643_v14  ;;  %v2662_v27 = vsel %vm8165_vm11, %v2643_v14, %v2645_v33  ;;  %vm8179_vm9 = vmmov %vm8177_vm4 }
 0x33f   : > { %5047 = vmatprep.subr.bf16.mxu1 %v2662_v27  ;;  %5121 = vmatmul.mubr.bf16.vlgmr.msra.gmra.mrb[12].mxu0 %v6682_v37  ;;  %vm8180_vm11 = vmmov %vm8177_vm4 }
 0x340   : > { %5048 = vmatpush1.bf16.msra.mxu1 %v2661_v53  ;;  %v2649_v2 = vpop.permute.xlu1 %2648  ;;  %5686 = vmatprep.mubr.msk.bf16.mxu0 %vm8166_vm13, %v6405_v56  ;;  %vm8181_vm13 = vcmask 769024  }
 0x341   : > { %v2647_v31 = vpop.permute.xlu0 %2646 }
 0x342   : > { %v2663_v51 = vsel %vm8167_vm15, %v2645_v33, %v2647_v31  ;;  %v2664_v41 = vsel %vm8168_vm8, %v2647_v31, %v2649_v2  ;;  %vm8182_vm15 = vmmov %vm8181_vm13 }
 0x343   : > { %5129 = vmatprep.subr.bf16.mxu0 %v2664_v41  ;;  %vm8183_vm8 = vmmov %vm8181_vm13 }
 0x344   : > { %5130 = vmatpush1.bf16.msra.mxu0 %v2663_v51  ;;  %v2795_v34 = vpop.permute.xlu1 %2794 }
 0x345   : > { %v2793_v44 = vpop.permute.xlu0 %2792 }
 0x346   : > { %v2811_v24 = vsel %vm8169_vm10, %v7440_v7, %v2793_v44  ;;  %v2812_v61 = vsel %vm8170_vm12, %v2793_v44, %v2795_v34  ;;  %vm8184_vm10 = vmmov %vm8183_vm8  ;;  %vm8185_vm12 = vcmask 687104  }
 0x347   : > { %5049 = vmatprep.subr.bf16.mxu1 %v2812_v61 }
 0x348   : > { %5050 = vmatpush1.bf16.msra.mxu1 %v2811_v24  ;;  %v2799_v37 = vpop.permute.xlu1 %2798 }
 0x349   : > { %v2797_v38 = vpop.permute.xlu0 %2796 }
 0x34a   : > { %v2813_v56 = vsel %vm8171_vm5, %v2795_v34, %v2797_v38  ;;  %v2814_v10 = vsel %vm8172_vm6, %v2797_v38, %v2799_v37  ;;  %vm8186_vm5 = vmmov %vm8185_vm12 }
 0x34b   : > { %5131 = vmatprep.subr.bf16.mxu0 %v2814_v10  ;;  %vm8187_vm6 = vmmov %vm8186_vm5 }
 0x34c   : > { %5132 = vmatpush1.bf16.msra.mxu0 %v2813_v56  ;;  %v2945_v62 = vpop.permute.xlu1 %2944 }
 0x34d   : > { %v2943_v42 = vpop.permute.xlu0 %2942 }
 0x34e   : > { %v2961_v55 = vsel %vm8173_vm0, %v7456_v43, %v2943_v42  ;;  %v2962_v32 = vsel %vm8174_vm1, %v2943_v42, %v2945_v62  ;;  %vm8188_vm0 = vmmov %vm8186_vm5  ;;  %vm8189_vm1 = vcmask 678912  }
 0x34f   : > { %5051 = vmatprep.subr.bf16.mxu1 %v2962_v32 }
 0x350   : > { %5052 = vmatpush1.bf16.msra.mxu1 %v2961_v55  ;;  %v2949_v7 = vpop.permute.xlu1 %2948 }
 0x351   : > { %v2947_v0 = vpop.permute.xlu0 %2946 }
 0x352   : > { %v2963_v50 = vsel %vm8175_vm2, %v2945_v62, %v2947_v0  ;;  %v2964_v49 = vsel %vm8176_vm3, %v2947_v0, %v2949_v7  ;;  %vm8190_vm2 = vmmov %vm8189_vm1 }
 0x353   : > { %5133 = vmatprep.subr.bf16.mxu0 %v2964_v49  ;;  %vm8191_vm3 = vmmov %vm8189_vm1 }
 0x354   : > { %5134 = vmatpush1.bf16.msra.mxu0 %v2963_v50  ;;  %v3095_v54 = vpop.permute.xlu1 %3094 }
 0x355   : > { %v3093_v1 = vpop.permute.xlu0 %3092 }
 0x356   : > { %v3111_v25 = vsel %vm8177_vm4, %v7480_v29, %v3093_v1  ;;  %v3112_v48 = vsel %vm8178_vm7, %v3093_v1, %v3095_v54  ;;  %vm8192_vm4 = vmmov %vm8189_vm1  ;;  %vm8193_vm7 = vcmask 670720  }
 0x357   : > { %5053 = vmatprep.subr.bf16.mxu1 %v3112_v48 }
 0x358   : > { %5054 = vmatpush1.bf16.msra.mxu1 %v3111_v25  ;;  %v3099_v43 = vpop.permute.xlu1 %3098 }
 0x359   : > { %v3097_v36 = vpop.permute.xlu0 %3096 }
 0x35a   : > { %v3113_v35 = vsel %vm8179_vm9, %v3095_v54, %v3097_v36  ;;  %v3114_v13 = vsel %vm8180_vm11, %v3097_v36, %v3099_v43  ;;  %vm8194_vm9 = vmmov %vm8193_vm7 }
 0x35b   : > { %5135 = vmatprep.subr.bf16.mxu0 %v3114_v13  ;;  %vm8195_vm11 = vmmov %vm8193_vm7 }
 0x35c   : > { %5136 = vmatpush1.bf16.msra.mxu0 %v3113_v35  ;;  %v3245_v19 = vpop.permute.xlu1 %3244 }
 0x35d   : > { %v3243_v39 = vpop.permute.xlu0 %3242 }
 0x35e   : > { %v3261_v11 = vsel %vm8181_vm13, %v7496_v45, %v3243_v39  ;;  %v3262_v23 = vsel %vm8182_vm15, %v3243_v39, %v3245_v19  ;;  %vm8196_vm13 = vmmov %vm8193_vm7  ;;  %vm8197_vm15 = vcmask 588800  }
 0x35f   : > { %5055 = vmatprep.subr.bf16.mxu1 %v3262_v23 }
 0x360   : > { %5056 = vmatpush1.bf16.msra.mxu1 %v3261_v11  ;;  %v3249_v29 = vpop.permute.xlu1 %3248 }
 0x361   : > { %v3247_v30 = vpop.permute.xlu0 %3246 }
 0x362   : > { %v3263_v60 = vsel %vm8183_vm8, %v3245_v19, %v3247_v30  ;;  %v3264_v5 = vsel %vm8184_vm10, %v3247_v30, %v3249_v29  ;;  %vm8198_vm8 = vmmov %vm8197_vm15 }
 0x363   : > { %5137 = vmatprep.subr.bf16.mxu0 %v3264_v5  ;;  %vm8199_vm10 = vmmov %vm8198_vm8 }
 0x364   : > { %5138 = vmatpush1.bf16.msra.mxu0 %v3263_v60  ;;  %v3395_v18 = vpop.permute.xlu1 %3394 }
 0x365   : > { %v3393_v57 = vpop.permute.xlu0 %3392 }
 0x366   : > { %v3411_v6 = vsel %vm8185_vm12, %v7512_v4, %v3393_v57  ;;  %v3412_v3 = vsel %vm8186_vm5, %v3393_v57, %v3395_v18  ;;  %vm8200_vm12 = vmmov %vm8198_vm8  ;;  %vm8201_vm5 = vcmask 580608  }
 0x367   : > { %5057 = vmatprep.subr.bf16.mxu1 %v3412_v3 }
 0x368   : > { %5058 = vmatpush1.bf16.msra.mxu1 %v3411_v6  ;;  %v3399_v45 = vpop.permute.xlu1 %3398 }
 0x369   : > { %v3397_v58 = vpop.permute.xlu0 %3396 }
 0x36a   : > { %v3413_v28 = vsel %vm8187_vm6, %v3395_v18, %v3397_v58  ;;  %v3414_v59 = vsel %vm8188_vm0, %v3397_v58, %v3399_v45  ;;  %vm8202_vm6 = vmmov %vm8201_vm5 }
 0x36b   : > { %5139 = vmatprep.subr.bf16.mxu0 %v3414_v59  ;;  %vm8203_vm0 = vmmov %vm8201_vm5 }
 0x36c   : > { %5140 = vmatpush1.bf16.msra.mxu0 %v3413_v28  ;;  %v3545_v52 = vpop.permute.xlu1 %3544 }
 0x36d   : > { %v3543_v33 = vpop.permute.xlu0 %3542 }
 0x36e   : > { %v3561_v14 = vsel %vm8189_vm1, %v7528_v12, %v3543_v33  ;;  %v3562_v53 = vsel %vm8190_vm2, %v3543_v33, %v3545_v52  ;;  %vm8204_vm1 = vmmov %vm8203_vm0 }
 0x36f   : > { %5059 = vmatprep.subr.bf16.mxu1 %v3562_v53 }
 0x370   : > { %5060 = vmatpush1.bf16.msra.mxu1 %v3561_v14  ;;  %v3549_v4 = vpop.permute.xlu1 %3548 }
 0x371   : > { %v3547_v27 = vpop.permute.xlu0 %3546 }
 0x372   : > { %v3563_v2 = vsel %vm8191_vm3, %v3545_v52, %v3547_v27  ;;  %v3564_v31 = vsel %vm8192_vm4, %v3547_v27, %v3549_v4 }
 0x373   : > { %5141 = vmatprep.subr.bf16.mxu0 %v3564_v31 }
 0x374   : > { %5142 = vmatpush1.bf16.msra.mxu0 %v3563_v2  ;;  %v3695_v51 = vpop.permute.xlu1 %3694 }
 0x375   : > { %v3693_v41 = vpop.permute.xlu0 %3692 }
 0x376   : > { %v3711_v34 = vsel %vm8193_vm7, %v7544_v17, %v3693_v41  ;;  %v3712_v44 = vsel %vm8194_vm9, %v3693_v41, %v3695_v51 }
 0x377   : > { %5061 = vmatprep.subr.bf16.mxu1 %v3712_v44 }
 0x378   : > { %5062 = vmatpush1.bf16.msra.mxu1 %v3711_v34  ;;  %v3699_v12 = vpop.permute.xlu1 %3698 }
 0x379   : > { %v3697_v24 = vpop.permute.xlu0 %3696 }
 0x37a   : > { %v3713_v61 = vsel %vm8195_vm11, %v3695_v51, %v3697_v24  ;;  %v3714_v37 = vsel %vm8196_vm13, %v3697_v24, %v3699_v12 }
 0x37b   : > { %5143 = vmatprep.subr.bf16.mxu0 %v3714_v37 }
 0x37c   : > { %5144 = vmatpush1.bf16.msra.mxu0 %v3713_v61  ;;  %v3845_v38 = vpop.permute.xlu1 %3844 }
 0x37d   : > { %v3843_v56 = vpop.permute.xlu0 %3842 }
 0x37e   : > { %v3861_v10 = vsel %vm8197_vm15, %v7560_v8, %v3843_v56  ;;  %v3862_v62 = vsel %vm8198_vm8, %v3843_v56, %v3845_v38 }
 0x37f   : > { %5063 = vmatprep.subr.bf16.mxu1 %v3862_v62 }
 0x380   : > { %5064 = vmatpush1.bf16.msra.mxu1 %v3861_v10  ;;  %v3849_v17 = vpop.permute.xlu1 %3848 }
 0x381   : > { %v3847_v42 = vpop.permute.xlu0 %3846 }
 0x382   : > { %v3863_v55 = vsel %vm8199_vm10, %v3845_v38, %v3847_v42  ;;  %v3864_v32 = vsel %vm8200_vm12, %v3847_v42, %v3849_v17 }
 0x383   : > { %5145 = vmatprep.subr.bf16.mxu0 %v3864_v32 }
 0x384   : > { %5146 = vmatpush1.bf16.msra.mxu0 %v3863_v55  ;;  %v3995_v7 = vpop.permute.xlu1 %3994 }
 0x385   : > { %v3993_v0 = vpop.permute.xlu0 %3992 }
 0x386   : > { %v4011_v50 = vsel %vm8201_vm5, %v7579_v15, %v3993_v0  ;;  %v4012_v49 = vsel %vm8202_vm6, %v3993_v0, %v3995_v7 }
 0x387   : > { %5065 = vmatprep.subr.bf16.mxu1 %v4012_v49 }
 0x388   : > { %5066 = vmatpush1.bf16.msra.mxu1 %v4011_v50  ;;  %v3999_v8 = vpop.permute.xlu1 %3998 }
 0x389   : > { %v3997_v54 = vpop.permute.xlu0 %3996 }
 0x38a   : > { %v4013_v1 = vsel %vm8203_vm0, %v3995_v7, %v3997_v54  ;;  %v4014_v25 = vsel %vm8204_vm1, %v3997_v54, %v3999_v8 }
 0x38b   : > { %5147 = vmatprep.subr.bf16.mxu0 %v4014_v25 }
 0x38c   : > { %5148 = vmatpush1.bf16.msra.mxu0 %v4013_v1  ;;  %v4145_v48 = vpop.permute.xlu1 %4144 }
 0x38d   : > { %v4143_v43 = vpop.permute.xlu0 %4142 }
 0x38e   : > { %v4161_v36 = vsel %vm4150_vm14, %v7598_v21, %v4143_v43  ;;  %v4162_v15 = vsel %vm4150_vm14, %v4143_v43, %v4145_v48 }
 0x38f   : > { %5067 = vmatprep.subr.bf16.mxu1 %v4162_v15 }
 0x390   : > { %5068 = vmatpush1.bf16.msra.mxu1 %v4161_v36  ;;  %v4149_v35 = vpop.permute.xlu1 %4148 }
 0x391   : > { %v4147_v13 = vpop.permute.xlu0 %4146 }
 0x392   : > { %v4163_v19 = vsel %vm4150_vm14, %v4145_v48, %v4147_v13  ;;  %v4164_v39 = vsel %vm4150_vm14, %v4147_v13, %v4149_v35 }
 0x393   : > { %5080 = vmatmul.mubr.bf16.vlgmr.msra.gmra.mrb[12].mxu1 %v6674_v46  ;;  %5149 = vmatprep.subr.bf16.mxu0 %v4164_v39 }
 0x394   : > { %5150 = vmatpush1.bf16.msra.mxu0 %v4163_v19 }
 0x397   : > { %5162 = vmatmul.mubr.bf16.vlgmr.msra.gmra.mrb[12].mxu0 %v6674_v46 }
 0x3a2   : > { %v4577_v21 = vpop.permute.xlu0 %4576 }
 0x3a3   : > { %v4631_v11 = vadd.f32 %v7466_v22, %v4577_v21  ;;  %v4633_v23 = vadd.f32 %v7476_v26, %v4577_v21  ;;  %v5693_v29 = vadd.f32 %v7741_v40, %v4577_v21  ;;  %v5694_v46 = vadd.f32 %v7743_v9, %v4577_v21 }
 0x3a4   : > { %v5695_v30 = vadd.f32 %v7750_v16, %v4577_v21  ;;  %v5696_v60 = vadd.f32 %v7753_v20, %v4577_v21 }
 0x3a5   : > { %v4672_v5 = vadd.f32 %v7468_v63, %v4631_v11  ;;  %v4674_v18 = vadd.f32 %v7470_v47, %v4633_v23  ;;  %5172 = vst [vmem:[%s7860_s29 + $0x10] sm:$0xff] %v5693_v29  ;;  %5173 = vst [vmem:[%s7860_s29 + $0x18] sm:$0xff] %v5694_v46 }
 0x3a6   : > { %5174 = vst [vmem:[%s7860_s29 + $0x20] sm:$0xff] %v5695_v30  ;;  %5175 = vst [vmem:[%s7860_s29 + $0x28] sm:$0xff] %v5696_v60 }
 0x3a7   : > { %5170 = vst [vmem:[%s7860_s29] sm:$0xff] %v4672_v5  ;;  %5171 = vst [vmem:[%s7860_s29 + $0x8] sm:$0xff] %v4674_v18 }
 0x3b7   : > { %v4917_v22 = vpop.f32.mrb[8].mxu1 }
 0x3b8   : > { %v5697_v26 = vadd.f32 %v4917_v22, %v4577_v21  ;;  %v4919_v40 = vpop.f32.mrb[9].mxu1 }
 0x3b9   : > { %v5698_v9 = vadd.f32 %v4919_v40, %v4577_v21  ;;  %v4921_v16 = vpop.f32.mrb[10].mxu1 }
 0x3ba   : > { %5176 = vst [vmem:[%s7860_s29 + $0x30] sm:$0xff] %v5697_v26  ;;  %v4999_v20 = vpop.f32.mrb[8].mxu0  ;;  %v4922_v63 = vpop.f32.mrb[11].mxu1 }
 0x3bb   : > { %v5699_v47 = vadd.f32 %v4999_v20, %v4577_v21  ;;  %5177 = vst [vmem:[%s7860_s29 + $0x38] sm:$0xff] %v5698_v9  ;;  %v5001_v57 = vpop.f32.mrb[9].mxu0 }
 0x3bc   : > { %v5700_v6 = vadd.f32 %v5001_v57, %v4577_v21  ;;  %v5003_v3 = vpop.f32.mrb[10].mxu0 }
 0x3bd   : > { %5178 = vst [vmem:[%s7860_s29 + $0x40] sm:$0xff] %v5699_v47  ;;  %v5004_v45 = vpop.f32.mrb[11].mxu0 }
 0x3be   : > { %5179 = vst [vmem:[%s7860_s29 + $0x48] sm:$0xff] %v5700_v6 }
 0x466   : > { %v5081_v58 = vpop.f32.mrb[12].mxu1 }
 0x467   : > { %v5701_v28 = vadd.f32 %v5081_v58, %v4577_v21  ;;  %v5083_v59 = vpop.f32.mrb[13].mxu1 }
 0x468   : > { %v5702_v52 = vadd.f32 %v5083_v59, %v4577_v21  ;;  %v5085_v33 = vpop.f32.mrb[14].mxu1 }
 0x469   : > { %5180 = vst [vmem:[%s7860_s29 + $0x50] sm:$0xff] %v5701_v28  ;;  %v5086_v14 = vpop.f32.mrb[15].mxu1 }
 0x46a   : > { %5181 = vst [vmem:[%s7860_s29 + $0x58] sm:$0xff] %v5702_v52  ;;  %v5163_v53 = vpop.f32.mrb[12].mxu0 }
 0x46b   : > { %v5703_v4 = vadd.f32 %v5163_v53, %v4577_v21  ;;  %v5165_v27 = vpop.f32.mrb[13].mxu0 }
 0x46c   : > { %v5704_v2 = vadd.f32 %v5165_v27, %v4577_v21  ;;  %v5167_v31 = vpop.f32.mrb[14].mxu0 }
 0x46d   : > { %5182 = vst [vmem:[%s7860_s29 + $0x60] sm:$0xff] %v5703_v4  ;;  %v5168_v51 = vpop.f32.mrb[15].mxu0 }
 0x46e   : > { %5183 = vst [vmem:[%s7860_s29 + $0x68] sm:$0xff] %v5704_v2 }
 0x46f PF: > { %s13_s14 = sadd.s32 1, %s5917_s14   ;;  %s8205_s12 = smov %s5913_s13 }
 0x470   : > { %p10_p5 = scmp.ge.s32.totalorder %s13_s14, 4   ;;  %s8206_s13 = smov %s8208_s15 }
 0x472   :  { %12 = sbr.rel (!%p10_p5) target bundleno = 2 (0x2), region = 62 }

</bundles_post_ra>
